<compile_context>
chip_gen: v7x
topology: tpu7x:2x2x1
jax: 0.10.0
libtpu: 0.0.40
codegen_flags: <defaults>
</compile_context>

<pallas_src>
import functools

import jax
import jax.numpy as jnp
from jax.experimental import pallas as pl
from jax.experimental.pallas import tpu as pltpu

F32 = jnp.float32
BF16 = jnp.bfloat16

# torch.nn.functional.gelu defaults to the exact erf form; set True to use the
# tanh approximation (runs on the otherwise-idle EUP, tiny numeric deviation).
GELU_TANH_APPROX = False


def _erf(x):
    # Abramowitz & Stegun 7.1.26 (|err| < 1.5e-7).  Uses exp (EUP) + a short
    # polynomial instead of relying on a lax.erf lowering inside Mosaic.
    p = 0.3275911
    a1, a2, a3, a4, a5 = (0.254829592, -0.284496736, 1.421413741,
                          -1.453152027, 1.061405429)
    ax = jnp.abs(x)
    t = 1.0 / (1.0 + p * ax)
    poly = t * (a1 + t * (a2 + t * (a3 + t * (a4 + t * a5))))
    y = 1.0 - poly * jnp.exp(-ax * ax)
    return jnp.where(x >= 0.0, y, -y)


def _gelu(x):
    if GELU_TANH_APPROX:
        c = 0.7978845608028654  # sqrt(2/pi)
        return 0.5 * x * (1.0 + jnp.tanh(c * (x + 0.044715 * x * x * x)))
    return 0.5 * x * (1.0 + _erf(x * 0.7071067811865476))


# ---------------------------------------------------------------------------
# value-based zero-fill shifts (depthwise conv taps)
# ---------------------------------------------------------------------------
def _shift_rows(v, d):
    # result[h] = v[h + d], zero outside the valid range.  H is the outer dim,
    # so these are plain tile/address offsets.
    H = v.shape[0]
    if d == 0:
        return v
    if abs(d) >= H:
        return jnp.zeros_like(v)
    z = jnp.zeros((abs(d),) + v.shape[1:], v.dtype)
    if d > 0:
        return jnp.concatenate([v[d:], z], axis=0)
    return jnp.concatenate([z, v[:H + d]], axis=0)


def _shift_cols(v, d):
    # result[:, w] = v[:, w + d], zero outside.  W is the sublane dim: these
    # lower to XLU shifts that co-issue with the VALU multiply-adds.
    W = v.shape[1]
    if d == 0:
        return v
    if abs(d) >= W:
        return jnp.zeros_like(v)
    z = jnp.zeros((v.shape[0], abs(d)) + v.shape[2:], v.dtype)
    if d > 0:
        return jnp.concatenate([v[:, d:], z], axis=1)
    return jnp.concatenate([z, v[:, :W + d]], axis=1)


def _dw_conv(v, w_rows, bias, kh, kw, ph, pw):
    """Depthwise 'same' conv on a register/VMEM-resident (H, W, C) value.

    Column shifts are computed once and reused across kernel rows; taps that
    fall entirely inside the zero padding are skipped at trace time.
    """
    H, W = v.shape[0], v.shape[1]
    cols = []
    for dx in range(kw):
        d = dx - pw
        cols.append(None if abs(d) >= W else _shift_cols(v, d))
    out = None
    for dy in range(kh):
        if abs(dy - ph) >= H:
            continue                       # tap rows fully in the zero pad
        racc = None
        for dx in range(kw):
            if cols[dx] is None:
                continue                   # tap cols fully in the zero pad
            term = cols[dx] * w_rows[dy * kw + dx]
            racc = term if racc is None else racc + term
        if racc is None:
            continue
        sh = _shift_rows(racc, dy - ph)
        out = sh if out is None else out + sh
    out = jnp.zeros_like(v) if out is None else out
    return out + bias


# ---------------------------------------------------------------------------
# stride-2 3x3 conv (+ folded eval-BN) as ONE MXU matmul over K = 9*cin
# ---------------------------------------------------------------------------
def _stride2_conv(s_ref, pieces, w_ref, b_ref, ho, wo, cin):
    """pieces[p][q]: (ho, wo, cin) value holding input rows 2r+p, cols 2c+q.

    s_ref: (2, 2, ho+1, wo+1, cin) parity-major VMEM scratch with a 1-deep
    zero border on the top row / left column (border-only zeroing: the
    interior is fully overwritten).  Every 3x3 stencil tap is then a
    contiguous slice; the nine taps are concatenated along the channel axis
    and contracted in a single (ho*wo, 9*cin) x (9*cin, cout) dot so the tap
    accumulation stays inside the MXU (MRB in-place accumulate on v7x).
    """
    s_ref[:, :, 0:1, :, :] = jnp.zeros((2, 2, 1, wo + 1, cin), F32)
    s_ref[:, :, :, 0:1, :] = jnp.zeros((2, 2, ho + 1, 1, cin), F32)
    for p in (0, 1):
        for q in (0, 1):
            s_ref[p, q, 1:, 1:, :] = pieces[p][q]
    # kernel offsets i (rows) / j (cols) in {0,1,2} -> (parity, block offset)
    rpo = ((1, 0), (0, 1), (1, 1))
    taps = [s_ref[pi, qj, ri:ri + ho, cj:cj + wo, :]
            for pi, ri in rpo for qj, cj in rpo]
    a = jnp.concatenate(taps, axis=-1).reshape(ho * wo, 9 * cin)
    return jnp.dot(a.astype(BF16), w_ref[...],
                   preferred_element_type=jnp.float32) + b_ref[...]


# ---------------------------------------------------------------------------
# fused Stage kernel: stem x2 -> Block -> LayerNorm (per batch element)
# ---------------------------------------------------------------------------
def _stage_kernel(xr_ref, w1_ref, b1_ref, w2_ref, b2_ref, wcc_ref, wdw_ref,
                  wfc1_ref, wdwf_ref, wfc2_ref, vc_ref, vh_ref,
                  o_ref, s1_ref, s2_ref, *, H, W, C, HID, cin, cmid):
    HW = H * W

    # ---- stem: two DownSampling (conv3x3 s2 p1 + folded eval-BN) ----------
    x5 = xr_ref[...]                                 # (2H, 2, 2W, 2*cin)
    p1 = [[x5[:, p, :, q * cin:(q + 1) * cin] for q in (0, 1)] for p in (0, 1)]
    y1 = _stride2_conv(s1_ref, p1, w1_ref, b1_ref, 2 * H, 2 * W, cin)
    y1_5 = y1.reshape(H, 2, W, 2, cmid)              # re-pack parity (free)
    p2 = [[y1_5[:, p, :, q, :] for q in (0, 1)] for p in (0, 1)]
    x = _stride2_conv(s2_ref, p2, w2_ref, b2_ref, H, W, cmid)     # (HW, C)

    # ---- Block -------------------------------------------------------------
    wdw = wdw_ref[...]        # (103, C) hoisted once (was 103 single-row loads)
    wdwf = wdwf_ref[...]      # (9, HID)
    vc = vc_ref[...]          # (15, C)
    vh = vh_ref[...]          # (2, HID)

    def mm(a, w):             # MXU: bf16 operands, f32 accumulation
        return jnp.dot(a.astype(BF16), w, preferred_element_type=jnp.float32)

    # Attention: fc1 (eval-BN norm1 folded into the weights) -> GELU
    a = _gelu(mm(x, wcc_ref[0]) + vc[0])
    u = a                                            # MSCA gating operand
    a3 = a.reshape(H, W, C)

    # MSCA: 5x5 then (1x7,7x1)+(1x11,11x1)+(1x21,21x1), accumulated in place
    c0 = _dw_conv(a3, wdw[0:25], vc[1], 5, 5, 2, 2)
    s = c0
    s = s + _dw_conv(_dw_conv(c0, wdw[25:32], vc[2], 1, 7, 0, 3),
                     wdw[32:39], vc[3], 7, 1, 3, 0)
    s = s + _dw_conv(_dw_conv(c0, wdw[39:50], vc[4], 1, 11, 0, 5),
                     wdw[50:61], vc[5], 11, 1, 5, 0)
    s = s + _dw_conv(_dw_conv(c0, wdw[61:82], vc[6], 1, 21, 0, 10),
                     wdw[82:103], vc[7], 21, 1, 10, 0)
    m = (mm(s.reshape(HW, C), wcc_ref[1]) + vc[8]) * u   # MSCA fc, then gate
    att = mm(m, wcc_ref[2]) + vc[9]                      # attention fc2
    x1 = x + att * vc[10]                                # + layer_scale1

    # FFN: fc1 (norm2 folded) -> depthwise 3x3 -> GELU -> fc2
    f = mm(x1, wfc1_ref[...]) + vh[0]                    # (HW, HID)
    g = _gelu(_dw_conv(f.reshape(H, W, HID), wdwf, vh[1], 3, 3, 1, 1))
    f2 = mm(g.reshape(HW, HID), wfc2_ref[...]) + vc[11]
    x2 = x1 + f2 * vc[12]                                # + layer_scale2

    # stage-final LayerNorm over channels
    mu = jnp.mean(x2, axis=-1, keepdims=True)
    xc = x2 - mu
    var = jnp.mean(xc * xc, axis=-1, keepdims=True)
    y = xc * jax.lax.rsqrt(var + 1e-5) * vc[13] + vc[14]

    # ---- lane-dense output slab -------------------------------------------
    if o_ref.shape[-1] == C:                             # no packing possible
        o_ref[...] = y.astype(o_ref.dtype)
    else:
        grp = o_ref.shape[-1] // C
        rows = o_ref.shape[0]
        o_ref[...] = jnp.concatenate(
            [y[g * rows:(g + 1) * rows, :] for g in range(grp)],
            axis=-1).astype(o_ref.dtype)


# ---------------------------------------------------------------------------
# wrapper
# ---------------------------------------------------------------------------
def stage_forward(x_nchw, pp):
    N, Cin, Hin, Win = x_nchw.shape
    assert Hin % 4 == 0 and Win % 4 == 0, "stage 0 downsamples spatially by 4"
    H, W = Hin // 4, Win // 4
    Cmid = pp["w1"].shape[-1]
    C = pp["w2"].shape[-1]
    HID = pp["wfc1"].shape[-1]
    HW = H * W

    # NCHW -> NHWC, then pack row/column parity into extra dims.  Both reshapes
    # are contiguous (metadata-only); the kernel DMA reads the input exactly
    # once - no jnp.pad / strided phase gathers materialized in HBM.
    x = jnp.transpose(x_nchw, (0, 2, 3, 1))
    xr = x.reshape(N, Hin // 2, 2, Win // 2, 2 * Cin)

    # lane-dense output: (N, HW*C/128, 128) when it divides evenly
    lane_pack = C <= 128 and 128 % C == 0 and HW % (128 // C) == 0
    grp = (128 // C) if lane_pack else 1
    orows, ocols = (HW // grp, grp * C) if lane_pack else (HW, C)

    kern = functools.partial(_stage_kernel, H=H, W=W, C=C, HID=HID,
                             cin=Cin, cmid=Cmid)

    def _full(a):
        return pl.BlockSpec(a.shape, lambda n, nd=a.ndim: (0,) * nd)

    y = pl.pallas_call(
        kern,
        grid=(N,),
        in_specs=[
            pl.BlockSpec((None, Hin // 2, 2, Win // 2, 2 * Cin),
                         lambda n: (n, 0, 0, 0, 0)),
            _full(pp["w1"]), _full(pp["b1"]), _full(pp["w2"]), _full(pp["b2"]),
            _full(pp["wcc"]), _full(pp["wdw"]), _full(pp["wfc1"]),
            _full(pp["wdwf"]), _full(pp["wfc2"]), _full(pp["vc"]),
            _full(pp["vh"]),
        ],
        out_specs=pl.BlockSpec((None, orows, ocols), lambda n: (n, 0, 0)),
        out_shape=jax.ShapeDtypeStruct((N, orows, ocols), F32),
        scratch_shapes=[
            pltpu.VMEM((2, 2, Hin // 2 + 1, Win // 2 + 1, Cin), F32),
            pltpu.VMEM((2, 2, H + 1, W + 1, Cmid), F32),
        ],
        compiler_params=pltpu.CompilerParams(
            dimension_semantics=("parallel",),
            vmem_limit_bytes=32 * 1024 * 1024),
    )(xr, pp["w1"], pp["b1"], pp["w2"], pp["b2"], pp["wcc"], pp["wdw"],
      pp["wfc1"], pp["wdwf"], pp["wfc2"], pp["vc"], pp["vh"])

    if lane_pack and grp > 1:   # undo the lane packing (fused into the final transpose)
        y = y.reshape(N, HW // grp, grp, C).transpose(0, 2, 1, 3).reshape(N, HW, C)
    y = y.reshape(N, H, W, C)
    return jnp.transpose(y, (0, 3, 1, 2))            # NHWC -> NCHW


# ---------------------------------------------------------------------------
# deterministic synthetic parameters + packing (BN folding, bf16 MXU weights)
# ---------------------------------------------------------------------------
def init_raw_params(key, in_ch, out_ch, expand_ratio):
    hid = int(expand_ratio * out_ch)
    mid = out_ch // 2
    keys = iter(jax.random.split(key, 80))

    def nrm(shape, s=0.1):
        return s * jax.random.normal(next(keys), shape, F32)

    def bn(c):                                 # eval-mode BatchNorm -> scale/shift
        gamma = 1.0 + 0.1 * jax.random.normal(next(keys), (c,), F32)
        beta = 0.1 * jax.random.normal(next(keys), (c,), F32)
        mean = 0.1 * jax.random.normal(next(keys), (c,), F32)
        var = 1.0 + 0.1 * jax.random.uniform(next(keys), (c,), F32)
        scale = gamma * jax.lax.rsqrt(var + 1e-5)
        shift = beta - mean * scale
        return scale, shift

    p = {}
    p["stem1_w4"] = nrm((3, 3, in_ch, mid)); p["stem1_b"] = nrm((mid,), 0.05)
    p["stem1_bn"] = bn(mid)
    p["stem2_w4"] = nrm((3, 3, mid, out_ch)); p["stem2_b"] = nrm((out_ch,), 0.05)
    p["stem2_bn"] = bn(out_ch)

    p["bn1"] = bn(out_ch)
    p["att_fc1_w"] = nrm((out_ch, out_ch)); p["att_fc1_b"] = nrm((out_ch,), 0.05)
    p["msca_dw5_w"] = nrm((5, 5, out_ch));   p["msca_dw5_b"] = nrm((out_ch,), 0.05)
    p["msca_17_w"] = nrm((1, 7, out_ch));    p["msca_17_b"] = nrm((out_ch,), 0.05)
    p["msca_71_w"] = nrm((7, 1, out_ch));    p["msca_71_b"] = nrm((out_ch,), 0.05)
    p["msca_111_w"] = nrm((1, 11, out_ch));  p["msca_111_b"] = nrm((out_ch,), 0.05)
    p["msca_111b_w"] = nrm((11, 1, out_ch)); p["msca_111b_b"] = nrm((out_ch,), 0.05)
    p["msca_121_w"] = nrm((1, 21, out_ch));  p["msca_121_b"] = nrm((out_ch,), 0.05)
    p["msca_211_w"] = nrm((21, 1, out_ch));  p["msca_211_b"] = nrm((out_ch,), 0.05)
    p["msca_fc_w"] = nrm((out_ch, out_ch));  p["msca_fc_b"] = nrm((out_ch,), 0.05)
    p["att_fc2_w"] = nrm((out_ch, out_ch));  p["att_fc2_b"] = nrm((out_ch,), 0.05)
    p["ls1"] = 0.01 * jnp.ones((out_ch,), F32)   # layer_scale_init_value = 0.01

    p["bn2"] = bn(out_ch)
    p["ffn_fc1_w"] = nrm((out_ch, hid)); p["ffn_fc1_b"] = nrm((hid,), 0.05)
    p["ffn_dw_w"] = nrm((3, 3, hid));    p["ffn_dw_b"] = nrm((hid,), 0.05)
    p["ffn_fc2_w"] = nrm((hid, out_ch)); p["ffn_fc2_b"] = nrm((out_ch,), 0.05)
    p["ls2"] = 0.01 * jnp.ones((out_ch,), F32)
    p["ln_gamma"] = 1.0 + 0.1 * jax.random.normal(next(keys), (out_ch,), F32)
    p["ln_beta"] = 0.1 * jax.random.normal(next(keys), (out_ch,), F32)
    return p


def _pack_stem(w4, b, bn):
    # (3, 3, cin, cout) conv + eval-BN -> (9*cin, cout) bf16 (K order = i, j, cin
    # matching the kernel's tap concatenation) and a (1, cout) f32 bias.
    scale, shift = bn
    kh, kw, cin, cout = w4.shape
    wp = (w4 * scale).reshape(kh * kw * cin, cout).astype(BF16)
    bp = (b * scale + shift).reshape(1, cout)
    return wp, bp


def pack_params(p):
    C = p["att_fc1_w"].shape[0]
    HID = p["ffn_fc1_w"].shape[1]

    pp = {}
    pp["w1"], pp["b1"] = _pack_stem(p["stem1_w4"], p["stem1_b"], p["stem1_bn"])
    pp["w2"], pp["b2"] = _pack_stem(p["stem2_w4"], p["stem2_b"], p["stem2_bn"])

    # fold eval-BN norm1 into attention fc1 and norm2 into FFN fc1
    s1, t1 = p["bn1"]
    w_fc1 = s1[:, None] * p["att_fc1_w"]
    b_fc1 = p["att_fc1_b"] + t1 @ p["att_fc1_w"]
    s2, t2 = p["bn2"]
    w_ffn1 = s2[:, None] * p["ffn_fc1_w"]
    b_ffn1 = p["ffn_fc1_b"] + t2 @ p["ffn_fc1_w"]

    pp["wcc"] = jnp.stack([w_fc1, p["msca_fc_w"], p["att_fc2_w"]]).astype(BF16)
    pp["wfc1"] = w_ffn1.astype(BF16)                                   # (C, HID)
    pp["wfc2"] = p["ffn_fc2_w"].astype(BF16)                           # (HID, C)
    pp["wdw"] = jnp.concatenate([                                      # (103, C)
        p["msca_dw5_w"].reshape(25, C),
        p["msca_17_w"].reshape(7, C), p["msca_71_w"].reshape(7, C),
        p["msca_111_w"].reshape(11, C), p["msca_111b_w"].reshape(11, C),
        p["msca_121_w"].reshape(21, C), p["msca_211_w"].reshape(21, C),
    ], axis=0)
    pp["wdwf"] = p["ffn_dw_w"].reshape(9, HID)                         # (9, HID)
    pp["vc"] = jnp.stack([                                             # (15, C)
        b_fc1, p["msca_dw5_b"], p["msca_17_b"], p["msca_71_b"],
        p["msca_111_b"], p["msca_111b_b"], p["msca_121_b"], p["msca_211_b"],
        p["msca_fc_b"], p["att_fc2_b"], p["ls1"],
        p["ffn_fc2_b"], p["ls2"], p["ln_gamma"], p["ln_beta"],
    ], axis=0)
    pp["vh"] = jnp.stack([b_ffn1, p["ffn_dw_b"]], axis=0)              # (2, HID)
    return pp


if __name__ == "__main__":
    key = jax.random.PRNGKey(0)
    k_x, k_p = jax.random.split(key)

    # Stage(stage_id=0, in_channels=4, out_channels=16, expand_ratio=2, blocks_num=1)
    N, Cin, Hin, Win = 2, 4, 16, 16
    Cout, expand = 16, 2.0

    x = jax.random.normal(k_x, (N, Cin, Hin, Win), F32)   # NCHW, like PyTorch
    raw = init_raw_params(k_p, Cin, Cout, expand)
    params = pack_params(raw)

    fwd = jax.jit(functools.partial(stage_forward, pp=params))
    out = fwd(x)
    jax.block_until_ready(out)
    assert out.shape == (N, Cout, Hin // 4, Win // 4), out.shape
    assert bool(jnp.all(jnp.isfinite(out)))
    print("KERNEL_OK")
</pallas_src>

<mosaic_0001>
module attributes {stable_mosaic.version = 11 : i64} {
  func.func @_stage_kernel(%arg0: i32, %arg1: memref<1x8x2x8x8xf32, #tpu.memory_space<vmem>>, %arg2: memref<36x8xbf16, #tpu.memory_space<vmem>>, %arg3: memref<1x8xf32, #tpu.memory_space<vmem>>, %arg4: memref<72x16xbf16, #tpu.memory_space<vmem>>, %arg5: memref<1x16xf32, #tpu.memory_space<vmem>>, %arg6: memref<3x16x16xbf16, #tpu.memory_space<vmem>>, %arg7: memref<103x16xf32, #tpu.memory_space<vmem>>, %arg8: memref<16x32xbf16, #tpu.memory_space<vmem>>, %arg9: memref<9x32xf32, #tpu.memory_space<vmem>>, %arg10: memref<32x16xbf16, #tpu.memory_space<vmem>>, %arg11: memref<15x16xf32, #tpu.memory_space<vmem>>, %arg12: memref<2x32xf32, #tpu.memory_space<vmem>>, %arg13: memref<1x2x128xf32, #tpu.memory_space<vmem>>, %arg14: memref<2x2x9x9x4xf32, #tpu.memory_space<vmem>>, %arg15: memref<2x2x5x5x8xf32, #tpu.memory_space<vmem>>) attributes {dimension_semantics = [#tpu.dimension_semantics<parallel>], iteration_bounds = array<i64: 2>, scalar_prefetch = 0 : i64, scratch_operands = 2 : i64, tpu.core_type = #tpu.core_type<tc>, window_params = [{transform_indices = @transform_0, window_bounds = array<i64: 1, 8, 2, 8, 8>}, {pipeline_mode = #tpu.pipeline_mode<synchronous>, transform_indices = @transform_1, window_bounds = array<i64: 36, 8>}, {pipeline_mode = #tpu.pipeline_mode<synchronous>, transform_indices = @transform_2, window_bounds = array<i64: 1, 8>}, {pipeline_mode = #tpu.pipeline_mode<synchronous>, transform_indices = @transform_3, window_bounds = array<i64: 72, 16>}, {pipeline_mode = #tpu.pipeline_mode<synchronous>, transform_indices = @transform_4, window_bounds = array<i64: 1, 16>}, {pipeline_mode = #tpu.pipeline_mode<synchronous>, transform_indices = @transform_5, window_bounds = array<i64: 3, 16, 16>}, {pipeline_mode = #tpu.pipeline_mode<synchronous>, transform_indices = @transform_6, window_bounds = array<i64: 103, 16>}, {pipeline_mode = #tpu.pipeline_mode<synchronous>, transform_indices = @transform_7, window_bounds = array<i64: 16, 32>}, {pipeline_mode = #tpu.pipeline_mode<synchronous>, transform_indices = @transform_8, window_bounds = array<i64: 9, 32>}, {pipeline_mode = #tpu.pipeline_mode<synchronous>, transform_indices = @transform_9, window_bounds = array<i64: 32, 16>}, {pipeline_mode = #tpu.pipeline_mode<synchronous>, transform_indices = @transform_10, window_bounds = array<i64: 15, 16>}, {pipeline_mode = #tpu.pipeline_mode<synchronous>, transform_indices = @transform_11, window_bounds = array<i64: 2, 32>}, {transform_indices = @transform_12, window_bounds = array<i64: 1, 2, 128>}]} {
    %c0 = arith.constant 0 : index
    %c0_0 = arith.constant 0 : index
    %c0_1 = arith.constant 0 : index
    %c0_2 = arith.constant 0 : index
    %c0_3 = arith.constant 0 : index
    %0 = vector.load %arg1[%c0, %c0_0, %c0_1, %c0_2, %c0_3] : memref<1x8x2x8x8xf32, #tpu.memory_space<vmem>>, vector<1x8x2x8x8xf32>
    %1 = vector.shape_cast %0 : vector<1x8x2x8x8xf32> to vector<8x2x8x8xf32>
    %2 = vector.extract_strided_slice %1 {offsets = [0, 0, 0, 0], sizes = [8, 1, 8, 4], strides = [1, 1, 1, 1]} : vector<8x2x8x8xf32> to vector<8x1x8x4xf32>
    %3 = vector.shape_cast %2 : vector<8x1x8x4xf32> to vector<8x8x4xf32>
    %4 = vector.extract_strided_slice %1 {offsets = [0, 0, 0, 4], sizes = [8, 1, 8, 4], strides = [1, 1, 1, 1]} : vector<8x2x8x8xf32> to vector<8x1x8x4xf32>
    %5 = vector.shape_cast %4 : vector<8x1x8x4xf32> to vector<8x8x4xf32>
    %6 = vector.extract_strided_slice %1 {offsets = [0, 1, 0, 0], sizes = [8, 1, 8, 4], strides = [1, 1, 1, 1]} : vector<8x2x8x8xf32> to vector<8x1x8x4xf32>
    %7 = vector.shape_cast %6 : vector<8x1x8x4xf32> to vector<8x8x4xf32>
    %8 = vector.extract_strided_slice %1 {offsets = [0, 1, 0, 4], sizes = [8, 1, 8, 4], strides = [1, 1, 1, 1]} : vector<8x2x8x8xf32> to vector<8x1x8x4xf32>
    %9 = vector.shape_cast %8 : vector<8x1x8x4xf32> to vector<8x8x4xf32>
    %cst = arith.constant 0.000000e+00 : f32
    %10 = vector.broadcast %cst : f32 to vector<2x2x1x9x4xf32>
    %c0_4 = arith.constant 0 : index
    %c0_5 = arith.constant 0 : index
    %c0_6 = arith.constant 0 : index
    %c0_7 = arith.constant 0 : index
    %c0_8 = arith.constant 0 : index
    %11 = vector.load %arg14[%c0_4, %c0_5, %c0_6, %c0_7, %c0_8] : memref<2x2x9x9x4xf32, #tpu.memory_space<vmem>>, vector<2x2x1x9x4xf32>
    tpu.vector_store %arg14[%c0_4, %c0_5, %c0_6, %c0_7, %c0_8], %10 {strides = array<i32>} : memref<2x2x9x9x4xf32, #tpu.memory_space<vmem>>, vector<2x2x1x9x4xf32>,
    %cst_9 = arith.constant 0.000000e+00 : f32
    %12 = vector.broadcast %cst_9 : f32 to vector<2x2x9x1x4xf32>
    %c0_10 = arith.constant 0 : index
    %c0_11 = arith.constant 0 : index
    %c0_12 = arith.constant 0 : index
    %c0_13 = arith.constant 0 : index
    %c0_14 = arith.constant 0 : index
    %13 = vector.load %arg14[%c0_10, %c0_11, %c0_12, %c0_13, %c0_14] : memref<2x2x9x9x4xf32, #tpu.memory_space<vmem>>, vector<2x2x9x1x4xf32>
    tpu.vector_store %arg14[%c0_10, %c0_11, %c0_12, %c0_13, %c0_14], %12 {strides = array<i32>} : memref<2x2x9x9x4xf32, #tpu.memory_space<vmem>>, vector<2x2x9x1x4xf32>,
    %c0_15 = arith.constant 0 : index
    %c0_16 = arith.constant 0 : index
    %c1 = arith.constant 1 : index
    %c1_17 = arith.constant 1 : index
    %c0_18 = arith.constant 0 : index
    %14 = vector.load %arg14[%c0_15, %c0_16, %c1, %c1_17, %c0_18] : memref<2x2x9x9x4xf32, #tpu.memory_space<vmem>>, vector<1x1x8x8x4xf32>
    %15 = vector.shape_cast %14 : vector<1x1x8x8x4xf32> to vector<8x8x4xf32>
    %16 = vector.shape_cast %3 : vector<8x8x4xf32> to vector<1x1x8x8x4xf32>
    tpu.vector_store %arg14[%c0_15, %c0_16, %c1, %c1_17, %c0_18], %16 {strides = array<i32>} : memref<2x2x9x9x4xf32, #tpu.memory_space<vmem>>, vector<1x1x8x8x4xf32>,
    %c0_19 = arith.constant 0 : index
    %c1_20 = arith.constant 1 : index
    %c1_21 = arith.constant 1 : index
    %c1_22 = arith.constant 1 : index
    %c0_23 = arith.constant 0 : index
    %17 = vector.load %arg14[%c0_19, %c1_20, %c1_21, %c1_22, %c0_23] : memref<2x2x9x9x4xf32, #tpu.memory_space<vmem>>, vector<1x1x8x8x4xf32>
    %18 = vector.shape_cast %17 : vector<1x1x8x8x4xf32> to vector<8x8x4xf32>
    %19 = vector.shape_cast %5 : vector<8x8x4xf32> to vector<1x1x8x8x4xf32>
    tpu.vector_store %arg14[%c0_19, %c1_20, %c1_21, %c1_22, %c0_23], %19 {strides = array<i32>} : memref<2x2x9x9x4xf32, #tpu.memory_space<vmem>>, vector<1x1x8x8x4xf32>,
    %c1_24 = arith.constant 1 : index
    %c0_25 = arith.constant 0 : index
    %c1_26 = arith.constant 1 : index
    %c1_27 = arith.constant 1 : index
    %c0_28 = arith.constant 0 : index
    %20 = vector.load %arg14[%c1_24, %c0_25, %c1_26, %c1_27, %c0_28] : memref<2x2x9x9x4xf32, #tpu.memory_space<vmem>>, vector<1x1x8x8x4xf32>
    %21 = vector.shape_cast %20 : vector<1x1x8x8x4xf32> to vector<8x8x4xf32>
    %22 = vector.shape_cast %7 : vector<8x8x4xf32> to vector<1x1x8x8x4xf32>
    tpu.vector_store %arg14[%c1_24, %c0_25, %c1_26, %c1_27, %c0_28], %22 {strides = array<i32>} : memref<2x2x9x9x4xf32, #tpu.memory_space<vmem>>, vector<1x1x8x8x4xf32>,
    %c1_29 = arith.constant 1 : index
    %c1_30 = arith.constant 1 : index
    %c1_31 = arith.constant 1 : index
    %c1_32 = arith.constant 1 : index
    %c0_33 = arith.constant 0 : index
    %23 = vector.load %arg14[%c1_29, %c1_30, %c1_31, %c1_32, %c0_33] : memref<2x2x9x9x4xf32, #tpu.memory_space<vmem>>, vector<1x1x8x8x4xf32>
    %24 = vector.shape_cast %23 : vector<1x1x8x8x4xf32> to vector<8x8x4xf32>
    %25 = vector.shape_cast %9 : vector<8x8x4xf32> to vector<1x1x8x8x4xf32>
    tpu.vector_store %arg14[%c1_29, %c1_30, %c1_31, %c1_32, %c0_33], %25 {strides = array<i32>} : memref<2x2x9x9x4xf32, #tpu.memory_space<vmem>>, vector<1x1x8x8x4xf32>,
    %c1_34 = arith.constant 1 : index
    %c1_35 = arith.constant 1 : index
    %c0_36 = arith.constant 0 : index
    %c0_37 = arith.constant 0 : index
    %c0_38 = arith.constant 0 : index
    %26 = vector.load %arg14[%c1_34, %c1_35, %c0_36, %c0_37, %c0_38] : memref<2x2x9x9x4xf32, #tpu.memory_space<vmem>>, vector<1x1x8x8x4xf32>
    %27 = vector.shape_cast %26 : vector<1x1x8x8x4xf32> to vector<8x8x4xf32>
    %c1_39 = arith.constant 1 : index
    %c0_40 = arith.constant 0 : index
    %c0_41 = arith.constant 0 : index
    %c1_42 = arith.constant 1 : index
    %c0_43 = arith.constant 0 : index
    %28 = vector.load %arg14[%c1_39, %c0_40, %c0_41, %c1_42, %c0_43] : memref<2x2x9x9x4xf32, #tpu.memory_space<vmem>>, vector<1x1x8x8x4xf32>
    %29 = vector.shape_cast %28 : vector<1x1x8x8x4xf32> to vector<8x8x4xf32>
    %c1_44 = arith.constant 1 : index
    %c1_45 = arith.constant 1 : index
    %c0_46 = arith.constant 0 : index
    %c1_47 = arith.constant 1 : index
    %c0_48 = arith.constant 0 : index
    %30 = vector.load %arg14[%c1_44, %c1_45, %c0_46, %c1_47, %c0_48] : memref<2x2x9x9x4xf32, #tpu.memory_space<vmem>>, vector<1x1x8x8x4xf32>
    %31 = vector.shape_cast %30 : vector<1x1x8x8x4xf32> to vector<8x8x4xf32>
    %c0_49 = arith.constant 0 : index
    %c1_50 = arith.constant 1 : index
    %c1_51 = arith.constant 1 : index
    %c0_52 = arith.constant 0 : index
    %c0_53 = arith.constant 0 : index
    %32 = vector.load %arg14[%c0_49, %c1_50, %c1_51, %c0_52, %c0_53] : memref<2x2x9x9x4xf32, #tpu.memory_space<vmem>>, vector<1x1x8x8x4xf32>
    %33 = vector.shape_cast %32 : vector<1x1x8x8x4xf32> to vector<8x8x4xf32>
    %c0_54 = arith.constant 0 : index
    %c0_55 = arith.constant 0 : index
    %c1_56 = arith.constant 1 : index
    %c1_57 = arith.constant 1 : index
    %c0_58 = arith.constant 0 : index
    %34 = vector.load %arg14[%c0_54, %c0_55, %c1_56, %c1_57, %c0_58] : memref<2x2x9x9x4xf32, #tpu.memory_space<vmem>>, vector<1x1x8x8x4xf32>
    %35 = vector.shape_cast %34 : vector<1x1x8x8x4xf32> to vector<8x8x4xf32>
    %c0_59 = arith.constant 0 : index
    %c1_60 = arith.constant 1 : index
    %c1_61 = arith.constant 1 : index
    %c1_62 = arith.constant 1 : index
    %c0_63 = arith.constant 0 : index
    %36 = vector.load %arg14[%c0_59, %c1_60, %c1_61, %c1_62, %c0_63] : memref<2x2x9x9x4xf32, #tpu.memory_space<vmem>>, vector<1x1x8x8x4xf32>
    %37 = vector.shape_cast %36 : vector<1x1x8x8x4xf32> to vector<8x8x4xf32>
    %c1_64 = arith.constant 1 : index
    %c1_65 = arith.constant 1 : index
    %c1_66 = arith.constant 1 : index
    %c0_67 = arith.constant 0 : index
    %c0_68 = arith.constant 0 : index
    %38 = vector.load %arg14[%c1_64, %c1_65, %c1_66, %c0_67, %c0_68] : memref<2x2x9x9x4xf32, #tpu.memory_space<vmem>>, vector<1x1x8x8x4xf32>
    %39 = vector.shape_cast %38 : vector<1x1x8x8x4xf32> to vector<8x8x4xf32>
    %c1_69 = arith.constant 1 : index
    %c0_70 = arith.constant 0 : index
    %c1_71 = arith.constant 1 : index
    %c1_72 = arith.constant 1 : index
    %c0_73 = arith.constant 0 : index
    %40 = vector.load %arg14[%c1_69, %c0_70, %c1_71, %c1_72, %c0_73] : memref<2x2x9x9x4xf32, #tpu.memory_space<vmem>>, vector<1x1x8x8x4xf32>
    %41 = vector.shape_cast %40 : vector<1x1x8x8x4xf32> to vector<8x8x4xf32>
    %c1_74 = arith.constant 1 : index
    %c1_75 = arith.constant 1 : index
    %c1_76 = arith.constant 1 : index
    %c1_77 = arith.constant 1 : index
    %c0_78 = arith.constant 0 : index
    %42 = vector.load %arg14[%c1_74, %c1_75, %c1_76, %c1_77, %c0_78] : memref<2x2x9x9x4xf32, #tpu.memory_space<vmem>>, vector<1x1x8x8x4xf32>
    %43 = vector.shape_cast %42 : vector<1x1x8x8x4xf32> to vector<8x8x4xf32>
    %44 = tpu.concatenate %27, %29, %31, %33, %35, %37, %39, %41, %43 in 2 : vector<8x8x4xf32>, vector<8x8x4xf32>, vector<8x8x4xf32>, vector<8x8x4xf32>, vector<8x8x4xf32>, vector<8x8x4xf32>, vector<8x8x4xf32>, vector<8x8x4xf32>, vector<8x8x4xf32> -> vector<8x8x36xf32>
    %45 = vector.shape_cast %44 : vector<8x8x36xf32> to vector<64x36xf32>
    %46 = arith.truncf %45 : vector<64x36xf32> to vector<64x36xbf16>
    %c0_79 = arith.constant 0 : index
    %c0_80 = arith.constant 0 : index
    %47 = vector.load %arg2[%c0_79, %c0_80] : memref<36x8xbf16, #tpu.memory_space<vmem>>, vector<36x8xbf16>
    %cst_81 = arith.constant dense<0.000000e+00> : vector<64x8xf32>
    %48 = tpu.matmul %46, %47, %cst_81 {dimension_numbers = #tpu.dot_dimension_numbers<[1], [0], [0], [1], [0, 0, 1, 1], [], []>} : vector<64x36xbf16>, vector<36x8xbf16>, vector<64x8xf32> -> vector<64x8xf32>
    %c0_82 = arith.constant 0 : index
    %c0_83 = arith.constant 0 : index
    %49 = vector.load %arg3[%c0_82, %c0_83] : memref<1x8xf32, #tpu.memory_space<vmem>>, vector<1x8xf32>
    %50 = vector.broadcast %49 : vector<1x8xf32> to vector<64x8xf32>
    %51 = arith.addf %48, %50 : vector<64x8xf32>
    %52 = vector.shape_cast %51 : vector<64x8xf32> to vector<4x2x4x2x8xf32>
    %53 = vector.extract_strided_slice %52 {offsets = [0, 0, 0, 0, 0], sizes = [4, 1, 4, 1, 8], strides = [1, 1, 1, 1, 1]} : vector<4x2x4x2x8xf32> to vector<4x1x4x1x8xf32>
    %54 = vector.shape_cast %53 : vector<4x1x4x1x8xf32> to vector<4x4x8xf32>
    %55 = vector.extract_strided_slice %52 {offsets = [0, 0, 0, 1, 0], sizes = [4, 1, 4, 1, 8], strides = [1, 1, 1, 1, 1]} : vector<4x2x4x2x8xf32> to vector<4x1x4x1x8xf32>
    %56 = vector.shape_cast %55 : vector<4x1x4x1x8xf32> to vector<4x4x8xf32>
    %57 = vector.extract_strided_slice %52 {offsets = [0, 1, 0, 0, 0], sizes = [4, 1, 4, 1, 8], strides = [1, 1, 1, 1, 1]} : vector<4x2x4x2x8xf32> to vector<4x1x4x1x8xf32>
    %58 = vector.shape_cast %57 : vector<4x1x4x1x8xf32> to vector<4x4x8xf32>
    %59 = vector.extract_strided_slice %52 {offsets = [0, 1, 0, 1, 0], sizes = [4, 1, 4, 1, 8], strides = [1, 1, 1, 1, 1]} : vector<4x2x4x2x8xf32> to vector<4x1x4x1x8xf32>
    %60 = vector.shape_cast %59 : vector<4x1x4x1x8xf32> to vector<4x4x8xf32>
    %cst_84 = arith.constant 0.000000e+00 : f32
    %61 = vector.broadcast %cst_84 : f32 to vector<2x2x1x5x8xf32>
    %c0_85 = arith.constant 0 : index
    %c0_86 = arith.constant 0 : index
    %c0_87 = arith.constant 0 : index
    %c0_88 = arith.constant 0 : index
    %c0_89 = arith.constant 0 : index
    %62 = vector.load %arg15[%c0_85, %c0_86, %c0_87, %c0_88, %c0_89] : memref<2x2x5x5x8xf32, #tpu.memory_space<vmem>>, vector<2x2x1x5x8xf32>
    tpu.vector_store %arg15[%c0_85, %c0_86, %c0_87, %c0_88, %c0_89], %61 {strides = array<i32>} : memref<2x2x5x5x8xf32, #tpu.memory_space<vmem>>, vector<2x2x1x5x8xf32>,
    %cst_90 = arith.constant 0.000000e+00 : f32
    %63 = vector.broadcast %cst_90 : f32 to vector<2x2x5x1x8xf32>
    %c0_91 = arith.constant 0 : index
    %c0_92 = arith.constant 0 : index
    %c0_93 = arith.constant 0 : index
    %c0_94 = arith.constant 0 : index
    %c0_95 = arith.constant 0 : index
    %64 = vector.load %arg15[%c0_91, %c0_92, %c0_93, %c0_94, %c0_95] : memref<2x2x5x5x8xf32, #tpu.memory_space<vmem>>, vector<2x2x5x1x8xf32>
    tpu.vector_store %arg15[%c0_91, %c0_92, %c0_93, %c0_94, %c0_95], %63 {strides = array<i32>} : memref<2x2x5x5x8xf32, #tpu.memory_space<vmem>>, vector<2x2x5x1x8xf32>,
    %c0_96 = arith.constant 0 : index
    %c0_97 = arith.constant 0 : index
    %c1_98 = arith.constant 1 : index
    %c1_99 = arith.constant 1 : index
    %c0_100 = arith.constant 0 : index
    %65 = vector.load %arg15[%c0_96, %c0_97, %c1_98, %c1_99, %c0_100] : memref<2x2x5x5x8xf32, #tpu.memory_space<vmem>>, vector<1x1x4x4x8xf32>
    %66 = vector.shape_cast %65 : vector<1x1x4x4x8xf32> to vector<4x4x8xf32>
    %67 = vector.shape_cast %54 : vector<4x4x8xf32> to vector<1x1x4x4x8xf32>
    tpu.vector_store %arg15[%c0_96, %c0_97, %c1_98, %c1_99, %c0_100], %67 {strides = array<i32>} : memref<2x2x5x5x8xf32, #tpu.memory_space<vmem>>, vector<1x1x4x4x8xf32>,
    %c0_101 = arith.constant 0 : index
    %c1_102 = arith.constant 1 : index
    %c1_103 = arith.constant 1 : index
    %c1_104 = arith.constant 1 : index
    %c0_105 = arith.constant 0 : index
    %68 = vector.load %arg15[%c0_101, %c1_102, %c1_103, %c1_104, %c0_105] : memref<2x2x5x5x8xf32, #tpu.memory_space<vmem>>, vector<1x1x4x4x8xf32>
    %69 = vector.shape_cast %68 : vector<1x1x4x4x8xf32> to vector<4x4x8xf32>
    %70 = vector.shape_cast %56 : vector<4x4x8xf32> to vector<1x1x4x4x8xf32>
    tpu.vector_store %arg15[%c0_101, %c1_102, %c1_103, %c1_104, %c0_105], %70 {strides = array<i32>} : memref<2x2x5x5x8xf32, #tpu.memory_space<vmem>>, vector<1x1x4x4x8xf32>,
    %c1_106 = arith.constant 1 : index
    %c0_107 = arith.constant 0 : index
    %c1_108 = arith.constant 1 : index
    %c1_109 = arith.constant 1 : index
    %c0_110 = arith.constant 0 : index
    %71 = vector.load %arg15[%c1_106, %c0_107, %c1_108, %c1_109, %c0_110] : memref<2x2x5x5x8xf32, #tpu.memory_space<vmem>>, vector<1x1x4x4x8xf32>
    %72 = vector.shape_cast %71 : vector<1x1x4x4x8xf32> to vector<4x4x8xf32>
    %73 = vector.shape_cast %58 : vector<4x4x8xf32> to vector<1x1x4x4x8xf32>
    tpu.vector_store %arg15[%c1_106, %c0_107, %c1_108, %c1_109, %c0_110], %73 {strides = array<i32>} : memref<2x2x5x5x8xf32, #tpu.memory_space<vmem>>, vector<1x1x4x4x8xf32>,
    %c1_111 = arith.constant 1 : index
    %c1_112 = arith.constant 1 : index
    %c1_113 = arith.constant 1 : index
    %c1_114 = arith.constant 1 : index
    %c0_115 = arith.constant 0 : index
    %74 = vector.load %arg15[%c1_111, %c1_112, %c1_113, %c1_114, %c0_115] : memref<2x2x5x5x8xf32, #tpu.memory_space<vmem>>, vector<1x1x4x4x8xf32>
    %75 = vector.shape_cast %74 : vector<1x1x4x4x8xf32> to vector<4x4x8xf32>
    %76 = vector.shape_cast %60 : vector<4x4x8xf32> to vector<1x1x4x4x8xf32>
    tpu.vector_store %arg15[%c1_111, %c1_112, %c1_113, %c1_114, %c0_115], %76 {strides = array<i32>} : memref<2x2x5x5x8xf32, #tpu.memory_space<vmem>>, vector<1x1x4x4x8xf32>,
    %c1_116 = arith.constant 1 : index
    %c1_117 = arith.constant 1 : index
    %c0_118 = arith.constant 0 : index
    %c0_119 = arith.constant 0 : index
    %c0_120 = arith.constant 0 : index
    %77 = vector.load %arg15[%c1_116, %c1_117, %c0_118, %c0_119, %c0_120] : memref<2x2x5x5x8xf32, #tpu.memory_space<vmem>>, vector<1x1x4x4x8xf32>
    %78 = vector.shape_cast %77 : vector<1x1x4x4x8xf32> to vector<4x4x8xf32>
    %c1_121 = arith.constant 1 : index
    %c0_122 = arith.constant 0 : index
    %c0_123 = arith.constant 0 : index
    %c1_124 = arith.constant 1 : index
    %c0_125 = arith.constant 0 : index
    %79 = vector.load %arg15[%c1_121, %c0_122, %c0_123, %c1_124, %c0_125] : memref<2x2x5x5x8xf32, #tpu.memory_space<vmem>>, vector<1x1x4x4x8xf32>
    %80 = vector.shape_cast %79 : vector<1x1x4x4x8xf32> to vector<4x4x8xf32>
    %c1_126 = arith.constant 1 : index
    %c1_127 = arith.constant 1 : index
    %c0_128 = arith.constant 0 : index
    %c1_129 = arith.constant 1 : index
    %c0_130 = arith.constant 0 : index
    %81 = vector.load %arg15[%c1_126, %c1_127, %c0_128, %c1_129, %c0_130] : memref<2x2x5x5x8xf32, #tpu.memory_space<vmem>>, vector<1x1x4x4x8xf32>
    %82 = vector.shape_cast %81 : vector<1x1x4x4x8xf32> to vector<4x4x8xf32>
    %c0_131 = arith.constant 0 : index
    %c1_132 = arith.constant 1 : index
    %c1_133 = arith.constant 1 : index
    %c0_134 = arith.constant 0 : index
    %c0_135 = arith.constant 0 : index
    %83 = vector.load %arg15[%c0_131, %c1_132, %c1_133, %c0_134, %c0_135] : memref<2x2x5x5x8xf32, #tpu.memory_space<vmem>>, vector<1x1x4x4x8xf32>
    %84 = vector.shape_cast %83 : vector<1x1x4x4x8xf32> to vector<4x4x8xf32>
    %c0_136 = arith.constant 0 : index
    %c0_137 = arith.constant 0 : index
    %c1_138 = arith.constant 1 : index
    %c1_139 = arith.constant 1 : index
    %c0_140 = arith.constant 0 : index
    %85 = vector.load %arg15[%c0_136, %c0_137, %c1_138, %c1_139, %c0_140] : memref<2x2x5x5x8xf32, #tpu.memory_space<vmem>>, vector<1x1x4x4x8xf32>
    %86 = vector.shape_cast %85 : vector<1x1x4x4x8xf32> to vector<4x4x8xf32>
    %c0_141 = arith.constant 0 : index
    %c1_142 = arith.constant 1 : index
    %c1_143 = arith.constant 1 : index
    %c1_144 = arith.constant 1 : index
    %c0_145 = arith.constant 0 : index
    %87 = vector.load %arg15[%c0_141, %c1_142, %c1_143, %c1_144, %c0_145] : memref<2x2x5x5x8xf32, #tpu.memory_space<vmem>>, vector<1x1x4x4x8xf32>
    %88 = vector.shape_cast %87 : vector<1x1x4x4x8xf32> to vector<4x4x8xf32>
    %c1_146 = arith.constant 1 : index
    %c1_147 = arith.constant 1 : index
    %c1_148 = arith.constant 1 : index
    %c0_149 = arith.constant 0 : index
    %c0_150 = arith.constant 0 : index
    %89 = vector.load %arg15[%c1_146, %c1_147, %c1_148, %c0_149, %c0_150] : memref<2x2x5x5x8xf32, #tpu.memory_space<vmem>>, vector<1x1x4x4x8xf32>
    %90 = vector.shape_cast %89 : vector<1x1x4x4x8xf32> to vector<4x4x8xf32>
    %c1_151 = arith.constant 1 : index
    %c0_152 = arith.constant 0 : index
    %c1_153 = arith.constant 1 : index
    %c1_154 = arith.constant 1 : index
    %c0_155 = arith.constant 0 : index
    %91 = vector.load %arg15[%c1_151, %c0_152, %c1_153, %c1_154, %c0_155] : memref<2x2x5x5x8xf32, #tpu.memory_space<vmem>>, vector<1x1x4x4x8xf32>
    %92 = vector.shape_cast %91 : vector<1x1x4x4x8xf32> to vector<4x4x8xf32>
    %c1_156 = arith.constant 1 : index
    %c1_157 = arith.constant 1 : index
    %c1_158 = arith.constant 1 : index
    %c1_159 = arith.constant 1 : index
    %c0_160 = arith.constant 0 : index
    %93 = vector.load %arg15[%c1_156, %c1_157, %c1_158, %c1_159, %c0_160] : memref<2x2x5x5x8xf32, #tpu.memory_space<vmem>>, vector<1x1x4x4x8xf32>
    %94 = vector.shape_cast %93 : vector<1x1x4x4x8xf32> to vector<4x4x8xf32>
    %95 = tpu.concatenate %78, %80, %82, %84, %86, %88, %90, %92, %94 in 2 : vector<4x4x8xf32>, vector<4x4x8xf32>, vector<4x4x8xf32>, vector<4x4x8xf32>, vector<4x4x8xf32>, vector<4x4x8xf32>, vector<4x4x8xf32>, vector<4x4x8xf32>, vector<4x4x8xf32> -> vector<4x4x72xf32>
    %96 = vector.shape_cast %95 : vector<4x4x72xf32> to vector<16x72xf32>
    %97 = arith.truncf %96 : vector<16x72xf32> to vector<16x72xbf16>
    %c0_161 = arith.constant 0 : index
    %c0_162 = arith.constant 0 : index
    %98 = vector.load %arg4[%c0_161, %c0_162] : memref<72x16xbf16, #tpu.memory_space<vmem>>, vector<72x16xbf16>
    %cst_163 = arith.constant dense<0.000000e+00> : vector<16x16xf32>
    %99 = tpu.matmul %97, %98, %cst_163 {dimension_numbers = #tpu.dot_dimension_numbers<[1], [0], [0], [1], [0, 0, 1, 1], [], []>} : vector<16x72xbf16>, vector<72x16xbf16>, vector<16x16xf32> -> vector<16x16xf32>
    %c0_164 = arith.constant 0 : index
    %c0_165 = arith.constant 0 : index
    %100 = vector.load %arg5[%c0_164, %c0_165] : memref<1x16xf32, #tpu.memory_space<vmem>>, vector<1x16xf32>
    %101 = vector.broadcast %100 : vector<1x16xf32> to vector<16x16xf32>
    %102 = arith.addf %99, %101 : vector<16x16xf32>
    %c0_166 = arith.constant 0 : index
    %c0_167 = arith.constant 0 : index
    %103 = vector.load %arg7[%c0_166, %c0_167] : memref<103x16xf32, #tpu.memory_space<vmem>>, vector<103x16xf32>
    %c0_168 = arith.constant 0 : index
    %c0_169 = arith.constant 0 : index
    %104 = vector.load %arg9[%c0_168, %c0_169] : memref<9x32xf32, #tpu.memory_space<vmem>>, vector<9x32xf32>
    %c0_170 = arith.constant 0 : index
    %c0_171 = arith.constant 0 : index
    %105 = vector.load %arg11[%c0_170, %c0_171] : memref<15x16xf32, #tpu.memory_space<vmem>>, vector<15x16xf32>
    %c0_172 = arith.constant 0 : index
    %c0_173 = arith.constant 0 : index
    %106 = vector.load %arg12[%c0_172, %c0_173] : memref<2x32xf32, #tpu.memory_space<vmem>>, vector<2x32xf32>
    %c0_174 = arith.constant 0 : index
    %c0_175 = arith.constant 0 : index
    %c0_176 = arith.constant 0 : index
    %107 = vector.load %arg6[%c0_174, %c0_175, %c0_176] : memref<3x16x16xbf16, #tpu.memory_space<vmem>>, vector<1x16x16xbf16>
    %108 = vector.shape_cast %107 : vector<1x16x16xbf16> to vector<16x16xbf16>
    %109 = arith.truncf %102 : vector<16x16xf32> to vector<16x16xbf16>
    %cst_177 = arith.constant dense<0.000000e+00> : vector<16x16xf32>
    %110 = tpu.matmul %109, %108, %cst_177 {dimension_numbers = #tpu.dot_dimension_numbers<[1], [0], [0], [1], [0, 0, 1, 1], [], []>} : vector<16x16xbf16>, vector<16x16xbf16>, vector<16x16xf32> -> vector<16x16xf32>
    %111 = vector.extract_strided_slice %105 {offsets = [0, 0], sizes = [1, 16], strides = [1, 1]} : vector<15x16xf32> to vector<1x16xf32>
    %112 = vector.shape_cast %111 : vector<1x16xf32> to vector<16xf32>
    %113 = vector.shape_cast %112 : vector<16xf32> to vector<1x16xf32>
    %114 = vector.broadcast %113 : vector<1x16xf32> to vector<16x16xf32>
    %115 = arith.addf %110, %114 : vector<16x16xf32>
    %cst_178 = arith.constant 5.000000e-01 : f32
    %116 = vector.broadcast %cst_178 : f32 to vector<16x16xf32>
    %117 = arith.mulf %116, %115 : vector<16x16xf32>
    %cst_179 = arith.constant 0.707106769 : f32
    %118 = vector.broadcast %cst_179 : f32 to vector<16x16xf32>
    %119 = arith.mulf %115, %118 : vector<16x16xf32>
    %120 = math.absf %119 : vector<16x16xf32>
    %cst_180 = arith.constant 0.327591091 : f32
    %121 = vector.broadcast %cst_180 : f32 to vector<16x16xf32>
    %122 = arith.mulf %121, %120 : vector<16x16xf32>
    %cst_181 = arith.constant 1.000000e+00 : f32
    %123 = vector.broadcast %cst_181 : f32 to vector<16x16xf32>
    %124 = arith.addf %123, %122 : vector<16x16xf32>
    %cst_182 = arith.constant 1.000000e+00 : f32
    %125 = vector.broadcast %cst_182 : f32 to vector<16x16xf32>
    %126 = arith.divf %125, %124 : vector<16x16xf32>
    %cst_183 = arith.constant 1.06140542 : f32
    %127 = vector.broadcast %cst_183 : f32 to vector<16x16xf32>
    %128 = arith.mulf %126, %127 : vector<16x16xf32>
    %cst_184 = arith.constant -1.45315206 : f32
    %129 = vector.broadcast %cst_184 : f32 to vector<16x16xf32>
    %130 = arith.addf %129, %128 : vector<16x16xf32>
    %131 = arith.mulf %126, %130 : vector<16x16xf32>
    %cst_185 = arith.constant 1.42141378 : f32
    %132 = vector.broadcast %cst_185 : f32 to vector<16x16xf32>
    %133 = arith.addf %132, %131 : vector<16x16xf32>
    %134 = arith.mulf %126, %133 : vector<16x16xf32>
    %cst_186 = arith.constant -0.284496725 : f32
    %135 = vector.broadcast %cst_186 : f32 to vector<16x16xf32>
    %136 = arith.addf %135, %134 : vector<16x16xf32>
    %137 = arith.mulf %126, %136 : vector<16x16xf32>
    %cst_187 = arith.constant 0.254829586 : f32
    %138 = vector.broadcast %cst_187 : f32 to vector<16x16xf32>
    %139 = arith.addf %138, %137 : vector<16x16xf32>
    %140 = arith.mulf %126, %139 : vector<16x16xf32>
    %cst_188 = arith.constant 0.000000e+00 : f32
    %141 = vector.broadcast %cst_188 : f32 to vector<16x16xf32>
    %142 = arith.subf %141, %120 : vector<16x16xf32>
    %143 = arith.mulf %142, %120 : vector<16x16xf32>
    %144 = math.exp %143 : vector<16x16xf32>
    %145 = arith.mulf %140, %144 : vector<16x16xf32>
    %cst_189 = arith.constant 1.000000e+00 : f32
    %146 = vector.broadcast %cst_189 : f32 to vector<16x16xf32>
    %147 = arith.subf %146, %145 : vector<16x16xf32>
    %cst_190 = arith.constant 0.000000e+00 : f32
    %148 = vector.broadcast %cst_190 : f32 to vector<16x16xf32>
    %149 = arith.cmpf oge, %119, %148 : vector<16x16xf32>
    %cst_191 = arith.constant 0.000000e+00 : f32
    %150 = vector.broadcast %cst_191 : f32 to vector<16x16xf32>
    %151 = arith.subf %150, %147 : vector<16x16xf32>
    %152 = arith.select %149, %147, %151 : vector<16x16xi1>, vector<16x16xf32>
    %cst_192 = arith.constant 1.000000e+00 : f32
    %153 = vector.broadcast %cst_192 : f32 to vector<16x16xf32>
    %154 = arith.addf %153, %152 : vector<16x16xf32>
    %155 = arith.mulf %117, %154 : vector<16x16xf32>
    %156 = vector.shape_cast %155 : vector<16x16xf32> to vector<4x4x16xf32>
    %157 = vector.extract_strided_slice %103 {offsets = [0, 0], sizes = [25, 16], strides = [1, 1]} : vector<103x16xf32> to vector<25x16xf32>
    %158 = vector.extract_strided_slice %105 {offsets = [1, 0], sizes = [1, 16], strides = [1, 1]} : vector<15x16xf32> to vector<1x16xf32>
    %159 = vector.shape_cast %158 : vector<1x16xf32> to vector<16xf32>
    %cst_193 = arith.constant 0.000000e+00 : f32
    %160 = vector.broadcast %cst_193 : f32 to vector<4x2x16xf32>
    %161 = vector.extract_strided_slice %156 {offsets = [0, 0, 0], sizes = [4, 2, 16], strides = [1, 1, 1]} : vector<4x4x16xf32> to vector<4x2x16xf32>
    %162 = tpu.concatenate %160, %161 in 1 : vector<4x2x16xf32>, vector<4x2x16xf32> -> vector<4x4x16xf32>
    %cst_194 = arith.constant 0.000000e+00 : f32
    %163 = vector.broadcast %cst_194 : f32 to vector<4x1x16xf32>
    %164 = vector.extract_strided_slice %156 {offsets = [0, 0, 0], sizes = [4, 3, 16], strides = [1, 1, 1]} : vector<4x4x16xf32> to vector<4x3x16xf32>
    %165 = tpu.concatenate %163, %164 in 1 : vector<4x1x16xf32>, vector<4x3x16xf32> -> vector<4x4x16xf32>
    %cst_195 = arith.constant 0.000000e+00 : f32
    %166 = vector.broadcast %cst_195 : f32 to vector<4x1x16xf32>
    %167 = vector.extract_strided_slice %156 {offsets = [0, 1, 0], sizes = [4, 3, 16], strides = [1, 1, 1]} : vector<4x4x16xf32> to vector<4x3x16xf32>
    %168 = tpu.concatenate %167, %166 in 1 : vector<4x3x16xf32>, vector<4x1x16xf32> -> vector<4x4x16xf32>
    %cst_196 = arith.constant 0.000000e+00 : f32
    %169 = vector.broadcast %cst_196 : f32 to vector<4x2x16xf32>
    %170 = vector.extract_strided_slice %156 {offsets = [0, 2, 0], sizes = [4, 2, 16], strides = [1, 1, 1]} : vector<4x4x16xf32> to vector<4x2x16xf32>
    %171 = tpu.concatenate %170, %169 in 1 : vector<4x2x16xf32>, vector<4x2x16xf32> -> vector<4x4x16xf32>
    %172 = vector.extract_strided_slice %157 {offsets = [0, 0], sizes = [1, 16], strides = [1, 1]} : vector<25x16xf32> to vector<1x16xf32>
    %173 = vector.shape_cast %172 : vector<1x16xf32> to vector<16xf32>
    %174 = vector.shape_cast %173 : vector<16xf32> to vector<1x1x16xf32>
    %175 = vector.broadcast %174 : vector<1x1x16xf32> to vector<4x4x16xf32>
    %176 = arith.mulf %162, %175 : vector<4x4x16xf32>
    %177 = vector.extract_strided_slice %157 {offsets = [1, 0], sizes = [1, 16], strides = [1, 1]} : vector<25x16xf32> to vector<1x16xf32>
    %178 = vector.shape_cast %177 : vector<1x16xf32> to vector<16xf32>
    %179 = vector.shape_cast %178 : vector<16xf32> to vector<1x1x16xf32>
    %180 = vector.broadcast %179 : vector<1x1x16xf32> to vector<4x4x16xf32>
    %181 = arith.mulf %165, %180 : vector<4x4x16xf32>
    %182 = arith.addf %176, %181 : vector<4x4x16xf32>
    %183 = vector.extract_strided_slice %157 {offsets = [2, 0], sizes = [1, 16], strides = [1, 1]} : vector<25x16xf32> to vector<1x16xf32>
    %184 = vector.shape_cast %183 : vector<1x16xf32> to vector<16xf32>
    %185 = vector.shape_cast %184 : vector<16xf32> to vector<1x1x16xf32>
    %186 = vector.broadcast %185 : vector<1x1x16xf32> to vector<4x4x16xf32>
    %187 = arith.mulf %156, %186 : vector<4x4x16xf32>
    %188 = arith.addf %182, %187 : vector<4x4x16xf32>
    %189 = vector.extract_strided_slice %157 {offsets = [3, 0], sizes = [1, 16], strides = [1, 1]} : vector<25x16xf32> to vector<1x16xf32>
    %190 = vector.shape_cast %189 : vector<1x16xf32> to vector<16xf32>
    %191 = vector.shape_cast %190 : vector<16xf32> to vector<1x1x16xf32>
    %192 = vector.broadcast %191 : vector<1x1x16xf32> to vector<4x4x16xf32>
    %193 = arith.mulf %168, %192 : vector<4x4x16xf32>
    %194 = arith.addf %188, %193 : vector<4x4x16xf32>
    %195 = vector.extract_strided_slice %157 {offsets = [4, 0], sizes = [1, 16], strides = [1, 1]} : vector<25x16xf32> to vector<1x16xf32>
    %196 = vector.shape_cast %195 : vector<1x16xf32> to vector<16xf32>
    %197 = vector.shape_cast %196 : vector<16xf32> to vector<1x1x16xf32>
    %198 = vector.broadcast %197 : vector<1x1x16xf32> to vector<4x4x16xf32>
    %199 = arith.mulf %171, %198 : vector<4x4x16xf32>
    %200 = arith.addf %194, %199 : vector<4x4x16xf32>
    %cst_197 = arith.constant 0.000000e+00 : f32
    %201 = vector.broadcast %cst_197 : f32 to vector<2x4x16xf32>
    %202 = vector.extract_strided_slice %200 {offsets = [0, 0, 0], sizes = [2, 4, 16], strides = [1, 1, 1]} : vector<4x4x16xf32> to vector<2x4x16xf32>
    %203 = tpu.concatenate %201, %202 in 0 : vector<2x4x16xf32>, vector<2x4x16xf32> -> vector<4x4x16xf32>
    %204 = vector.extract_strided_slice %157 {offsets = [5, 0], sizes = [1, 16], strides = [1, 1]} : vector<25x16xf32> to vector<1x16xf32>
    %205 = vector.shape_cast %204 : vector<1x16xf32> to vector<16xf32>
    %206 = vector.shape_cast %205 : vector<16xf32> to vector<1x1x16xf32>
    %207 = vector.broadcast %206 : vector<1x1x16xf32> to vector<4x4x16xf32>
    %208 = arith.mulf %162, %207 : vector<4x4x16xf32>
    %209 = vector.extract_strided_slice %157 {offsets = [6, 0], sizes = [1, 16], strides = [1, 1]} : vector<25x16xf32> to vector<1x16xf32>
    %210 = vector.shape_cast %209 : vector<1x16xf32> to vector<16xf32>
    %211 = vector.shape_cast %210 : vector<16xf32> to vector<1x1x16xf32>
    %212 = vector.broadcast %211 : vector<1x1x16xf32> to vector<4x4x16xf32>
    %213 = arith.mulf %165, %212 : vector<4x4x16xf32>
    %214 = arith.addf %208, %213 : vector<4x4x16xf32>
    %215 = vector.extract_strided_slice %157 {offsets = [7, 0], sizes = [1, 16], strides = [1, 1]} : vector<25x16xf32> to vector<1x16xf32>
    %216 = vector.shape_cast %215 : vector<1x16xf32> to vector<16xf32>
    %217 = vector.shape_cast %216 : vector<16xf32> to vector<1x1x16xf32>
    %218 = vector.broadcast %217 : vector<1x1x16xf32> to vector<4x4x16xf32>
    %219 = arith.mulf %156, %218 : vector<4x4x16xf32>
    %220 = arith.addf %214, %219 : vector<4x4x16xf32>
    %221 = vector.extract_strided_slice %157 {offsets = [8, 0], sizes = [1, 16], strides = [1, 1]} : vector<25x16xf32> to vector<1x16xf32>
    %222 = vector.shape_cast %221 : vector<1x16xf32> to vector<16xf32>
    %223 = vector.shape_cast %222 : vector<16xf32> to vector<1x1x16xf32>
    %224 = vector.broadcast %223 : vector<1x1x16xf32> to vector<4x4x16xf32>
    %225 = arith.mulf %168, %224 : vector<4x4x16xf32>
    %226 = arith.addf %220, %225 : vector<4x4x16xf32>
    %227 = vector.extract_strided_slice %157 {offsets = [9, 0], sizes = [1, 16], strides = [1, 1]} : vector<25x16xf32> to vector<1x16xf32>
    %228 = vector.shape_cast %227 : vector<1x16xf32> to vector<16xf32>
    %229 = vector.shape_cast %228 : vector<16xf32> to vector<1x1x16xf32>
    %230 = vector.broadcast %229 : vector<1x1x16xf32> to vector<4x4x16xf32>
    %231 = arith.mulf %171, %230 : vector<4x4x16xf32>
    %232 = arith.addf %226, %231 : vector<4x4x16xf32>
    %cst_198 = arith.constant 0.000000e+00 : f32
    %233 = vector.broadcast %cst_198 : f32 to vector<1x4x16xf32>
    %234 = vector.extract_strided_slice %232 {offsets = [0, 0, 0], sizes = [3, 4, 16], strides = [1, 1, 1]} : vector<4x4x16xf32> to vector<3x4x16xf32>
    %235 = tpu.concatenate %233, %234 in 0 : vector<1x4x16xf32>, vector<3x4x16xf32> -> vector<4x4x16xf32>
    %236 = arith.addf %203, %235 : vector<4x4x16xf32>
    %237 = vector.extract_strided_slice %157 {offsets = [10, 0], sizes = [1, 16], strides = [1, 1]} : vector<25x16xf32> to vector<1x16xf32>
    %238 = vector.shape_cast %237 : vector<1x16xf32> to vector<16xf32>
    %239 = vector.shape_cast %238 : vector<16xf32> to vector<1x1x16xf32>
    %240 = vector.broadcast %239 : vector<1x1x16xf32> to vector<4x4x16xf32>
    %241 = arith.mulf %162, %240 : vector<4x4x16xf32>
    %242 = vector.extract_strided_slice %157 {offsets = [11, 0], sizes = [1, 16], strides = [1, 1]} : vector<25x16xf32> to vector<1x16xf32>
    %243 = vector.shape_cast %242 : vector<1x16xf32> to vector<16xf32>
    %244 = vector.shape_cast %243 : vector<16xf32> to vector<1x1x16xf32>
    %245 = vector.broadcast %244 : vector<1x1x16xf32> to vector<4x4x16xf32>
    %246 = arith.mulf %165, %245 : vector<4x4x16xf32>
    %247 = arith.addf %241, %246 : vector<4x4x16xf32>
    %248 = vector.extract_strided_slice %157 {offsets = [12, 0], sizes = [1, 16], strides = [1, 1]} : vector<25x16xf32> to vector<1x16xf32>
    %249 = vector.shape_cast %248 : vector<1x16xf32> to vector<16xf32>
    %250 = vector.shape_cast %249 : vector<16xf32> to vector<1x1x16xf32>
    %251 = vector.broadcast %250 : vector<1x1x16xf32> to vector<4x4x16xf32>
    %252 = arith.mulf %156, %251 : vector<4x4x16xf32>
    %253 = arith.addf %247, %252 : vector<4x4x16xf32>
    %254 = vector.extract_strided_slice %157 {offsets = [13, 0], sizes = [1, 16], strides = [1, 1]} : vector<25x16xf32> to vector<1x16xf32>
    %255 = vector.shape_cast %254 : vector<1x16xf32> to vector<16xf32>
    %256 = vector.shape_cast %255 : vector<16xf32> to vector<1x1x16xf32>
    %257 = vector.broadcast %256 : vector<1x1x16xf32> to vector<4x4x16xf32>
    %258 = arith.mulf %168, %257 : vector<4x4x16xf32>
    %259 = arith.addf %253, %258 : vector<4x4x16xf32>
    %260 = vector.extract_strided_slice %157 {offsets = [14, 0], sizes = [1, 16], strides = [1, 1]} : vector<25x16xf32> to vector<1x16xf32>
    %261 = vector.shape_cast %260 : vector<1x16xf32> to vector<16xf32>
    %262 = vector.shape_cast %261 : vector<16xf32> to vector<1x1x16xf32>
    %263 = vector.broadcast %262 : vector<1x1x16xf32> to vector<4x4x16xf32>
    %264 = arith.mulf %171, %263 : vector<4x4x16xf32>
    %265 = arith.addf %259, %264 : vector<4x4x16xf32>
    %266 = arith.addf %236, %265 : vector<4x4x16xf32>
    %267 = vector.extract_strided_slice %157 {offsets = [15, 0], sizes = [1, 16], strides = [1, 1]} : vector<25x16xf32> to vector<1x16xf32>
    %268 = vector.shape_cast %267 : vector<1x16xf32> to vector<16xf32>
    %269 = vector.shape_cast %268 : vector<16xf32> to vector<1x1x16xf32>
    %270 = vector.broadcast %269 : vector<1x1x16xf32> to vector<4x4x16xf32>
    %271 = arith.mulf %162, %270 : vector<4x4x16xf32>
    %272 = vector.extract_strided_slice %157 {offsets = [16, 0], sizes = [1, 16], strides = [1, 1]} : vector<25x16xf32> to vector<1x16xf32>
    %273 = vector.shape_cast %272 : vector<1x16xf32> to vector<16xf32>
    %274 = vector.shape_cast %273 : vector<16xf32> to vector<1x1x16xf32>
    %275 = vector.broadcast %274 : vector<1x1x16xf32> to vector<4x4x16xf32>
    %276 = arith.mulf %165, %275 : vector<4x4x16xf32>
    %277 = arith.addf %271, %276 : vector<4x4x16xf32>
    %278 = vector.extract_strided_slice %157 {offsets = [17, 0], sizes = [1, 16], strides = [1, 1]} : vector<25x16xf32> to vector<1x16xf32>
    %279 = vector.shape_cast %278 : vector<1x16xf32> to vector<16xf32>
    %280 = vector.shape_cast %279 : vector<16xf32> to vector<1x1x16xf32>
    %281 = vector.broadcast %280 : vector<1x1x16xf32> to vector<4x4x16xf32>
    %282 = arith.mulf %156, %281 : vector<4x4x16xf32>
    %283 = arith.addf %277, %282 : vector<4x4x16xf32>
    %284 = vector.extract_strided_slice %157 {offsets = [18, 0], sizes = [1, 16], strides = [1, 1]} : vector<25x16xf32> to vector<1x16xf32>
    %285 = vector.shape_cast %284 : vector<1x16xf32> to vector<16xf32>
    %286 = vector.shape_cast %285 : vector<16xf32> to vector<1x1x16xf32>
    %287 = vector.broadcast %286 : vector<1x1x16xf32> to vector<4x4x16xf32>
    %288 = arith.mulf %168, %287 : vector<4x4x16xf32>
    %289 = arith.addf %283, %288 : vector<4x4x16xf32>
    %290 = vector.extract_strided_slice %157 {offsets = [19, 0], sizes = [1, 16], strides = [1, 1]} : vector<25x16xf32> to vector<1x16xf32>
    %291 = vector.shape_cast %290 : vector<1x16xf32> to vector<16xf32>
    %292 = vector.shape_cast %291 : vector<16xf32> to vector<1x1x16xf32>
    %293 = vector.broadcast %292 : vector<1x1x16xf32> to vector<4x4x16xf32>
    %294 = arith.mulf %171, %293 : vector<4x4x16xf32>
    %295 = arith.addf %289, %294 : vector<4x4x16xf32>
    %cst_199 = arith.constant 0.000000e+00 : f32
    %296 = vector.broadcast %cst_199 : f32 to vector<1x4x16xf32>
    %297 = vector.extract_strided_slice %295 {offsets = [1, 0, 0], sizes = [3, 4, 16], strides = [1, 1, 1]} : vector<4x4x16xf32> to vector<3x4x16xf32>
    %298 = tpu.concatenate %297, %296 in 0 : vector<3x4x16xf32>, vector<1x4x16xf32> -> vector<4x4x16xf32>
    %299 = arith.addf %266, %298 : vector<4x4x16xf32>
    %300 = vector.extract_strided_slice %157 {offsets = [20, 0], sizes = [1, 16], strides = [1, 1]} : vector<25x16xf32> to vector<1x16xf32>
    %301 = vector.shape_cast %300 : vector<1x16xf32> to vector<16xf32>
    %302 = vector.shape_cast %301 : vector<16xf32> to vector<1x1x16xf32>
    %303 = vector.broadcast %302 : vector<1x1x16xf32> to vector<4x4x16xf32>
    %304 = arith.mulf %162, %303 : vector<4x4x16xf32>
    %305 = vector.extract_strided_slice %157 {offsets = [21, 0], sizes = [1, 16], strides = [1, 1]} : vector<25x16xf32> to vector<1x16xf32>
    %306 = vector.shape_cast %305 : vector<1x16xf32> to vector<16xf32>
    %307 = vector.shape_cast %306 : vector<16xf32> to vector<1x1x16xf32>
    %308 = vector.broadcast %307 : vector<1x1x16xf32> to vector<4x4x16xf32>
    %309 = arith.mulf %165, %308 : vector<4x4x16xf32>
    %310 = arith.addf %304, %309 : vector<4x4x16xf32>
    %311 = vector.extract_strided_slice %157 {offsets = [22, 0], sizes = [1, 16], strides = [1, 1]} : vector<25x16xf32> to vector<1x16xf32>
    %312 = vector.shape_cast %311 : vector<1x16xf32> to vector<16xf32>
    %313 = vector.shape_cast %312 : vector<16xf32> to vector<1x1x16xf32>
    %314 = vector.broadcast %313 : vector<1x1x16xf32> to vector<4x4x16xf32>
    %315 = arith.mulf %156, %314 : vector<4x4x16xf32>
    %316 = arith.addf %310, %315 : vector<4x4x16xf32>
    %317 = vector.extract_strided_slice %157 {offsets = [23, 0], sizes = [1, 16], strides = [1, 1]} : vector<25x16xf32> to vector<1x16xf32>
    %318 = vector.shape_cast %317 : vector<1x16xf32> to vector<16xf32>
    %319 = vector.shape_cast %318 : vector<16xf32> to vector<1x1x16xf32>
    %320 = vector.broadcast %319 : vector<1x1x16xf32> to vector<4x4x16xf32>
    %321 = arith.mulf %168, %320 : vector<4x4x16xf32>
    %322 = arith.addf %316, %321 : vector<4x4x16xf32>
    %323 = vector.extract_strided_slice %157 {offsets = [24, 0], sizes = [1, 16], strides = [1, 1]} : vector<25x16xf32> to vector<1x16xf32>
    %324 = vector.shape_cast %323 : vector<1x16xf32> to vector<16xf32>
    %325 = vector.shape_cast %324 : vector<16xf32> to vector<1x1x16xf32>
    %326 = vector.broadcast %325 : vector<1x1x16xf32> to vector<4x4x16xf32>
    %327 = arith.mulf %171, %326 : vector<4x4x16xf32>
    %328 = arith.addf %322, %327 : vector<4x4x16xf32>
    %cst_200 = arith.constant 0.000000e+00 : f32
    %329 = vector.broadcast %cst_200 : f32 to vector<2x4x16xf32>
    %330 = vector.extract_strided_slice %328 {offsets = [2, 0, 0], sizes = [2, 4, 16], strides = [1, 1, 1]} : vector<4x4x16xf32> to vector<2x4x16xf32>
    %331 = tpu.concatenate %330, %329 in 0 : vector<2x4x16xf32>, vector<2x4x16xf32> -> vector<4x4x16xf32>
    %332 = arith.addf %299, %331 : vector<4x4x16xf32>
    %333 = vector.shape_cast %159 : vector<16xf32> to vector<1x1x16xf32>
    %334 = vector.broadcast %333 : vector<1x1x16xf32> to vector<4x4x16xf32>
    %335 = arith.addf %332, %334 : vector<4x4x16xf32>
    %336 = vector.extract_strided_slice %103 {offsets = [25, 0], sizes = [7, 16], strides = [1, 1]} : vector<103x16xf32> to vector<7x16xf32>
    %337 = vector.extract_strided_slice %105 {offsets = [2, 0], sizes = [1, 16], strides = [1, 1]} : vector<15x16xf32> to vector<1x16xf32>
    %338 = vector.shape_cast %337 : vector<1x16xf32> to vector<16xf32>
    %cst_201 = arith.constant 0.000000e+00 : f32
    %339 = vector.broadcast %cst_201 : f32 to vector<4x3x16xf32>
    %340 = vector.extract_strided_slice %335 {offsets = [0, 0, 0], sizes = [4, 1, 16], strides = [1, 1, 1]} : vector<4x4x16xf32> to vector<4x1x16xf32>
    %341 = tpu.concatenate %339, %340 in 1 : vector<4x3x16xf32>, vector<4x1x16xf32> -> vector<4x4x16xf32>
    %cst_202 = arith.constant 0.000000e+00 : f32
    %342 = vector.broadcast %cst_202 : f32 to vector<4x2x16xf32>
    %343 = vector.extract_strided_slice %335 {offsets = [0, 0, 0], sizes = [4, 2, 16], strides = [1, 1, 1]} : vector<4x4x16xf32> to vector<4x2x16xf32>
    %344 = tpu.concatenate %342, %343 in 1 : vector<4x2x16xf32>, vector<4x2x16xf32> -> vector<4x4x16xf32>
    %cst_203 = arith.constant 0.000000e+00 : f32
    %345 = vector.broadcast %cst_203 : f32 to vector<4x1x16xf32>
    %346 = vector.extract_strided_slice %335 {offsets = [0, 0, 0], sizes = [4, 3, 16], strides = [1, 1, 1]} : vector<4x4x16xf32> to vector<4x3x16xf32>
    %347 = tpu.concatenate %345, %346 in 1 : vector<4x1x16xf32>, vector<4x3x16xf32> -> vector<4x4x16xf32>
    %cst_204 = arith.constant 0.000000e+00 : f32
    %348 = vector.broadcast %cst_204 : f32 to vector<4x1x16xf32>
    %349 = vector.extract_strided_slice %335 {offsets = [0, 1, 0], sizes = [4, 3, 16], strides = [1, 1, 1]} : vector<4x4x16xf32> to vector<4x3x16xf32>
    %350 = tpu.concatenate %349, %348 in 1 : vector<4x3x16xf32>, vector<4x1x16xf32> -> vector<4x4x16xf32>
    %cst_205 = arith.constant 0.000000e+00 : f32
    %351 = vector.broadcast %cst_205 : f32 to vector<4x2x16xf32>
    %352 = vector.extract_strided_slice %335 {offsets = [0, 2, 0], sizes = [4, 2, 16], strides = [1, 1, 1]} : vector<4x4x16xf32> to vector<4x2x16xf32>
    %353 = tpu.concatenate %352, %351 in 1 : vector<4x2x16xf32>, vector<4x2x16xf32> -> vector<4x4x16xf32>
    %cst_206 = arith.constant 0.000000e+00 : f32
    %354 = vector.broadcast %cst_206 : f32 to vector<4x3x16xf32>
    %355 = vector.extract_strided_slice %335 {offsets = [0, 3, 0], sizes = [4, 1, 16], strides = [1, 1, 1]} : vector<4x4x16xf32> to vector<4x1x16xf32>
    %356 = tpu.concatenate %355, %354 in 1 : vector<4x1x16xf32>, vector<4x3x16xf32> -> vector<4x4x16xf32>
    %357 = vector.extract_strided_slice %336 {offsets = [0, 0], sizes = [1, 16], strides = [1, 1]} : vector<7x16xf32> to vector<1x16xf32>
    %358 = vector.shape_cast %357 : vector<1x16xf32> to vector<16xf32>
    %359 = vector.shape_cast %358 : vector<16xf32> to vector<1x1x16xf32>
    %360 = vector.broadcast %359 : vector<1x1x16xf32> to vector<4x4x16xf32>
    %361 = arith.mulf %341, %360 : vector<4x4x16xf32>
    %362 = vector.extract_strided_slice %336 {offsets = [1, 0], sizes = [1, 16], strides = [1, 1]} : vector<7x16xf32> to vector<1x16xf32>
    %363 = vector.shape_cast %362 : vector<1x16xf32> to vector<16xf32>
    %364 = vector.shape_cast %363 : vector<16xf32> to vector<1x1x16xf32>
    %365 = vector.broadcast %364 : vector<1x1x16xf32> to vector<4x4x16xf32>
    %366 = arith.mulf %344, %365 : vector<4x4x16xf32>
    %367 = arith.addf %361, %366 : vector<4x4x16xf32>
    %368 = vector.extract_strided_slice %336 {offsets = [2, 0], sizes = [1, 16], strides = [1, 1]} : vector<7x16xf32> to vector<1x16xf32>
    %369 = vector.shape_cast %368 : vector<1x16xf32> to vector<16xf32>
    %370 = vector.shape_cast %369 : vector<16xf32> to vector<1x1x16xf32>
    %371 = vector.broadcast %370 : vector<1x1x16xf32> to vector<4x4x16xf32>
    %372 = arith.mulf %347, %371 : vector<4x4x16xf32>
    %373 = arith.addf %367, %372 : vector<4x4x16xf32>
    %374 = vector.extract_strided_slice %336 {offsets = [3, 0], sizes = [1, 16], strides = [1, 1]} : vector<7x16xf32> to vector<1x16xf32>
    %375 = vector.shape_cast %374 : vector<1x16xf32> to vector<16xf32>
    %376 = vector.shape_cast %375 : vector<16xf32> to vector<1x1x16xf32>
    %377 = vector.broadcast %376 : vector<1x1x16xf32> to vector<4x4x16xf32>
    %378 = arith.mulf %335, %377 : vector<4x4x16xf32>
    %379 = arith.addf %373, %378 : vector<4x4x16xf32>
    %380 = vector.extract_strided_slice %336 {offsets = [4, 0], sizes = [1, 16], strides = [1, 1]} : vector<7x16xf32> to vector<1x16xf32>
    %381 = vector.shape_cast %380 : vector<1x16xf32> to vector<16xf32>
    %382 = vector.shape_cast %381 : vector<16xf32> to vector<1x1x16xf32>
    %383 = vector.broadcast %382 : vector<1x1x16xf32> to vector<4x4x16xf32>
    %384 = arith.mulf %350, %383 : vector<4x4x16xf32>
    %385 = arith.addf %379, %384 : vector<4x4x16xf32>
    %386 = vector.extract_strided_slice %336 {offsets = [5, 0], sizes = [1, 16], strides = [1, 1]} : vector<7x16xf32> to vector<1x16xf32>
    %387 = vector.shape_cast %386 : vector<1x16xf32> to vector<16xf32>
    %388 = vector.shape_cast %387 : vector<16xf32> to vector<1x1x16xf32>
    %389 = vector.broadcast %388 : vector<1x1x16xf32> to vector<4x4x16xf32>
    %390 = arith.mulf %353, %389 : vector<4x4x16xf32>
    %391 = arith.addf %385, %390 : vector<4x4x16xf32>
    %392 = vector.extract_strided_slice %336 {offsets = [6, 0], sizes = [1, 16], strides = [1, 1]} : vector<7x16xf32> to vector<1x16xf32>
    %393 = vector.shape_cast %392 : vector<1x16xf32> to vector<16xf32>
    %394 = vector.shape_cast %393 : vector<16xf32> to vector<1x1x16xf32>
    %395 = vector.broadcast %394 : vector<1x1x16xf32> to vector<4x4x16xf32>
    %396 = arith.mulf %356, %395 : vector<4x4x16xf32>
    %397 = arith.addf %391, %396 : vector<4x4x16xf32>
    %398 = vector.shape_cast %338 : vector<16xf32> to vector<1x1x16xf32>
    %399 = vector.broadcast %398 : vector<1x1x16xf32> to vector<4x4x16xf32>
    %400 = arith.addf %397, %399 : vector<4x4x16xf32>
    %401 = vector.extract_strided_slice %103 {offsets = [32, 0], sizes = [7, 16], strides = [1, 1]} : vector<103x16xf32> to vector<7x16xf32>
    %402 = vector.extract_strided_slice %105 {offsets = [3, 0], sizes = [1, 16], strides = [1, 1]} : vector<15x16xf32> to vector<1x16xf32>
    %403 = vector.shape_cast %402 : vector<1x16xf32> to vector<16xf32>
    %404 = vector.extract_strided_slice %401 {offsets = [0, 0], sizes = [1, 16], strides = [1, 1]} : vector<7x16xf32> to vector<1x16xf32>
    %405 = vector.shape_cast %404 : vector<1x16xf32> to vector<16xf32>
    %406 = vector.shape_cast %405 : vector<16xf32> to vector<1x1x16xf32>
    %407 = vector.broadcast %406 : vector<1x1x16xf32> to vector<4x4x16xf32>
    %408 = arith.mulf %400, %407 : vector<4x4x16xf32>
    %cst_207 = arith.constant 0.000000e+00 : f32
    %409 = vector.broadcast %cst_207 : f32 to vector<3x4x16xf32>
    %410 = vector.extract_strided_slice %408 {offsets = [0, 0, 0], sizes = [1, 4, 16], strides = [1, 1, 1]} : vector<4x4x16xf32> to vector<1x4x16xf32>
    %411 = tpu.concatenate %409, %410 in 0 : vector<3x4x16xf32>, vector<1x4x16xf32> -> vector<4x4x16xf32>
    %412 = vector.extract_strided_slice %401 {offsets = [1, 0], sizes = [1, 16], strides = [1, 1]} : vector<7x16xf32> to vector<1x16xf32>
    %413 = vector.shape_cast %412 : vector<1x16xf32> to vector<16xf32>
    %414 = vector.shape_cast %413 : vector<16xf32> to vector<1x1x16xf32>
    %415 = vector.broadcast %414 : vector<1x1x16xf32> to vector<4x4x16xf32>
    %416 = arith.mulf %400, %415 : vector<4x4x16xf32>
    %cst_208 = arith.constant 0.000000e+00 : f32
    %417 = vector.broadcast %cst_208 : f32 to vector<2x4x16xf32>
    %418 = vector.extract_strided_slice %416 {offsets = [0, 0, 0], sizes = [2, 4, 16], strides = [1, 1, 1]} : vector<4x4x16xf32> to vector<2x4x16xf32>
    %419 = tpu.concatenate %417, %418 in 0 : vector<2x4x16xf32>, vector<2x4x16xf32> -> vector<4x4x16xf32>
    %420 = arith.addf %411, %419 : vector<4x4x16xf32>
    %421 = vector.extract_strided_slice %401 {offsets = [2, 0], sizes = [1, 16], strides = [1, 1]} : vector<7x16xf32> to vector<1x16xf32>
    %422 = vector.shape_cast %421 : vector<1x16xf32> to vector<16xf32>
    %423 = vector.shape_cast %422 : vector<16xf32> to vector<1x1x16xf32>
    %424 = vector.broadcast %423 : vector<1x1x16xf32> to vector<4x4x16xf32>
    %425 = arith.mulf %400, %424 : vector<4x4x16xf32>
    %cst_209 = arith.constant 0.000000e+00 : f32
    %426 = vector.broadcast %cst_209 : f32 to vector<1x4x16xf32>
    %427 = vector.extract_strided_slice %425 {offsets = [0, 0, 0], sizes = [3, 4, 16], strides = [1, 1, 1]} : vector<4x4x16xf32> to vector<3x4x16xf32>
    %428 = tpu.concatenate %426, %427 in 0 : vector<1x4x16xf32>, vector<3x4x16xf32> -> vector<4x4x16xf32>
    %429 = arith.addf %420, %428 : vector<4x4x16xf32>
    %430 = vector.extract_strided_slice %401 {offsets = [3, 0], sizes = [1, 16], strides = [1, 1]} : vector<7x16xf32> to vector<1x16xf32>
    %431 = vector.shape_cast %430 : vector<1x16xf32> to vector<16xf32>
    %432 = vector.shape_cast %431 : vector<16xf32> to vector<1x1x16xf32>
    %433 = vector.broadcast %432 : vector<1x1x16xf32> to vector<4x4x16xf32>
    %434 = arith.mulf %400, %433 : vector<4x4x16xf32>
    %435 = arith.addf %429, %434 : vector<4x4x16xf32>
    %436 = vector.extract_strided_slice %401 {offsets = [4, 0], sizes = [1, 16], strides = [1, 1]} : vector<7x16xf32> to vector<1x16xf32>
    %437 = vector.shape_cast %436 : vector<1x16xf32> to vector<16xf32>
    %438 = vector.shape_cast %437 : vector<16xf32> to vector<1x1x16xf32>
    %439 = vector.broadcast %438 : vector<1x1x16xf32> to vector<4x4x16xf32>
    %440 = arith.mulf %400, %439 : vector<4x4x16xf32>
    %cst_210 = arith.constant 0.000000e+00 : f32
    %441 = vector.broadcast %cst_210 : f32 to vector<1x4x16xf32>
    %442 = vector.extract_strided_slice %440 {offsets = [1, 0, 0], sizes = [3, 4, 16], strides = [1, 1, 1]} : vector<4x4x16xf32> to vector<3x4x16xf32>
    %443 = tpu.concatenate %442, %441 in 0 : vector<3x4x16xf32>, vector<1x4x16xf32> -> vector<4x4x16xf32>
    %444 = arith.addf %435, %443 : vector<4x4x16xf32>
    %445 = vector.extract_strided_slice %401 {offsets = [5, 0], sizes = [1, 16], strides = [1, 1]} : vector<7x16xf32> to vector<1x16xf32>
    %446 = vector.shape_cast %445 : vector<1x16xf32> to vector<16xf32>
    %447 = vector.shape_cast %446 : vector<16xf32> to vector<1x1x16xf32>
    %448 = vector.broadcast %447 : vector<1x1x16xf32> to vector<4x4x16xf32>
    %449 = arith.mulf %400, %448 : vector<4x4x16xf32>
    %cst_211 = arith.constant 0.000000e+00 : f32
    %450 = vector.broadcast %cst_211 : f32 to vector<2x4x16xf32>
    %451 = vector.extract_strided_slice %449 {offsets = [2, 0, 0], sizes = [2, 4, 16], strides = [1, 1, 1]} : vector<4x4x16xf32> to vector<2x4x16xf32>
    %452 = tpu.concatenate %451, %450 in 0 : vector<2x4x16xf32>, vector<2x4x16xf32> -> vector<4x4x16xf32>
    %453 = arith.addf %444, %452 : vector<4x4x16xf32>
    %454 = vector.extract_strided_slice %401 {offsets = [6, 0], sizes = [1, 16], strides = [1, 1]} : vector<7x16xf32> to vector<1x16xf32>
    %455 = vector.shape_cast %454 : vector<1x16xf32> to vector<16xf32>
    %456 = vector.shape_cast %455 : vector<16xf32> to vector<1x1x16xf32>
    %457 = vector.broadcast %456 : vector<1x1x16xf32> to vector<4x4x16xf32>
    %458 = arith.mulf %400, %457 : vector<4x4x16xf32>
    %cst_212 = arith.constant 0.000000e+00 : f32
    %459 = vector.broadcast %cst_212 : f32 to vector<3x4x16xf32>
    %460 = vector.extract_strided_slice %458 {offsets = [3, 0, 0], sizes = [1, 4, 16], strides = [1, 1, 1]} : vector<4x4x16xf32> to vector<1x4x16xf32>
    %461 = tpu.concatenate %460, %459 in 0 : vector<1x4x16xf32>, vector<3x4x16xf32> -> vector<4x4x16xf32>
    %462 = arith.addf %453, %461 : vector<4x4x16xf32>
    %463 = vector.shape_cast %403 : vector<16xf32> to vector<1x1x16xf32>
    %464 = vector.broadcast %463 : vector<1x1x16xf32> to vector<4x4x16xf32>
    %465 = arith.addf %462, %464 : vector<4x4x16xf32>
    %466 = arith.addf %335, %465 : vector<4x4x16xf32>
    %467 = vector.extract_strided_slice %103 {offsets = [39, 0], sizes = [11, 16], strides = [1, 1]} : vector<103x16xf32> to vector<11x16xf32>
    %468 = vector.extract_strided_slice %105 {offsets = [4, 0], sizes = [1, 16], strides = [1, 1]} : vector<15x16xf32> to vector<1x16xf32>
    %469 = vector.shape_cast %468 : vector<1x16xf32> to vector<16xf32>
    %cst_213 = arith.constant 0.000000e+00 : f32
    %470 = vector.broadcast %cst_213 : f32 to vector<4x3x16xf32>
    %471 = vector.extract_strided_slice %335 {offsets = [0, 0, 0], sizes = [4, 1, 16], strides = [1, 1, 1]} : vector<4x4x16xf32> to vector<4x1x16xf32>
    %472 = tpu.concatenate %470, %471 in 1 : vector<4x3x16xf32>, vector<4x1x16xf32> -> vector<4x4x16xf32>
    %cst_214 = arith.constant 0.000000e+00 : f32
    %473 = vector.broadcast %cst_214 : f32 to vector<4x2x16xf32>
    %474 = vector.extract_strided_slice %335 {offsets = [0, 0, 0], sizes = [4, 2, 16], strides = [1, 1, 1]} : vector<4x4x16xf32> to vector<4x2x16xf32>
    %475 = tpu.concatenate %473, %474 in 1 : vector<4x2x16xf32>, vector<4x2x16xf32> -> vector<4x4x16xf32>
    %cst_215 = arith.constant 0.000000e+00 : f32
    %476 = vector.broadcast %cst_215 : f32 to vector<4x1x16xf32>
    %477 = vector.extract_strided_slice %335 {offsets = [0, 0, 0], sizes = [4, 3, 16], strides = [1, 1, 1]} : vector<4x4x16xf32> to vector<4x3x16xf32>
    %478 = tpu.concatenate %476, %477 in 1 : vector<4x1x16xf32>, vector<4x3x16xf32> -> vector<4x4x16xf32>
    %cst_216 = arith.constant 0.000000e+00 : f32
    %479 = vector.broadcast %cst_216 : f32 to vector<4x1x16xf32>
    %480 = vector.extract_strided_slice %335 {offsets = [0, 1, 0], sizes = [4, 3, 16], strides = [1, 1, 1]} : vector<4x4x16xf32> to vector<4x3x16xf32>
    %481 = tpu.concatenate %480, %479 in 1 : vector<4x3x16xf32>, vector<4x1x16xf32> -> vector<4x4x16xf32>
    %cst_217 = arith.constant 0.000000e+00 : f32
    %482 = vector.broadcast %cst_217 : f32 to vector<4x2x16xf32>
    %483 = vector.extract_strided_slice %335 {offsets = [0, 2, 0], sizes = [4, 2, 16], strides = [1, 1, 1]} : vector<4x4x16xf32> to vector<4x2x16xf32>
    %484 = tpu.concatenate %483, %482 in 1 : vector<4x2x16xf32>, vector<4x2x16xf32> -> vector<4x4x16xf32>
    %cst_218 = arith.constant 0.000000e+00 : f32
    %485 = vector.broadcast %cst_218 : f32 to vector<4x3x16xf32>
    %486 = vector.extract_strided_slice %335 {offsets = [0, 3, 0], sizes = [4, 1, 16], strides = [1, 1, 1]} : vector<4x4x16xf32> to vector<4x1x16xf32>
    %487 = tpu.concatenate %486, %485 in 1 : vector<4x1x16xf32>, vector<4x3x16xf32> -> vector<4x4x16xf32>
    %488 = vector.extract_strided_slice %467 {offsets = [2, 0], sizes = [1, 16], strides = [1, 1]} : vector<11x16xf32> to vector<1x16xf32>
    %489 = vector.shape_cast %488 : vector<1x16xf32> to vector<16xf32>
    %490 = vector.shape_cast %489 : vector<16xf32> to vector<1x1x16xf32>
    %491 = vector.broadcast %490 : vector<1x1x16xf32> to vector<4x4x16xf32>
    %492 = arith.mulf %472, %491 : vector<4x4x16xf32>
    %493 = vector.extract_strided_slice %467 {offsets = [3, 0], sizes = [1, 16], strides = [1, 1]} : vector<11x16xf32> to vector<1x16xf32>
    %494 = vector.shape_cast %493 : vector<1x16xf32> to vector<16xf32>
    %495 = vector.shape_cast %494 : vector<16xf32> to vector<1x1x16xf32>
    %496 = vector.broadcast %495 : vector<1x1x16xf32> to vector<4x4x16xf32>
    %497 = arith.mulf %475, %496 : vector<4x4x16xf32>
    %498 = arith.addf %492, %497 : vector<4x4x16xf32>
    %499 = vector.extract_strided_slice %467 {offsets = [4, 0], sizes = [1, 16], strides = [1, 1]} : vector<11x16xf32> to vector<1x16xf32>
    %500 = vector.shape_cast %499 : vector<1x16xf32> to vector<16xf32>
    %501 = vector.shape_cast %500 : vector<16xf32> to vector<1x1x16xf32>
    %502 = vector.broadcast %501 : vector<1x1x16xf32> to vector<4x4x16xf32>
    %503 = arith.mulf %478, %502 : vector<4x4x16xf32>
    %504 = arith.addf %498, %503 : vector<4x4x16xf32>
    %505 = vector.extract_strided_slice %467 {offsets = [5, 0], sizes = [1, 16], strides = [1, 1]} : vector<11x16xf32> to vector<1x16xf32>
    %506 = vector.shape_cast %505 : vector<1x16xf32> to vector<16xf32>
    %507 = vector.shape_cast %506 : vector<16xf32> to vector<1x1x16xf32>
    %508 = vector.broadcast %507 : vector<1x1x16xf32> to vector<4x4x16xf32>
    %509 = arith.mulf %335, %508 : vector<4x4x16xf32>
    %510 = arith.addf %504, %509 : vector<4x4x16xf32>
    %511 = vector.extract_strided_slice %467 {offsets = [6, 0], sizes = [1, 16], strides = [1, 1]} : vector<11x16xf32> to vector<1x16xf32>
    %512 = vector.shape_cast %511 : vector<1x16xf32> to vector<16xf32>
    %513 = vector.shape_cast %512 : vector<16xf32> to vector<1x1x16xf32>
    %514 = vector.broadcast %513 : vector<1x1x16xf32> to vector<4x4x16xf32>
    %515 = arith.mulf %481, %514 : vector<4x4x16xf32>
    %516 = arith.addf %510, %515 : vector<4x4x16xf32>
    %517 = vector.extract_strided_slice %467 {offsets = [7, 0], sizes = [1, 16], strides = [1, 1]} : vector<11x16xf32> to vector<1x16xf32>
    %518 = vector.shape_cast %517 : vector<1x16xf32> to vector<16xf32>
    %519 = vector.shape_cast %518 : vector<16xf32> to vector<1x1x16xf32>
    %520 = vector.broadcast %519 : vector<1x1x16xf32> to vector<4x4x16xf32>
    %521 = arith.mulf %484, %520 : vector<4x4x16xf32>
    %522 = arith.addf %516, %521 : vector<4x4x16xf32>
    %523 = vector.extract_strided_slice %467 {offsets = [8, 0], sizes = [1, 16], strides = [1, 1]} : vector<11x16xf32> to vector<1x16xf32>
    %524 = vector.shape_cast %523 : vector<1x16xf32> to vector<16xf32>
    %525 = vector.shape_cast %524 : vector<16xf32> to vector<1x1x16xf32>
    %526 = vector.broadcast %525 : vector<1x1x16xf32> to vector<4x4x16xf32>
    %527 = arith.mulf %487, %526 : vector<4x4x16xf32>
    %528 = arith.addf %522, %527 : vector<4x4x16xf32>
    %529 = vector.shape_cast %469 : vector<16xf32> to vector<1x1x16xf32>
    %530 = vector.broadcast %529 : vector<1x1x16xf32> to vector<4x4x16xf32>
    %531 = arith.addf %528, %530 : vector<4x4x16xf32>
    %532 = vector.extract_strided_slice %103 {offsets = [50, 0], sizes = [11, 16], strides = [1, 1]} : vector<103x16xf32> to vector<11x16xf32>
    %533 = vector.extract_strided_slice %105 {offsets = [5, 0], sizes = [1, 16], strides = [1, 1]} : vector<15x16xf32> to vector<1x16xf32>
    %534 = vector.shape_cast %533 : vector<1x16xf32> to vector<16xf32>
    %535 = vector.extract_strided_slice %532 {offsets = [2, 0], sizes = [1, 16], strides = [1, 1]} : vector<11x16xf32> to vector<1x16xf32>
    %536 = vector.shape_cast %535 : vector<1x16xf32> to vector<16xf32>
    %537 = vector.shape_cast %536 : vector<16xf32> to vector<1x1x16xf32>
    %538 = vector.broadcast %537 : vector<1x1x16xf32> to vector<4x4x16xf32>
    %539 = arith.mulf %531, %538 : vector<4x4x16xf32>
    %cst_219 = arith.constant 0.000000e+00 : f32
    %540 = vector.broadcast %cst_219 : f32 to vector<3x4x16xf32>
    %541 = vector.extract_strided_slice %539 {offsets = [0, 0, 0], sizes = [1, 4, 16], strides = [1, 1, 1]} : vector<4x4x16xf32> to vector<1x4x16xf32>
    %542 = tpu.concatenate %540, %541 in 0 : vector<3x4x16xf32>, vector<1x4x16xf32> -> vector<4x4x16xf32>
    %543 = vector.extract_strided_slice %532 {offsets = [3, 0], sizes = [1, 16], strides = [1, 1]} : vector<11x16xf32> to vector<1x16xf32>
    %544 = vector.shape_cast %543 : vector<1x16xf32> to vector<16xf32>
    %545 = vector.shape_cast %544 : vector<16xf32> to vector<1x1x16xf32>
    %546 = vector.broadcast %545 : vector<1x1x16xf32> to vector<4x4x16xf32>
    %547 = arith.mulf %531, %546 : vector<4x4x16xf32>
    %cst_220 = arith.constant 0.000000e+00 : f32
    %548 = vector.broadcast %cst_220 : f32 to vector<2x4x16xf32>
    %549 = vector.extract_strided_slice %547 {offsets = [0, 0, 0], sizes = [2, 4, 16], strides = [1, 1, 1]} : vector<4x4x16xf32> to vector<2x4x16xf32>
    %550 = tpu.concatenate %548, %549 in 0 : vector<2x4x16xf32>, vector<2x4x16xf32> -> vector<4x4x16xf32>
    %551 = arith.addf %542, %550 : vector<4x4x16xf32>
    %552 = vector.extract_strided_slice %532 {offsets = [4, 0], sizes = [1, 16], strides = [1, 1]} : vector<11x16xf32> to vector<1x16xf32>
    %553 = vector.shape_cast %552 : vector<1x16xf32> to vector<16xf32>
    %554 = vector.shape_cast %553 : vector<16xf32> to vector<1x1x16xf32>
    %555 = vector.broadcast %554 : vector<1x1x16xf32> to vector<4x4x16xf32>
    %556 = arith.mulf %531, %555 : vector<4x4x16xf32>
    %cst_221 = arith.constant 0.000000e+00 : f32
    %557 = vector.broadcast %cst_221 : f32 to vector<1x4x16xf32>
    %558 = vector.extract_strided_slice %556 {offsets = [0, 0, 0], sizes = [3, 4, 16], strides = [1, 1, 1]} : vector<4x4x16xf32> to vector<3x4x16xf32>
    %559 = tpu.concatenate %557, %558 in 0 : vector<1x4x16xf32>, vector<3x4x16xf32> -> vector<4x4x16xf32>
    %560 = arith.addf %551, %559 : vector<4x4x16xf32>
    %561 = vector.extract_strided_slice %532 {offsets = [5, 0], sizes = [1, 16], strides = [1, 1]} : vector<11x16xf32> to vector<1x16xf32>
    %562 = vector.shape_cast %561 : vector<1x16xf32> to vector<16xf32>
    %563 = vector.shape_cast %562 : vector<16xf32> to vector<1x1x16xf32>
    %564 = vector.broadcast %563 : vector<1x1x16xf32> to vector<4x4x16xf32>
    %565 = arith.mulf %531, %564 : vector<4x4x16xf32>
    %566 = arith.addf %560, %565 : vector<4x4x16xf32>
    %567 = vector.extract_strided_slice %532 {offsets = [6, 0], sizes = [1, 16], strides = [1, 1]} : vector<11x16xf32> to vector<1x16xf32>
    %568 = vector.shape_cast %567 : vector<1x16xf32> to vector<16xf32>
    %569 = vector.shape_cast %568 : vector<16xf32> to vector<1x1x16xf32>
    %570 = vector.broadcast %569 : vector<1x1x16xf32> to vector<4x4x16xf32>
    %571 = arith.mulf %531, %570 : vector<4x4x16xf32>
    %cst_222 = arith.constant 0.000000e+00 : f32
    %572 = vector.broadcast %cst_222 : f32 to vector<1x4x16xf32>
    %573 = vector.extract_strided_slice %571 {offsets = [1, 0, 0], sizes = [3, 4, 16], strides = [1, 1, 1]} : vector<4x4x16xf32> to vector<3x4x16xf32>
    %574 = tpu.concatenate %573, %572 in 0 : vector<3x4x16xf32>, vector<1x4x16xf32> -> vector<4x4x16xf32>
    %575 = arith.addf %566, %574 : vector<4x4x16xf32>
    %576 = vector.extract_strided_slice %532 {offsets = [7, 0], sizes = [1, 16], strides = [1, 1]} : vector<11x16xf32> to vector<1x16xf32>
    %577 = vector.shape_cast %576 : vector<1x16xf32> to vector<16xf32>
    %578 = vector.shape_cast %577 : vector<16xf32> to vector<1x1x16xf32>
    %579 = vector.broadcast %578 : vector<1x1x16xf32> to vector<4x4x16xf32>
    %580 = arith.mulf %531, %579 : vector<4x4x16xf32>
    %cst_223 = arith.constant 0.000000e+00 : f32
    %581 = vector.broadcast %cst_223 : f32 to vector<2x4x16xf32>
    %582 = vector.extract_strided_slice %580 {offsets = [2, 0, 0], sizes = [2, 4, 16], strides = [1, 1, 1]} : vector<4x4x16xf32> to vector<2x4x16xf32>
    %583 = tpu.concatenate %582, %581 in 0 : vector<2x4x16xf32>, vector<2x4x16xf32> -> vector<4x4x16xf32>
    %584 = arith.addf %575, %583 : vector<4x4x16xf32>
    %585 = vector.extract_strided_slice %532 {offsets = [8, 0], sizes = [1, 16], strides = [1, 1]} : vector<11x16xf32> to vector<1x16xf32>
    %586 = vector.shape_cast %585 : vector<1x16xf32> to vector<16xf32>
    %587 = vector.shape_cast %586 : vector<16xf32> to vector<1x1x16xf32>
    %588 = vector.broadcast %587 : vector<1x1x16xf32> to vector<4x4x16xf32>
    %589 = arith.mulf %531, %588 : vector<4x4x16xf32>
    %cst_224 = arith.constant 0.000000e+00 : f32
    %590 = vector.broadcast %cst_224 : f32 to vector<3x4x16xf32>
    %591 = vector.extract_strided_slice %589 {offsets = [3, 0, 0], sizes = [1, 4, 16], strides = [1, 1, 1]} : vector<4x4x16xf32> to vector<1x4x16xf32>
    %592 = tpu.concatenate %591, %590 in 0 : vector<1x4x16xf32>, vector<3x4x16xf32> -> vector<4x4x16xf32>
    %593 = arith.addf %584, %592 : vector<4x4x16xf32>
    %594 = vector.shape_cast %534 : vector<16xf32> to vector<1x1x16xf32>
    %595 = vector.broadcast %594 : vector<1x1x16xf32> to vector<4x4x16xf32>
    %596 = arith.addf %593, %595 : vector<4x4x16xf32>
    %597 = arith.addf %466, %596 : vector<4x4x16xf32>
    %598 = vector.extract_strided_slice %103 {offsets = [61, 0], sizes = [21, 16], strides = [1, 1]} : vector<103x16xf32> to vector<21x16xf32>
    %599 = vector.extract_strided_slice %105 {offsets = [6, 0], sizes = [1, 16], strides = [1, 1]} : vector<15x16xf32> to vector<1x16xf32>
    %600 = vector.shape_cast %599 : vector<1x16xf32> to vector<16xf32>
    %cst_225 = arith.constant 0.000000e+00 : f32
    %601 = vector.broadcast %cst_225 : f32 to vector<4x3x16xf32>
    %602 = vector.extract_strided_slice %335 {offsets = [0, 0, 0], sizes = [4, 1, 16], strides = [1, 1, 1]} : vector<4x4x16xf32> to vector<4x1x16xf32>
    %603 = tpu.concatenate %601, %602 in 1 : vector<4x3x16xf32>, vector<4x1x16xf32> -> vector<4x4x16xf32>
    %cst_226 = arith.constant 0.000000e+00 : f32
    %604 = vector.broadcast %cst_226 : f32 to vector<4x2x16xf32>
    %605 = vector.extract_strided_slice %335 {offsets = [0, 0, 0], sizes = [4, 2, 16], strides = [1, 1, 1]} : vector<4x4x16xf32> to vector<4x2x16xf32>
    %606 = tpu.concatenate %604, %605 in 1 : vector<4x2x16xf32>, vector<4x2x16xf32> -> vector<4x4x16xf32>
    %cst_227 = arith.constant 0.000000e+00 : f32
    %607 = vector.broadcast %cst_227 : f32 to vector<4x1x16xf32>
    %608 = vector.extract_strided_slice %335 {offsets = [0, 0, 0], sizes = [4, 3, 16], strides = [1, 1, 1]} : vector<4x4x16xf32> to vector<4x3x16xf32>
    %609 = tpu.concatenate %607, %608 in 1 : vector<4x1x16xf32>, vector<4x3x16xf32> -> vector<4x4x16xf32>
    %cst_228 = arith.constant 0.000000e+00 : f32
    %610 = vector.broadcast %cst_228 : f32 to vector<4x1x16xf32>
    %611 = vector.extract_strided_slice %335 {offsets = [0, 1, 0], sizes = [4, 3, 16], strides = [1, 1, 1]} : vector<4x4x16xf32> to vector<4x3x16xf32>
    %612 = tpu.concatenate %611, %610 in 1 : vector<4x3x16xf32>, vector<4x1x16xf32> -> vector<4x4x16xf32>
    %cst_229 = arith.constant 0.000000e+00 : f32
    %613 = vector.broadcast %cst_229 : f32 to vector<4x2x16xf32>
    %614 = vector.extract_strided_slice %335 {offsets = [0, 2, 0], sizes = [4, 2, 16], strides = [1, 1, 1]} : vector<4x4x16xf32> to vector<4x2x16xf32>
    %615 = tpu.concatenate %614, %613 in 1 : vector<4x2x16xf32>, vector<4x2x16xf32> -> vector<4x4x16xf32>
    %cst_230 = arith.constant 0.000000e+00 : f32
    %616 = vector.broadcast %cst_230 : f32 to vector<4x3x16xf32>
    %617 = vector.extract_strided_slice %335 {offsets = [0, 3, 0], sizes = [4, 1, 16], strides = [1, 1, 1]} : vector<4x4x16xf32> to vector<4x1x16xf32>
    %618 = tpu.concatenate %617, %616 in 1 : vector<4x1x16xf32>, vector<4x3x16xf32> -> vector<4x4x16xf32>
    %619 = vector.extract_strided_slice %598 {offsets = [7, 0], sizes = [1, 16], strides = [1, 1]} : vector<21x16xf32> to vector<1x16xf32>
    %620 = vector.shape_cast %619 : vector<1x16xf32> to vector<16xf32>
    %621 = vector.shape_cast %620 : vector<16xf32> to vector<1x1x16xf32>
    %622 = vector.broadcast %621 : vector<1x1x16xf32> to vector<4x4x16xf32>
    %623 = arith.mulf %603, %622 : vector<4x4x16xf32>
    %624 = vector.extract_strided_slice %598 {offsets = [8, 0], sizes = [1, 16], strides = [1, 1]} : vector<21x16xf32> to vector<1x16xf32>
    %625 = vector.shape_cast %624 : vector<1x16xf32> to vector<16xf32>
    %626 = vector.shape_cast %625 : vector<16xf32> to vector<1x1x16xf32>
    %627 = vector.broadcast %626 : vector<1x1x16xf32> to vector<4x4x16xf32>
    %628 = arith.mulf %606, %627 : vector<4x4x16xf32>
    %629 = arith.addf %623, %628 : vector<4x4x16xf32>
    %630 = vector.extract_strided_slice %598 {offsets = [9, 0], sizes = [1, 16], strides = [1, 1]} : vector<21x16xf32> to vector<1x16xf32>
    %631 = vector.shape_cast %630 : vector<1x16xf32> to vector<16xf32>
    %632 = vector.shape_cast %631 : vector<16xf32> to vector<1x1x16xf32>
    %633 = vector.broadcast %632 : vector<1x1x16xf32> to vector<4x4x16xf32>
    %634 = arith.mulf %609, %633 : vector<4x4x16xf32>
    %635 = arith.addf %629, %634 : vector<4x4x16xf32>
    %636 = vector.extract_strided_slice %598 {offsets = [10, 0], sizes = [1, 16], strides = [1, 1]} : vector<21x16xf32> to vector<1x16xf32>
    %637 = vector.shape_cast %636 : vector<1x16xf32> to vector<16xf32>
    %638 = vector.shape_cast %637 : vector<16xf32> to vector<1x1x16xf32>
    %639 = vector.broadcast %638 : vector<1x1x16xf32> to vector<4x4x16xf32>
    %640 = arith.mulf %335, %639 : vector<4x4x16xf32>
    %641 = arith.addf %635, %640 : vector<4x4x16xf32>
    %642 = vector.extract_strided_slice %598 {offsets = [11, 0], sizes = [1, 16], strides = [1, 1]} : vector<21x16xf32> to vector<1x16xf32>
    %643 = vector.shape_cast %642 : vector<1x16xf32> to vector<16xf32>
    %644 = vector.shape_cast %643 : vector<16xf32> to vector<1x1x16xf32>
    %645 = vector.broadcast %644 : vector<1x1x16xf32> to vector<4x4x16xf32>
    %646 = arith.mulf %612, %645 : vector<4x4x16xf32>
    %647 = arith.addf %641, %646 : vector<4x4x16xf32>
    %648 = vector.extract_strided_slice %598 {offsets = [12, 0], sizes = [1, 16], strides = [1, 1]} : vector<21x16xf32> to vector<1x16xf32>
    %649 = vector.shape_cast %648 : vector<1x16xf32> to vector<16xf32>
    %650 = vector.shape_cast %649 : vector<16xf32> to vector<1x1x16xf32>
    %651 = vector.broadcast %650 : vector<1x1x16xf32> to vector<4x4x16xf32>
    %652 = arith.mulf %615, %651 : vector<4x4x16xf32>
    %653 = arith.addf %647, %652 : vector<4x4x16xf32>
    %654 = vector.extract_strided_slice %598 {offsets = [13, 0], sizes = [1, 16], strides = [1, 1]} : vector<21x16xf32> to vector<1x16xf32>
    %655 = vector.shape_cast %654 : vector<1x16xf32> to vector<16xf32>
    %656 = vector.shape_cast %655 : vector<16xf32> to vector<1x1x16xf32>
    %657 = vector.broadcast %656 : vector<1x1x16xf32> to vector<4x4x16xf32>
    %658 = arith.mulf %618, %657 : vector<4x4x16xf32>
    %659 = arith.addf %653, %658 : vector<4x4x16xf32>
    %660 = vector.shape_cast %600 : vector<16xf32> to vector<1x1x16xf32>
    %661 = vector.broadcast %660 : vector<1x1x16xf32> to vector<4x4x16xf32>
    %662 = arith.addf %659, %661 : vector<4x4x16xf32>
    %663 = vector.extract_strided_slice %103 {offsets = [82, 0], sizes = [21, 16], strides = [1, 1]} : vector<103x16xf32> to vector<21x16xf32>
    %664 = vector.extract_strided_slice %105 {offsets = [7, 0], sizes = [1, 16], strides = [1, 1]} : vector<15x16xf32> to vector<1x16xf32>
    %665 = vector.shape_cast %664 : vector<1x16xf32> to vector<16xf32>
    %666 = vector.extract_strided_slice %663 {offsets = [7, 0], sizes = [1, 16], strides = [1, 1]} : vector<21x16xf32> to vector<1x16xf32>
    %667 = vector.shape_cast %666 : vector<1x16xf32> to vector<16xf32>
    %668 = vector.shape_cast %667 : vector<16xf32> to vector<1x1x16xf32>
    %669 = vector.broadcast %668 : vector<1x1x16xf32> to vector<4x4x16xf32>
    %670 = arith.mulf %662, %669 : vector<4x4x16xf32>
    %cst_231 = arith.constant 0.000000e+00 : f32
    %671 = vector.broadcast %cst_231 : f32 to vector<3x4x16xf32>
    %672 = vector.extract_strided_slice %670 {offsets = [0, 0, 0], sizes = [1, 4, 16], strides = [1, 1, 1]} : vector<4x4x16xf32> to vector<1x4x16xf32>
    %673 = tpu.concatenate %671, %672 in 0 : vector<3x4x16xf32>, vector<1x4x16xf32> -> vector<4x4x16xf32>
    %674 = vector.extract_strided_slice %663 {offsets = [8, 0], sizes = [1, 16], strides = [1, 1]} : vector<21x16xf32> to vector<1x16xf32>
    %675 = vector.shape_cast %674 : vector<1x16xf32> to vector<16xf32>
    %676 = vector.shape_cast %675 : vector<16xf32> to vector<1x1x16xf32>
    %677 = vector.broadcast %676 : vector<1x1x16xf32> to vector<4x4x16xf32>
    %678 = arith.mulf %662, %677 : vector<4x4x16xf32>
    %cst_232 = arith.constant 0.000000e+00 : f32
    %679 = vector.broadcast %cst_232 : f32 to vector<2x4x16xf32>
    %680 = vector.extract_strided_slice %678 {offsets = [0, 0, 0], sizes = [2, 4, 16], strides = [1, 1, 1]} : vector<4x4x16xf32> to vector<2x4x16xf32>
    %681 = tpu.concatenate %679, %680 in 0 : vector<2x4x16xf32>, vector<2x4x16xf32> -> vector<4x4x16xf32>
    %682 = arith.addf %673, %681 : vector<4x4x16xf32>
    %683 = vector.extract_strided_slice %663 {offsets = [9, 0], sizes = [1, 16], strides = [1, 1]} : vector<21x16xf32> to vector<1x16xf32>
    %684 = vector.shape_cast %683 : vector<1x16xf32> to vector<16xf32>
    %685 = vector.shape_cast %684 : vector<16xf32> to vector<1x1x16xf32>
    %686 = vector.broadcast %685 : vector<1x1x16xf32> to vector<4x4x16xf32>
    %687 = arith.mulf %662, %686 : vector<4x4x16xf32>
    %cst_233 = arith.constant 0.000000e+00 : f32
    %688 = vector.broadcast %cst_233 : f32 to vector<1x4x16xf32>
    %689 = vector.extract_strided_slice %687 {offsets = [0, 0, 0], sizes = [3, 4, 16], strides = [1, 1, 1]} : vector<4x4x16xf32> to vector<3x4x16xf32>
    %690 = tpu.concatenate %688, %689 in 0 : vector<1x4x16xf32>, vector<3x4x16xf32> -> vector<4x4x16xf32>
    %691 = arith.addf %682, %690 : vector<4x4x16xf32>
    %692 = vector.extract_strided_slice %663 {offsets = [10, 0], sizes = [1, 16], strides = [1, 1]} : vector<21x16xf32> to vector<1x16xf32>
    %693 = vector.shape_cast %692 : vector<1x16xf32> to vector<16xf32>
    %694 = vector.shape_cast %693 : vector<16xf32> to vector<1x1x16xf32>
    %695 = vector.broadcast %694 : vector<1x1x16xf32> to vector<4x4x16xf32>
    %696 = arith.mulf %662, %695 : vector<4x4x16xf32>
    %697 = arith.addf %691, %696 : vector<4x4x16xf32>
    %698 = vector.extract_strided_slice %663 {offsets = [11, 0], sizes = [1, 16], strides = [1, 1]} : vector<21x16xf32> to vector<1x16xf32>
    %699 = vector.shape_cast %698 : vector<1x16xf32> to vector<16xf32>
    %700 = vector.shape_cast %699 : vector<16xf32> to vector<1x1x16xf32>
    %701 = vector.broadcast %700 : vector<1x1x16xf32> to vector<4x4x16xf32>
    %702 = arith.mulf %662, %701 : vector<4x4x16xf32>
    %cst_234 = arith.constant 0.000000e+00 : f32
    %703 = vector.broadcast %cst_234 : f32 to vector<1x4x16xf32>
    %704 = vector.extract_strided_slice %702 {offsets = [1, 0, 0], sizes = [3, 4, 16], strides = [1, 1, 1]} : vector<4x4x16xf32> to vector<3x4x16xf32>
    %705 = tpu.concatenate %704, %703 in 0 : vector<3x4x16xf32>, vector<1x4x16xf32> -> vector<4x4x16xf32>
    %706 = arith.addf %697, %705 : vector<4x4x16xf32>
    %707 = vector.extract_strided_slice %663 {offsets = [12, 0], sizes = [1, 16], strides = [1, 1]} : vector<21x16xf32> to vector<1x16xf32>
    %708 = vector.shape_cast %707 : vector<1x16xf32> to vector<16xf32>
    %709 = vector.shape_cast %708 : vector<16xf32> to vector<1x1x16xf32>
    %710 = vector.broadcast %709 : vector<1x1x16xf32> to vector<4x4x16xf32>
    %711 = arith.mulf %662, %710 : vector<4x4x16xf32>
    %cst_235 = arith.constant 0.000000e+00 : f32
    %712 = vector.broadcast %cst_235 : f32 to vector<2x4x16xf32>
    %713 = vector.extract_strided_slice %711 {offsets = [2, 0, 0], sizes = [2, 4, 16], strides = [1, 1, 1]} : vector<4x4x16xf32> to vector<2x4x16xf32>
    %714 = tpu.concatenate %713, %712 in 0 : vector<2x4x16xf32>, vector<2x4x16xf32> -> vector<4x4x16xf32>
    %715 = arith.addf %706, %714 : vector<4x4x16xf32>
    %716 = vector.extract_strided_slice %663 {offsets = [13, 0], sizes = [1, 16], strides = [1, 1]} : vector<21x16xf32> to vector<1x16xf32>
    %717 = vector.shape_cast %716 : vector<1x16xf32> to vector<16xf32>
    %718 = vector.shape_cast %717 : vector<16xf32> to vector<1x1x16xf32>
    %719 = vector.broadcast %718 : vector<1x1x16xf32> to vector<4x4x16xf32>
    %720 = arith.mulf %662, %719 : vector<4x4x16xf32>
    %cst_236 = arith.constant 0.000000e+00 : f32
    %721 = vector.broadcast %cst_236 : f32 to vector<3x4x16xf32>
    %722 = vector.extract_strided_slice %720 {offsets = [3, 0, 0], sizes = [1, 4, 16], strides = [1, 1, 1]} : vector<4x4x16xf32> to vector<1x4x16xf32>
    %723 = tpu.concatenate %722, %721 in 0 : vector<1x4x16xf32>, vector<3x4x16xf32> -> vector<4x4x16xf32>
    %724 = arith.addf %715, %723 : vector<4x4x16xf32>
    %725 = vector.shape_cast %665 : vector<16xf32> to vector<1x1x16xf32>
    %726 = vector.broadcast %725 : vector<1x1x16xf32> to vector<4x4x16xf32>
    %727 = arith.addf %724, %726 : vector<4x4x16xf32>
    %728 = arith.addf %597, %727 : vector<4x4x16xf32>
    %729 = vector.shape_cast %728 : vector<4x4x16xf32> to vector<16x16xf32>
    %c1_237 = arith.constant 1 : index
    %c0_238 = arith.constant 0 : index
    %c0_239 = arith.constant 0 : index
    %730 = vector.load %arg6[%c1_237, %c0_238, %c0_239] : memref<3x16x16xbf16, #tpu.memory_space<vmem>>, vector<1x16x16xbf16>
    %731 = vector.shape_cast %730 : vector<1x16x16xbf16> to vector<16x16xbf16>
    %732 = arith.truncf %729 : vector<16x16xf32> to vector<16x16xbf16>
    %cst_240 = arith.constant dense<0.000000e+00> : vector<16x16xf32>
    %733 = tpu.matmul %732, %731, %cst_240 {dimension_numbers = #tpu.dot_dimension_numbers<[1], [0], [0], [1], [0, 0, 1, 1], [], []>} : vector<16x16xbf16>, vector<16x16xbf16>, vector<16x16xf32> -> vector<16x16xf32>
    %734 = vector.extract_strided_slice %105 {offsets = [8, 0], sizes = [1, 16], strides = [1, 1]} : vector<15x16xf32> to vector<1x16xf32>
    %735 = vector.shape_cast %734 : vector<1x16xf32> to vector<16xf32>
    %736 = vector.shape_cast %735 : vector<16xf32> to vector<1x16xf32>
    %737 = vector.broadcast %736 : vector<1x16xf32> to vector<16x16xf32>
    %738 = arith.addf %733, %737 : vector<16x16xf32>
    %739 = arith.mulf %738, %155 : vector<16x16xf32>
    %c2 = arith.constant 2 : index
    %c0_241 = arith.constant 0 : index
    %c0_242 = arith.constant 0 : index
    %740 = vector.load %arg6[%c2, %c0_241, %c0_242] : memref<3x16x16xbf16, #tpu.memory_space<vmem>>, vector<1x16x16xbf16>
    %741 = vector.shape_cast %740 : vector<1x16x16xbf16> to vector<16x16xbf16>
    %742 = arith.truncf %739 : vector<16x16xf32> to vector<16x16xbf16>
    %cst_243 = arith.constant dense<0.000000e+00> : vector<16x16xf32>
    %743 = tpu.matmul %742, %741, %cst_243 {dimension_numbers = #tpu.dot_dimension_numbers<[1], [0], [0], [1], [0, 0, 1, 1], [], []>} : vector<16x16xbf16>, vector<16x16xbf16>, vector<16x16xf32> -> vector<16x16xf32>
    %744 = vector.extract_strided_slice %105 {offsets = [9, 0], sizes = [1, 16], strides = [1, 1]} : vector<15x16xf32> to vector<1x16xf32>
    %745 = vector.shape_cast %744 : vector<1x16xf32> to vector<16xf32>
    %746 = vector.shape_cast %745 : vector<16xf32> to vector<1x16xf32>
    %747 = vector.broadcast %746 : vector<1x16xf32> to vector<16x16xf32>
    %748 = arith.addf %743, %747 : vector<16x16xf32>
    %749 = vector.extract_strided_slice %105 {offsets = [10, 0], sizes = [1, 16], strides = [1, 1]} : vector<15x16xf32> to vector<1x16xf32>
    %750 = vector.shape_cast %749 : vector<1x16xf32> to vector<16xf32>
    %751 = vector.shape_cast %750 : vector<16xf32> to vector<1x16xf32>
    %752 = vector.broadcast %751 : vector<1x16xf32> to vector<16x16xf32>
    %753 = arith.mulf %748, %752 : vector<16x16xf32>
    %754 = arith.addf %102, %753 : vector<16x16xf32>
    %c0_244 = arith.constant 0 : index
    %c0_245 = arith.constant 0 : index
    %755 = vector.load %arg8[%c0_244, %c0_245] : memref<16x32xbf16, #tpu.memory_space<vmem>>, vector<16x32xbf16>
    %756 = arith.truncf %754 : vector<16x16xf32> to vector<16x16xbf16>
    %cst_246 = arith.constant dense<0.000000e+00> : vector<16x32xf32>
    %757 = tpu.matmul %756, %755, %cst_246 {dimension_numbers = #tpu.dot_dimension_numbers<[1], [0], [0], [1], [0, 0, 1, 1], [], []>} : vector<16x16xbf16>, vector<16x32xbf16>, vector<16x32xf32> -> vector<16x32xf32>
    %758 = vector.extract_strided_slice %106 {offsets = [0, 0], sizes = [1, 32], strides = [1, 1]} : vector<2x32xf32> to vector<1x32xf32>
    %759 = vector.shape_cast %758 : vector<1x32xf32> to vector<32xf32>
    %760 = vector.shape_cast %759 : vector<32xf32> to vector<1x32xf32>
    %761 = vector.broadcast %760 : vector<1x32xf32> to vector<16x32xf32>
    %762 = arith.addf %757, %761 : vector<16x32xf32>
    %763 = vector.shape_cast %762 : vector<16x32xf32> to vector<4x4x32xf32>
    %764 = vector.extract_strided_slice %106 {offsets = [1, 0], sizes = [1, 32], strides = [1, 1]} : vector<2x32xf32> to vector<1x32xf32>
    %765 = vector.shape_cast %764 : vector<1x32xf32> to vector<32xf32>
    %cst_247 = arith.constant 0.000000e+00 : f32
    %766 = vector.broadcast %cst_247 : f32 to vector<4x1x32xf32>
    %767 = vector.extract_strided_slice %763 {offsets = [0, 0, 0], sizes = [4, 3, 32], strides = [1, 1, 1]} : vector<4x4x32xf32> to vector<4x3x32xf32>
    %768 = tpu.concatenate %766, %767 in 1 : vector<4x1x32xf32>, vector<4x3x32xf32> -> vector<4x4x32xf32>
    %cst_248 = arith.constant 0.000000e+00 : f32
    %769 = vector.broadcast %cst_248 : f32 to vector<4x1x32xf32>
    %770 = vector.extract_strided_slice %763 {offsets = [0, 1, 0], sizes = [4, 3, 32], strides = [1, 1, 1]} : vector<4x4x32xf32> to vector<4x3x32xf32>
    %771 = tpu.concatenate %770, %769 in 1 : vector<4x3x32xf32>, vector<4x1x32xf32> -> vector<4x4x32xf32>
    %772 = vector.extract_strided_slice %104 {offsets = [0, 0], sizes = [1, 32], strides = [1, 1]} : vector<9x32xf32> to vector<1x32xf32>
    %773 = vector.shape_cast %772 : vector<1x32xf32> to vector<32xf32>
    %774 = vector.shape_cast %773 : vector<32xf32> to vector<1x1x32xf32>
    %775 = vector.broadcast %774 : vector<1x1x32xf32> to vector<4x4x32xf32>
    %776 = arith.mulf %768, %775 : vector<4x4x32xf32>
    %777 = vector.extract_strided_slice %104 {offsets = [1, 0], sizes = [1, 32], strides = [1, 1]} : vector<9x32xf32> to vector<1x32xf32>
    %778 = vector.shape_cast %777 : vector<1x32xf32> to vector<32xf32>
    %779 = vector.shape_cast %778 : vector<32xf32> to vector<1x1x32xf32>
    %780 = vector.broadcast %779 : vector<1x1x32xf32> to vector<4x4x32xf32>
    %781 = arith.mulf %763, %780 : vector<4x4x32xf32>
    %782 = arith.addf %776, %781 : vector<4x4x32xf32>
    %783 = vector.extract_strided_slice %104 {offsets = [2, 0], sizes = [1, 32], strides = [1, 1]} : vector<9x32xf32> to vector<1x32xf32>
    %784 = vector.shape_cast %783 : vector<1x32xf32> to vector<32xf32>
    %785 = vector.shape_cast %784 : vector<32xf32> to vector<1x1x32xf32>
    %786 = vector.broadcast %785 : vector<1x1x32xf32> to vector<4x4x32xf32>
    %787 = arith.mulf %771, %786 : vector<4x4x32xf32>
    %788 = arith.addf %782, %787 : vector<4x4x32xf32>
    %cst_249 = arith.constant 0.000000e+00 : f32
    %789 = vector.broadcast %cst_249 : f32 to vector<1x4x32xf32>
    %790 = vector.extract_strided_slice %788 {offsets = [0, 0, 0], sizes = [3, 4, 32], strides = [1, 1, 1]} : vector<4x4x32xf32> to vector<3x4x32xf32>
    %791 = tpu.concatenate %789, %790 in 0 : vector<1x4x32xf32>, vector<3x4x32xf32> -> vector<4x4x32xf32>
    %792 = vector.extract_strided_slice %104 {offsets = [3, 0], sizes = [1, 32], strides = [1, 1]} : vector<9x32xf32> to vector<1x32xf32>
    %793 = vector.shape_cast %792 : vector<1x32xf32> to vector<32xf32>
    %794 = vector.shape_cast %793 : vector<32xf32> to vector<1x1x32xf32>
    %795 = vector.broadcast %794 : vector<1x1x32xf32> to vector<4x4x32xf32>
    %796 = arith.mulf %768, %795 : vector<4x4x32xf32>
    %797 = vector.extract_strided_slice %104 {offsets = [4, 0], sizes = [1, 32], strides = [1, 1]} : vector<9x32xf32> to vector<1x32xf32>
    %798 = vector.shape_cast %797 : vector<1x32xf32> to vector<32xf32>
    %799 = vector.shape_cast %798 : vector<32xf32> to vector<1x1x32xf32>
    %800 = vector.broadcast %799 : vector<1x1x32xf32> to vector<4x4x32xf32>
    %801 = arith.mulf %763, %800 : vector<4x4x32xf32>
    %802 = arith.addf %796, %801 : vector<4x4x32xf32>
    %803 = vector.extract_strided_slice %104 {offsets = [5, 0], sizes = [1, 32], strides = [1, 1]} : vector<9x32xf32> to vector<1x32xf32>
    %804 = vector.shape_cast %803 : vector<1x32xf32> to vector<32xf32>
    %805 = vector.shape_cast %804 : vector<32xf32> to vector<1x1x32xf32>
    %806 = vector.broadcast %805 : vector<1x1x32xf32> to vector<4x4x32xf32>
    %807 = arith.mulf %771, %806 : vector<4x4x32xf32>
    %808 = arith.addf %802, %807 : vector<4x4x32xf32>
    %809 = arith.addf %791, %808 : vector<4x4x32xf32>
    %810 = vector.extract_strided_slice %104 {offsets = [6, 0], sizes = [1, 32], strides = [1, 1]} : vector<9x32xf32> to vector<1x32xf32>
    %811 = vector.shape_cast %810 : vector<1x32xf32> to vector<32xf32>
    %812 = vector.shape_cast %811 : vector<32xf32> to vector<1x1x32xf32>
    %813 = vector.broadcast %812 : vector<1x1x32xf32> to vector<4x4x32xf32>
    %814 = arith.mulf %768, %813 : vector<4x4x32xf32>
    %815 = vector.extract_strided_slice %104 {offsets = [7, 0], sizes = [1, 32], strides = [1, 1]} : vector<9x32xf32> to vector<1x32xf32>
    %816 = vector.shape_cast %815 : vector<1x32xf32> to vector<32xf32>
    %817 = vector.shape_cast %816 : vector<32xf32> to vector<1x1x32xf32>
    %818 = vector.broadcast %817 : vector<1x1x32xf32> to vector<4x4x32xf32>
    %819 = arith.mulf %763, %818 : vector<4x4x32xf32>
    %820 = arith.addf %814, %819 : vector<4x4x32xf32>
    %821 = vector.extract_strided_slice %104 {offsets = [8, 0], sizes = [1, 32], strides = [1, 1]} : vector<9x32xf32> to vector<1x32xf32>
    %822 = vector.shape_cast %821 : vector<1x32xf32> to vector<32xf32>
    %823 = vector.shape_cast %822 : vector<32xf32> to vector<1x1x32xf32>
    %824 = vector.broadcast %823 : vector<1x1x32xf32> to vector<4x4x32xf32>
    %825 = arith.mulf %771, %824 : vector<4x4x32xf32>
    %826 = arith.addf %820, %825 : vector<4x4x32xf32>
    %cst_250 = arith.constant 0.000000e+00 : f32
    %827 = vector.broadcast %cst_250 : f32 to vector<1x4x32xf32>
    %828 = vector.extract_strided_slice %826 {offsets = [1, 0, 0], sizes = [3, 4, 32], strides = [1, 1, 1]} : vector<4x4x32xf32> to vector<3x4x32xf32>
    %829 = tpu.concatenate %828, %827 in 0 : vector<3x4x32xf32>, vector<1x4x32xf32> -> vector<4x4x32xf32>
    %830 = arith.addf %809, %829 : vector<4x4x32xf32>
    %831 = vector.shape_cast %765 : vector<32xf32> to vector<1x1x32xf32>
    %832 = vector.broadcast %831 : vector<1x1x32xf32> to vector<4x4x32xf32>
    %833 = arith.addf %830, %832 : vector<4x4x32xf32>
    %cst_251 = arith.constant 5.000000e-01 : f32
    %834 = vector.broadcast %cst_251 : f32 to vector<4x4x32xf32>
    %835 = arith.mulf %834, %833 : vector<4x4x32xf32>
    %cst_252 = arith.constant 0.707106769 : f32
    %836 = vector.broadcast %cst_252 : f32 to vector<4x4x32xf32>
    %837 = arith.mulf %833, %836 : vector<4x4x32xf32>
    %838 = math.absf %837 : vector<4x4x32xf32>
    %cst_253 = arith.constant 0.327591091 : f32
    %839 = vector.broadcast %cst_253 : f32 to vector<4x4x32xf32>
    %840 = arith.mulf %839, %838 : vector<4x4x32xf32>
    %cst_254 = arith.constant 1.000000e+00 : f32
    %841 = vector.broadcast %cst_254 : f32 to vector<4x4x32xf32>
    %842 = arith.addf %841, %840 : vector<4x4x32xf32>
    %cst_255 = arith.constant 1.000000e+00 : f32
    %843 = vector.broadcast %cst_255 : f32 to vector<4x4x32xf32>
    %844 = arith.divf %843, %842 : vector<4x4x32xf32>
    %cst_256 = arith.constant 1.06140542 : f32
    %845 = vector.broadcast %cst_256 : f32 to vector<4x4x32xf32>
    %846 = arith.mulf %844, %845 : vector<4x4x32xf32>
    %cst_257 = arith.constant -1.45315206 : f32
    %847 = vector.broadcast %cst_257 : f32 to vector<4x4x32xf32>
    %848 = arith.addf %847, %846 : vector<4x4x32xf32>
    %849 = arith.mulf %844, %848 : vector<4x4x32xf32>
    %cst_258 = arith.constant 1.42141378 : f32
    %850 = vector.broadcast %cst_258 : f32 to vector<4x4x32xf32>
    %851 = arith.addf %850, %849 : vector<4x4x32xf32>
    %852 = arith.mulf %844, %851 : vector<4x4x32xf32>
    %cst_259 = arith.constant -0.284496725 : f32
    %853 = vector.broadcast %cst_259 : f32 to vector<4x4x32xf32>
    %854 = arith.addf %853, %852 : vector<4x4x32xf32>
    %855 = arith.mulf %844, %854 : vector<4x4x32xf32>
    %cst_260 = arith.constant 0.254829586 : f32
    %856 = vector.broadcast %cst_260 : f32 to vector<4x4x32xf32>
    %857 = arith.addf %856, %855 : vector<4x4x32xf32>
    %858 = arith.mulf %844, %857 : vector<4x4x32xf32>
    %cst_261 = arith.constant 0.000000e+00 : f32
    %859 = vector.broadcast %cst_261 : f32 to vector<4x4x32xf32>
    %860 = arith.subf %859, %838 : vector<4x4x32xf32>
    %861 = arith.mulf %860, %838 : vector<4x4x32xf32>
    %862 = math.exp %861 : vector<4x4x32xf32>
    %863 = arith.mulf %858, %862 : vector<4x4x32xf32>
    %cst_262 = arith.constant 1.000000e+00 : f32
    %864 = vector.broadcast %cst_262 : f32 to vector<4x4x32xf32>
    %865 = arith.subf %864, %863 : vector<4x4x32xf32>
    %cst_263 = arith.constant 0.000000e+00 : f32
    %866 = vector.broadcast %cst_263 : f32 to vector<4x4x32xf32>
    %867 = arith.cmpf oge, %837, %866 : vector<4x4x32xf32>
    %cst_264 = arith.constant 0.000000e+00 : f32
    %868 = vector.broadcast %cst_264 : f32 to vector<4x4x32xf32>
    %869 = arith.subf %868, %865 : vector<4x4x32xf32>
    %870 = arith.select %867, %865, %869 : vector<4x4x32xi1>, vector<4x4x32xf32>
    %cst_265 = arith.constant 1.000000e+00 : f32
    %871 = vector.broadcast %cst_265 : f32 to vector<4x4x32xf32>
    %872 = arith.addf %871, %870 : vector<4x4x32xf32>
    %873 = arith.mulf %835, %872 : vector<4x4x32xf32>
    %874 = vector.shape_cast %873 : vector<4x4x32xf32> to vector<16x32xf32>
    %c0_266 = arith.constant 0 : index
    %c0_267 = arith.constant 0 : index
    %875 = vector.load %arg10[%c0_266, %c0_267] : memref<32x16xbf16, #tpu.memory_space<vmem>>, vector<32x16xbf16>
    %876 = arith.truncf %874 : vector<16x32xf32> to vector<16x32xbf16>
    %cst_268 = arith.constant dense<0.000000e+00> : vector<16x16xf32>
    %877 = tpu.matmul %876, %875, %cst_268 {dimension_numbers = #tpu.dot_dimension_numbers<[1], [0], [0], [1], [0, 0, 1, 1], [], []>} : vector<16x32xbf16>, vector<32x16xbf16>, vector<16x16xf32> -> vector<16x16xf32>
    %878 = vector.extract_strided_slice %105 {offsets = [11, 0], sizes = [1, 16], strides = [1, 1]} : vector<15x16xf32> to vector<1x16xf32>
    %879 = vector.shape_cast %878 : vector<1x16xf32> to vector<16xf32>
    %880 = vector.shape_cast %879 : vector<16xf32> to vector<1x16xf32>
    %881 = vector.broadcast %880 : vector<1x16xf32> to vector<16x16xf32>
    %882 = arith.addf %877, %881 : vector<16x16xf32>
    %883 = vector.extract_strided_slice %105 {offsets = [12, 0], sizes = [1, 16], strides = [1, 1]} : vector<15x16xf32> to vector<1x16xf32>
    %884 = vector.shape_cast %883 : vector<1x16xf32> to vector<16xf32>
    %885 = vector.shape_cast %884 : vector<16xf32> to vector<1x16xf32>
    %886 = vector.broadcast %885 : vector<1x16xf32> to vector<16x16xf32>
    %887 = arith.mulf %882, %886 : vector<16x16xf32>
    %888 = arith.addf %754, %887 : vector<16x16xf32>
    %cst_269 = arith.constant dense<0.000000e+00> : vector<16xf32>
    %889 = vector.multi_reduction <add>, %888, %cst_269 [1] : vector<16x16xf32> to vector<16xf32>
    %890 = vector.shape_cast %889 : vector<16xf32> to vector<16x1xf32>
    %cst_270 = arith.constant 1.600000e+01 : f32
    %891 = vector.broadcast %cst_270 : f32 to vector<16x1xf32>
    %892 = arith.divf %890, %891 : vector<16x1xf32>
    %893 = vector.broadcast %892 : vector<16x1xf32> to vector<16x16xf32>
    %894 = arith.subf %888, %893 : vector<16x16xf32>
    %895 = arith.mulf %894, %894 : vector<16x16xf32>
    %cst_271 = arith.constant dense<0.000000e+00> : vector<16xf32>
    %896 = vector.multi_reduction <add>, %895, %cst_271 [1] : vector<16x16xf32> to vector<16xf32>
    %897 = vector.shape_cast %896 : vector<16xf32> to vector<16x1xf32>
    %cst_272 = arith.constant 1.600000e+01 : f32
    %898 = vector.broadcast %cst_272 : f32 to vector<16x1xf32>
    %899 = arith.divf %897, %898 : vector<16x1xf32>
    %cst_273 = arith.constant 9.99999974E-6 : f32
    %900 = vector.broadcast %cst_273 : f32 to vector<16x1xf32>
    %901 = arith.addf %899, %900 : vector<16x1xf32>
    %902 = math.rsqrt %901 : vector<16x1xf32>
    %903 = vector.broadcast %902 : vector<16x1xf32> to vector<16x16xf32>
    %904 = arith.mulf %894, %903 : vector<16x16xf32>
    %905 = vector.extract_strided_slice %105 {offsets = [13, 0], sizes = [1, 16], strides = [1, 1]} : vector<15x16xf32> to vector<1x16xf32>
    %906 = vector.shape_cast %905 : vector<1x16xf32> to vector<16xf32>
    %907 = vector.shape_cast %906 : vector<16xf32> to vector<1x16xf32>
    %908 = vector.broadcast %907 : vector<1x16xf32> to vector<16x16xf32>
    %909 = arith.mulf %904, %908 : vector<16x16xf32>
    %910 = vector.extract_strided_slice %105 {offsets = [14, 0], sizes = [1, 16], strides = [1, 1]} : vector<15x16xf32> to vector<1x16xf32>
    %911 = vector.shape_cast %910 : vector<1x16xf32> to vector<16xf32>
    %912 = vector.shape_cast %911 : vector<16xf32> to vector<1x16xf32>
    %913 = vector.broadcast %912 : vector<1x16xf32> to vector<16x16xf32>
    %914 = arith.addf %909, %913 : vector<16x16xf32>
    %915 = vector.extract_strided_slice %914 {offsets = [0, 0], sizes = [2, 16], strides = [1, 1]} : vector<16x16xf32> to vector<2x16xf32>
    %916 = vector.extract_strided_slice %914 {offsets = [2, 0], sizes = [2, 16], strides = [1, 1]} : vector<16x16xf32> to vector<2x16xf32>
    %917 = vector.extract_strided_slice %914 {offsets = [4, 0], sizes = [2, 16], strides = [1, 1]} : vector<16x16xf32> to vector<2x16xf32>
    %918 = vector.extract_strided_slice %914 {offsets = [6, 0], sizes = [2, 16], strides = [1, 1]} : vector<16x16xf32> to vector<2x16xf32>
    %919 = vector.extract_strided_slice %914 {offsets = [8, 0], sizes = [2, 16], strides = [1, 1]} : vector<16x16xf32> to vector<2x16xf32>
    %920 = vector.extract_strided_slice %914 {offsets = [10, 0], sizes = [2, 16], strides = [1, 1]} : vector<16x16xf32> to vector<2x16xf32>
    %921 = vector.extract_strided_slice %914 {offsets = [12, 0], sizes = [2, 16], strides = [1, 1]} : vector<16x16xf32> to vector<2x16xf32>
    %922 = vector.extract_strided_slice %914 {offsets = [14, 0], sizes = [2, 16], strides = [1, 1]} : vector<16x16xf32> to vector<2x16xf32>
    %923 = tpu.concatenate %915, %916, %917, %918, %919, %920, %921, %922 in 1 : vector<2x16xf32>, vector<2x16xf32>, vector<2x16xf32>, vector<2x16xf32>, vector<2x16xf32>, vector<2x16xf32>, vector<2x16xf32>, vector<2x16xf32> -> vector<2x128xf32>
    %c0_274 = arith.constant 0 : index
    %c0_275 = arith.constant 0 : index
    %c0_276 = arith.constant 0 : index
    %924 = vector.load %arg13[%c0_274, %c0_275, %c0_276] : memref<1x2x128xf32, #tpu.memory_space<vmem>>, vector<1x2x128xf32>
    %925 = vector.shape_cast %924 : vector<1x2x128xf32> to vector<2x128xf32>
    %926 = vector.shape_cast %923 : vector<2x128xf32> to vector<1x2x128xf32>
    tpu.vector_store %arg13[%c0_274, %c0_275, %c0_276], %926 {strides = array<i32>} : memref<1x2x128xf32, #tpu.memory_space<vmem>>, vector<1x2x128xf32>,
    return
  }
  func.func @transform_0(%arg0: i32) -> (i32, i32, i32, i32, i32) {
    %c0_i32 = arith.constant 0 : i32
    %c0_i32_0 = arith.constant 0 : i32
    %c0_i32_1 = arith.constant 0 : i32
    %c0_i32_2 = arith.constant 0 : i32
    %c0_i32_3 = arith.constant 0 : i32
    return %arg0, %c0_i32, %c0_i32_0, %c0_i32_1, %c0_i32_2 : i32, i32, i32, i32, i32
  }
  func.func @transform_1(%arg0: i32) -> (i32, i32) {
    %c0_i32 = arith.constant 0 : i32
    %c0_i32_0 = arith.constant 0 : i32
    %c0_i32_1 = arith.constant 0 : i32
    return %c0_i32, %c0_i32_0 : i32, i32
  }
  func.func @transform_2(%arg0: i32) -> (i32, i32) {
    %c0_i32 = arith.constant 0 : i32
    %c0_i32_0 = arith.constant 0 : i32
    %c0_i32_1 = arith.constant 0 : i32
    return %c0_i32, %c0_i32_0 : i32, i32
  }
  func.func @transform_3(%arg0: i32) -> (i32, i32) {
    %c0_i32 = arith.constant 0 : i32
    %c0_i32_0 = arith.constant 0 : i32
    %c0_i32_1 = arith.constant 0 : i32
    return %c0_i32, %c0_i32_0 : i32, i32
  }
  func.func @transform_4(%arg0: i32) -> (i32, i32) {
    %c0_i32 = arith.constant 0 : i32
    %c0_i32_0 = arith.constant 0 : i32
    %c0_i32_1 = arith.constant 0 : i32
    return %c0_i32, %c0_i32_0 : i32, i32
  }
  func.func @transform_5(%arg0: i32) -> (i32, i32, i32) {
    %c0_i32 = arith.constant 0 : i32
    %c0_i32_0 = arith.constant 0 : i32
    %c0_i32_1 = arith.constant 0 : i32
    %c0_i32_2 = arith.constant 0 : i32
    return %c0_i32, %c0_i32_0, %c0_i32_1 : i32, i32, i32
  }
  func.func @transform_6(%arg0: i32) -> (i32, i32) {
    %c0_i32 = arith.constant 0 : i32
    %c0_i32_0 = arith.constant 0 : i32
    %c0_i32_1 = arith.constant 0 : i32
    return %c0_i32, %c0_i32_0 : i32, i32
  }
  func.func @transform_7(%arg0: i32) -> (i32, i32) {
    %c0_i32 = arith.constant 0 : i32
    %c0_i32_0 = arith.constant 0 : i32
    %c0_i32_1 = arith.constant 0 : i32
    return %c0_i32, %c0_i32_0 : i32, i32
  }
  func.func @transform_8(%arg0: i32) -> (i32, i32) {
    %c0_i32 = arith.constant 0 : i32
    %c0_i32_0 = arith.constant 0 : i32
    %c0_i32_1 = arith.constant 0 : i32
    return %c0_i32, %c0_i32_0 : i32, i32
  }
  func.func @transform_9(%arg0: i32) -> (i32, i32) {
    %c0_i32 = arith.constant 0 : i32
    %c0_i32_0 = arith.constant 0 : i32
    %c0_i32_1 = arith.constant 0 : i32
    return %c0_i32, %c0_i32_0 : i32, i32
  }
  func.func @transform_10(%arg0: i32) -> (i32, i32) {
    %c0_i32 = arith.constant 0 : i32
    %c0_i32_0 = arith.constant 0 : i32
    %c0_i32_1 = arith.constant 0 : i32
    return %c0_i32, %c0_i32_0 : i32, i32
  }
  func.func @transform_11(%arg0: i32) -> (i32, i32) {
    %c0_i32 = arith.constant 0 : i32
    %c0_i32_0 = arith.constant 0 : i32
    %c0_i32_1 = arith.constant 0 : i32
    return %c0_i32, %c0_i32_0 : i32, i32
  }
  func.func @transform_12(%arg0: i32) -> (i32, i32, i32) {
    %c0_i32 = arith.constant 0 : i32
    %c0_i32_0 = arith.constant 0 : i32
    %c0_i32_1 = arith.constant 0 : i32
    return %arg0, %c0_i32, %c0_i32_0 : i32, i32, i32
  }
}

</mosaic_0001>

<bundles_post_ra>
// kernel: stage_forward.1
= control target key start
LH: loop header
LB: loop body
LE: loop exit
PB: predicated region body
PF: predicated region fallthrough
CT: control target
= control target key end

     0   :  { %s4004_s21 = smov 0   ;;  %s5637_s0 = inlined_call_operand.vmem [shape: f32[2,8,2,8,8], index: 0, kind: input, shape index: {}]   ;;  %s5638_s1 = inlined_call_operand.vmem [shape: bf16[36,8], index: 1, kind: input, shape index: {}]   ;;  %s5639_s2 = inlined_call_operand.vmem [shape: f32[1,8], index: 2, kind: input, shape index: {}]   ;;  %s5640_s3 = inlined_call_operand.vmem [shape: bf16[72,16], index: 3, kind: input, shape index: {}]   ;;  %s5641_s4 = inlined_call_operand.vmem [shape: f32[1,16], index: 4, kind: input, shape index: {}]   ;;  %s5642_s5 = inlined_call_operand.vmem [shape: bf16[3,16,16], index: 5, kind: input, shape index: {}]   ;;  %s5643_s6 = inlined_call_operand.vmem [shape: f32[103,16], index: 6, kind: input, shape index: {}]   ;;  %s5644_s7 = inlined_call_operand.vmem [shape: bf16[16,32], index: 7, kind: input, shape index: {}]   ;;  %s5645_s8 = inlined_call_operand.vmem [shape: f32[9,32], index: 8, kind: input, shape index: {}]   ;;  %s5646_s9 = inlined_call_operand.vmem [shape: bf16[32,16], index: 9, kind: input, shape index: {}]   ;;  %s5647_s10 = inlined_call_operand.vmem [shape: f32[15,16], index: 10, kind: input, shape index: {}]   ;;  %s5648_s11 = inlined_call_operand.vmem [shape: f32[2,32], index: 11, kind: input, shape index: {}]   ;;  %s5649_s12 = inlined_call_operand.vmem [shape: f32[2,2,128], index: 12, kind: output, shape index: {}]  }
   0x1 LB: > { %s3555_s22 = sadd.s32 4294967295, %s3918_s21   ;;  %p3559_p0 = scmp.ge.s32.totalorder %s3918_s21, 1  ;;  %s3918_s21 = sphi %s4004_s21, %s22_s21  }
   0x2   : > { %p362_p1 = scmp.lt.s32.totalorder %s3918_s21, 3 }
   0x4   : > { %p363_p2 = pnand %p3559_p0, %p362_p1 }
   0x6   : > { %366 = sbr.rel (%p363_p2) target bundleno = 2716 (0xa9c), region = 68 }
   0xd   : > { %p4014_p3 = scmp.lt.s32.totalorder %s3555_s22, 1  ;;  %vm429_vm0 = vcmask 31744   ;;  %vm431_vm1 = vcmask 24576   ;;  %v5650_v0 = vmov 0.0   ;;  %s3921_s28 = smov 124   ;;  %v3869_v60 = vld [vmem:[%s5638_s1] sm:$0xff]  }
   0xe   : > { %435 = vst.msk [vmem:[#allocation2 + $0x120] sm:$0xff] %vm429_vm0, %v5650_v0  ;;  %437 = vst.msk [vmem:[#allocation2 + $0x1b0] sm:$0xff] %vm429_vm0, %v5650_v0  ;;  %3635 = vmatprep.subr.bf16.mxu1 %v5650_v0  ;;  %s3922_s29 = smov 4   ;;  %s3923_s30 = smov 16   ;;  %3621 = vmatprep.subr.bf16.mxu0 %v3869_v60  ;;  %vm1020_vm2 = vcmask 1041408   ;;  %vm913_vm3 = vcmask 64512  }
   0xf   : > { %436 = vst.msk [vmem:[#allocation2 + $0x128] sm:$0x1] %vm431_vm1, %v5650_v0  ;;  %438 = vst.msk [vmem:[#allocation2 + $0x1b8] sm:$0x1] %vm431_vm1, %v5650_v0  ;;  %s5835_s22 = smov (!%p4014_p3, %s3555_s22), 1  ;;  %s3924_s13 = smov 28   ;;  %3622 = vmatpush3.bf16.msra.mxu0 %v3869_v60 }
  0x10   : > { %449 = vst.msk [vmem:[#allocation2 + $0xa0] sm:$0x1] %vm431_vm1, %v5650_v0  ;;  %450 = vst.msk [vmem:[#allocation2 + $0xb0] sm:$0x1] %vm431_vm1, %v5650_v0  ;;  %s3596_s24 = sshll.u32 %s5835_s22, 7  ;;  %s3925_s14 = smov 8  }
  0x11   : > { %451 = vst.msk [vmem:[#allocation2 + $0xc0] sm:$0x1] %vm431_vm1, %v5650_v0  ;;  %452 = vst.msk [vmem:[#allocation2 + $0xd0] sm:$0x1] %vm431_vm1, %v5650_v0  ;;  %s4071_s27 = scalar_lea.vmem %s5637_s0, %s3596_s24  ;;  %s3926_s17 = smov 12   ;;  %vm922_vm4 = vcmask 97280  }
  0x12   : > { %453 = vst.msk [vmem:[#allocation2 + $0xe0] sm:$0x1] %vm431_vm1, %v5650_v0  ;;  %454 = vst.msk [vmem:[#allocation2 + $0xf0] sm:$0x1] %vm431_vm1, %v5650_v0  ;;  %v415_v1 = vld [vmem:[%s4071_s27 + $0x10] sm:$0xff]  ;;  %v414_v2 = vld [vmem:[%s4071_s27 + $0x8] sm:$0xff] }
  0x13   : > { %455 = vst.msk [vmem:[#allocation2 + $0x100] sm:$0x1] %vm431_vm1, %v5650_v0  ;;  %456 = vst.msk [vmem:[#allocation2 + $0x110] sm:$0x1] %vm431_vm1, %v5650_v0  ;;  %v416_v3 = vld [vmem:[%s4071_s27 + $0x18] sm:$0xff]  ;;  %494 = vrot.lane.b32.xlu1 %v415_v1, %s3921_s28  ;;  %542 = vrot.lane.b32.xlu0 %v414_v2, %s3921_s28  ;;  %v413_v4 = vld [vmem:[%s4071_s27] sm:$0xff] }
  0x14   : > { %467 = vst.msk [vmem:[#allocation2 + $0x1c0] sm:$0x1] %vm431_vm1, %v5650_v0  ;;  %468 = vst.msk [vmem:[#allocation2 + $0x1d0] sm:$0x1] %vm431_vm1, %v5650_v0  ;;  %v417_v5 = vld [vmem:[%s4071_s27 + $0x20] sm:$0xff]  ;;  %v418_v6 = vld [vmem:[%s4071_s27 + $0x28] sm:$0xff] }
  0x15   : > { %469 = vst.msk [vmem:[#allocation2 + $0x1e0] sm:$0x1] %vm431_vm1, %v5650_v0  ;;  %470 = vst.msk [vmem:[#allocation2 + $0x1f0] sm:$0x1] %vm431_vm1, %v5650_v0  ;;  %v420_v7 = vld [vmem:[%s4071_s27 + $0x38] sm:$0xff]  ;;  %v419_v8 = vld [vmem:[%s4071_s27 + $0x30] sm:$0xff] }
  0x16   : > { %471 = vst.msk [vmem:[#allocation2 + $0x200] sm:$0x1] %vm431_vm1, %v5650_v0  ;;  %472 = vst.msk [vmem:[#allocation2 + $0x210] sm:$0x1] %vm431_vm1, %v5650_v0  ;;  %v421_v9 = vld [vmem:[%s4071_s27 + $0x40] sm:$0xff]  ;;  %v422_v10 = vld [vmem:[%s4071_s27 + $0x48] sm:$0xff] }
  0x17   : > { %473 = vst.msk [vmem:[#allocation2 + $0x220] sm:$0x1] %vm431_vm1, %v5650_v0  ;;  %474 = vst.msk [vmem:[#allocation2 + $0x230] sm:$0x1] %vm431_vm1, %v5650_v0  ;;  %v424_v11 = vld [vmem:[%s4071_s27 + $0x58] sm:$0xff]  ;;  %v423_v12 = vld [vmem:[%s4071_s27 + $0x50] sm:$0xff]  ;;  %544 = vrot.lane.b32.xlu1 %v416_v3, %s3921_s28  ;;  %492 = vrot.lane.b32.xlu0 %v413_v4, %s3921_s28 }
  0x18   : > { %466 = vst.msk [vmem:[#allocation2 + $0x1b0] sm:$0x1] %vm431_vm1, %v5650_v0  ;;  %v425_v13 = vld [vmem:[%s4071_s27 + $0x60] sm:$0xff]  ;;  %v426_v14 = vld [vmem:[%s4071_s27 + $0x68] sm:$0xff]  ;;  %v428_v15 = vld [vmem:[%s4071_s27 + $0x78] sm:$0xff]  ;;  %s3927_s20 = smov 20  }
  0x19   : > { %477 = vst.msk [vmem:[#allocation2 + $0x21] sm:$0xff] %vm429_vm0, %v415_v1  ;;  %526 = vst.msk [vmem:[#allocation2 + $0x131] sm:$0xff] %vm429_vm0, %v414_v2  ;;  %v427_v16 = vld [vmem:[%s4071_s27 + $0x70] sm:$0xff]  ;;  %v585_v17 = vld [vmem:[#allocation2 + $0x121] sm:$0xff]  ;;  %s3928_s25 = smov 24   ;;  %s3929_s26 = smov 32  }
  0x1a   : > { %527 = vst.msk [vmem:[#allocation2 + $0x141] sm:$0xff] %vm429_vm0, %v416_v3  ;;  %476 = vst.msk [vmem:[#allocation2 + $0x11] sm:$0xff] %vm429_vm0, %v413_v4  ;;  %v593_v50 = vld [vmem:[#allocation2 + $0x1b1] sm:$0xff]  ;;  %vm931_vm5 = vcmask 130048   ;;  %vm940_vm6 = vcmask 162816   ;;  %vm949_vm7 = vcmask 195584  }
  0x1b   : > { %478 = vst.msk [vmem:[#allocation2 + $0x31] sm:$0xff] %vm429_vm0, %v417_v5  ;;  %528 = vst.msk [vmem:[#allocation2 + $0x151] sm:$0xff] %vm429_vm0, %v418_v6  ;;  %496 = vrot.lane.b32.xlu1 %v417_v5, %s3921_s28  ;;  %546 = vrot.lane.b32.xlu0 %v418_v6, %s3921_s28  ;;  %v3870_v6 = vld [vmem:[%s5638_s1 + $0x8] sm:$0xff]   ;;  %vm958_vm8 = vcmask 228352   ;;  %vm967_vm9 = vcmask 261120   ;;  %vm1007_vm10 = vcmask 293888  }
  0x1c   : > { %529 = vst.msk [vmem:[#allocation2 + $0x161] sm:$0xff] %vm429_vm0, %v420_v7  ;;  %479 = vst.msk [vmem:[#allocation2 + $0x41] sm:$0xff] %vm429_vm0, %v419_v8  ;;  %3623 = vmatprep.subr.bf16.mxu0 %v3870_v6  ;;  %vm1233_vm11 = vcmask 61440   ;;  %vm1238_vm12 = vcmask 57344   ;;  %vm1323_vm13 = vcmask 1041409   ;;  %vm1325_vm14 = vcmask 1042434  }
  0x1d   : > { %480 = vst.msk [vmem:[#allocation2 + $0x51] sm:$0xff] %vm429_vm0, %v421_v9  ;;  %530 = vst.msk [vmem:[#allocation2 + $0x171] sm:$0xff] %vm429_vm0, %v422_v10  ;;  %3624 = vmatpush3.bf16.msra.mxu0 %v3870_v6  ;;  %vm1327_vm15 = vcmask 1043459   ;;  %vm1414_vm1 = vcmask 1044484   ;;  %s3933_s15 = smov 56   ;;  %s3934_s16 = smov 64  }
  0x1e   : > { %531 = vst.msk [vmem:[#allocation2 + $0x181] sm:$0xff] %vm429_vm0, %v424_v11  ;;  %481 = vst.msk [vmem:[#allocation2 + $0x61] sm:$0xff] %vm429_vm0, %v423_v12 }
  0x1f   : > { %482 = vst.msk [vmem:[#allocation2 + $0x71] sm:$0xff] %vm429_vm0, %v425_v13  ;;  %532 = vst.msk [vmem:[#allocation2 + $0x191] sm:$0xff] %vm429_vm0, %v426_v14  ;;  %548 = vrot.lane.b32.xlu1 %v420_v7, %s3921_s28  ;;  %498 = vrot.lane.b32.xlu0 %v419_v8, %s3921_s28 }
  0x20   : > { %533 = vst.msk [vmem:[#allocation2 + $0x1a1] sm:$0xff] %vm429_vm0, %v428_v15  ;;  %483 = vst.msk [vmem:[#allocation2 + $0x81] sm:$0xff] %vm429_vm0, %v427_v16  ;;  %v586_v20 = vld [vmem:[#allocation2 + $0x131] sm:$0xff]  ;;  %v610_v23 = vld [vmem:[#allocation2 + $0x21] sm:$0xff] }
  0x21   : > { %v587_v18 = vld [vmem:[#allocation2 + $0x141] sm:$0xff]  ;;  %v3709_v22 = vpack.i.bf16 %v586_v20, %v585_v17  ;;  %v609_v26 = vld [vmem:[#allocation2 + $0x11] sm:$0xff]  ;;  %1236 = vst.msk [vmem:[#allocation3 + $0x50] sm:$0x1f] %vm1233_vm11, %v5650_v0  ;;  %1237 = vst.msk [vmem:[#allocation3 + $0x78] sm:$0x1f] %vm1233_vm11, %v5650_v0 }
  0x22   : > { %v588_v19 = vld [vmem:[#allocation2 + $0x151] sm:$0xff]  ;;  %v3719_v28 = vpack.i.bf16 %v610_v23, %v609_v26  ;;  %v3729_v31 = vpack.i.bf16 %v587_v18, %v586_v20  ;;  %1245 = vst.msk [vmem:[#allocation3 + $0x30] sm:$0x1] %vm1238_vm12, %v5650_v0  ;;  %1246 = vst.msk [vmem:[#allocation3 + $0x38] sm:$0x1] %vm1238_vm12, %v5650_v0  ;;  %vm1792_vm11 = vcmask 392192  }
  0x23   : > { %500 = vrot.lane.b32.xlu1 %v421_v9, %s3921_s28  ;;  %550 = vrot.lane.b32.xlu0 %v422_v10, %s3921_s28  ;;  %v3714_v21 = vpack.i.bf16 %v588_v19, %v587_v18  ;;  %v611_v24 = vld [vmem:[#allocation2 + $0x31] sm:$0xff]  ;;  %v612_v25 = vld [vmem:[#allocation2 + $0x41] sm:$0xff]  ;;  %1247 = vst.msk [vmem:[#allocation3 + $0x40] sm:$0x1] %vm1238_vm12, %v5650_v0  ;;  %1248 = vst.msk [vmem:[#allocation3 + $0x48] sm:$0x1] %vm1238_vm12, %v5650_v0 }
  0x24   : > { %v3724_v27 = vpack.i.bf16 %v612_v25, %v611_v24  ;;  %v636_v29 = vld [vmem:[#allocation2 + $0x161] sm:$0xff]  ;;  %v590_v32 = vld [vmem:[#allocation2 + $0x171] sm:$0xff]  ;;  %1255 = vst.msk [vmem:[#allocation3 + $0x80] sm:$0x1] %vm1238_vm12, %v5650_v0  ;;  %1256 = vst.msk [vmem:[#allocation3 + $0x88] sm:$0x1] %vm1238_vm12, %v5650_v0 }
  0x25   : > { %v3734_v30 = vpack.i.bf16 %v636_v29, %v588_v19  ;;  %v613_v33 = vld [vmem:[#allocation2 + $0x51] sm:$0xff]  ;;  %v614_v34 = vld [vmem:[#allocation2 + $0x61] sm:$0xff]  ;;  %v3739_v35 = vpack.i.bf16 %v590_v32, %v636_v29  ;;  %1257 = vst.msk [vmem:[#allocation3 + $0x90] sm:$0x1] %vm1238_vm12, %v5650_v0  ;;  %1258 = vst.msk [vmem:[#allocation3 + $0x98] sm:$0x1] %vm1238_vm12, %v5650_v0 }
  0x26   : > { %v3749_v36 = vpack.i.bf16 %v614_v34, %v613_v33  ;;  %v591_v37 = vld [vmem:[#allocation2 + $0x181] sm:$0xff]  ;;  %v592_v38 = vld [vmem:[#allocation2 + $0x191] sm:$0xff]  ;;  %1254 = vst.msk [vmem:[#allocation3 + $0x78] sm:$0x1] %vm1238_vm12, %v5650_v0  ;;  %vm1797_vm12 = vcmask 457728  }
  0x27   : > { %552 = vrot.lane.b32.xlu1 %v424_v11, %s3921_s28  ;;  %502 = vrot.lane.b32.xlu0 %v423_v12, %s3921_s28  ;;  %v3744_v39 = vpack.i.bf16 %v592_v38, %v591_v37  ;;  %v3759_v40 = vpack.i.bf16 %v591_v37, %v590_v32  ;;  %v615_v41 = vld [vmem:[#allocation2 + $0x71] sm:$0xff]  ;;  %v616_v42 = vld [vmem:[#allocation2 + $0x81] sm:$0xff] }
  0x28   : > { %v3754_v43 = vpack.i.bf16 %v616_v42, %v615_v41  ;;  %v640_v44 = vld [vmem:[#allocation2 + $0x1a1] sm:$0xff] }
  0x29   : > { %v3764_v45 = vpack.i.bf16 %v640_v44, %v592_v38 }
  0x2b   : > { %504 = vrot.lane.b32.xlu1 %v425_v13, %s3921_s28  ;;  %554 = vrot.lane.b32.xlu0 %v426_v14, %s3921_s28 }
  0x2f   : > { %556 = vrot.lane.b32.xlu1 %v428_v15, %s3921_s28  ;;  %506 = vrot.lane.b32.xlu0 %v427_v16, %s3921_s28  ;;  %v3871_v15 = vld [vmem:[%s5638_s1 + $0x10] ss:$0 sps:$4 sm:$0x33]  }
  0x30   : > { %v1022_v18 = vsel %vm1020_vm2, %v3871_v15, 0  ;;  %3681 = vmatprep.subr.msk.bf16.mxu0 %vm1020_vm2, %v3871_v15 }
  0x31   : > { %3626 = vmatpush3.bf16.msra.mxu0 %v1022_v18 }
  0x32   : > { %3649 = vmatprep.subr.bf16.mxu0 %v5650_v0 }
  0x33   : > { %3715 = vrot.lane.b32.xlu1 %v3714_v21, %s3922_s29  ;;  %3710 = vrot.lane.b32.xlu0 %v3709_v22, %s3922_s29 }
  0x37   : > { %3725 = vrot.lane.b32.xlu1 %v3724_v27, %s3923_s30  ;;  %3720 = vrot.lane.b32.xlu0 %v3719_v28, %s3923_s30 }
  0x3b   : > { %3735 = vrot.lane.b32.xlu1 %v3734_v30, %s3924_s13  ;;  %3730 = vrot.lane.b32.xlu0 %v3729_v31, %s3924_s13 }
  0x3f   : > { %3740 = vrot.lane.b32.xlu1 %v3739_v35, %s3922_s29  ;;  %3750 = vrot.lane.b32.xlu0 %v3749_v36, %s3923_s30 }
  0x43   : > { %3745 = vrot.lane.b32.xlu1 %v3744_v39, %s3922_s29  ;;  %3760 = vrot.lane.b32.xlu0 %v3759_v40, %s3924_s13  ;;  %s3931_s29 = smov 40  }
  0x47   : > { %3755 = vrot.lane.b32.xlu1 %v3754_v43, %s3923_s30 }
  0x4b   : > { %3765 = vrot.lane.b32.xlu1 %v3764_v45, %s3924_s13  ;;  %s3932_s13 = smov 48  }
  0x85   : > { %v495_v46 = vpop.permute.xlu1 %494  ;;  %v543_v47 = vpop.permute.xlu0 %542 }
  0x86   : > { %518 = vst.msk [vmem:[#allocation2 + $0xb1] sm:$0xff] %vm429_vm0, %v495_v46  ;;  %567 = vst.msk [vmem:[#allocation2 + $0x1c1] sm:$0xff] %vm429_vm0, %v543_v47 }
  0x89   : > { %v545_v48 = vpop.permute.xlu1 %544  ;;  %v493_v49 = vpop.permute.xlu0 %492 }
  0x8a   : > { %568 = vst.msk [vmem:[#allocation2 + $0x1d1] sm:$0xff] %vm429_vm0, %v545_v48  ;;  %517 = vst.msk [vmem:[#allocation2 + $0xa1] sm:$0xff] %vm429_vm0, %v493_v49 }
  0x8d   : > { %v497_v51 = vpop.permute.xlu1 %496  ;;  %v547_v52 = vpop.permute.xlu0 %546  ;;  %v4129_v53 = vld [vmem:[#allocation2 + $0x1c1] sm:$0xff]  ;;  %v602_v55 = vld [vmem:[#allocation2 + $0xb0] sm:$0xff] }
  0x8e   : > { %519 = vst.msk [vmem:[#allocation2 + $0xc1] sm:$0xff] %vm429_vm0, %v497_v51  ;;  %569 = vst.msk [vmem:[#allocation2 + $0x1e1] sm:$0xff] %vm429_vm0, %v547_v52  ;;  %v3769_v54 = vpack.i.bf16 %v4129_v53, %v593_v50  ;;  %v618_v62 = vld [vmem:[#allocation2 + $0xb1] sm:$0xff]  ;;  %v4150_v12 = vld [vmem:[#allocation2 + $0x1c0] sm:$0xff] }
  0x90   : > { %3770 = vrot.lane.b32.xlu0 %v3769_v54, %s3925_s14 }
  0x91   : > { %v549_v56 = vpop.permute.xlu1 %548  ;;  %v499_v57 = vpop.permute.xlu0 %498  ;;  %v601_v58 = vld [vmem:[#allocation2 + $0xa0] sm:$0xff]  ;;  %v595_v2 = vld [vmem:[#allocation2 + $0x1d1] sm:$0xff] }
  0x92   : > { %570 = vst.msk [vmem:[#allocation2 + $0x1f1] sm:$0xff] %vm429_vm0, %v549_v56  ;;  %520 = vst.msk [vmem:[#allocation2 + $0xd1] sm:$0xff] %vm429_vm0, %v499_v57  ;;  %v3779_v59 = vpack.i.bf16 %v602_v55, %v601_v58  ;;  %v617_v61 = vld [vmem:[#allocation2 + $0xa1] sm:$0xff]  ;;  %v4146_v8 = vld [vmem:[#allocation2 + $0x1d0] sm:$0xff]  ;;  %v3809_v22 = vpack.i.bf16 %v595_v2, %v4129_v53 }
  0x93   : > { %v3789_v5 = vpack.i.bf16 %v618_v62, %v617_v61  ;;  %v3799_v14 = vpack.i.bf16 %v4146_v8, %v4150_v12 }
  0x94   : > { %3780 = vrot.lane.b32.xlu0 %v3779_v59, %s3926_s17 }
  0x95   : > { %v501_v63 = vpop.permute.xlu1 %500  ;;  %v551_v1 = vpop.permute.xlu0 %550  ;;  %v596_v3 = vld [vmem:[#allocation2 + $0x1e1] sm:$0xff] }
  0x96   : > { %521 = vst.msk [vmem:[#allocation2 + $0xe1] sm:$0xff] %vm429_vm0, %v501_v63  ;;  %571 = vst.msk [vmem:[#allocation2 + $0x201] sm:$0xff] %vm429_vm0, %v551_v1  ;;  %v3774_v4 = vpack.i.bf16 %v596_v3, %v595_v2  ;;  %v603_v7 = vld [vmem:[#allocation2 + $0xc0] sm:$0xff] }
  0x97   : > { %v619_v16 = vld [vmem:[#allocation2 + $0xc1] sm:$0xff] }
  0x98   : > { %3775 = vrot.lane.b32.xlu1 %v3774_v4, %s3925_s14  ;;  %3790 = vrot.lane.b32.xlu0 %v3789_v5, %s3927_s20  ;;  %v4171_v27 = vld [vmem:[#allocation2 + $0x1e0] sm:$0xff] }
  0x99   : > { %v553_v9 = vpop.permute.xlu1 %552  ;;  %v503_v10 = vpop.permute.xlu0 %502  ;;  %v604_v11 = vld [vmem:[#allocation2 + $0xd0] sm:$0xff] }
  0x9a   : > { %572 = vst.msk [vmem:[#allocation2 + $0x211] sm:$0xff] %vm429_vm0, %v553_v9  ;;  %522 = vst.msk [vmem:[#allocation2 + $0xf1] sm:$0xff] %vm429_vm0, %v503_v10  ;;  %v3784_v13 = vpack.i.bf16 %v604_v11, %v603_v7  ;;  %v620_v17 = vld [vmem:[#allocation2 + $0xd1] sm:$0xff] }
  0x9b   : > { %v3794_v21 = vpack.i.bf16 %v620_v17, %v619_v16  ;;  %v4166_v23 = vld [vmem:[#allocation2 + $0x1f0] sm:$0xff] }
  0x9c   : > { %3785 = vrot.lane.b32.xlu1 %v3784_v13, %s3926_s17  ;;  %3800 = vrot.lane.b32.xlu0 %v3799_v14, %s3928_s25  ;;  %v644_v24 = vld [vmem:[#allocation2 + $0x1f1] sm:$0xff]  ;;  %v3804_v28 = vpack.i.bf16 %v4166_v23, %v4171_v27 }
  0x9d   : > { %v505_v19 = vpop.permute.xlu1 %504  ;;  %v555_v20 = vpop.permute.xlu0 %554  ;;  %v3814_v29 = vpack.i.bf16 %v644_v24, %v596_v3  ;;  %v598_v30 = vld [vmem:[#allocation2 + $0x201] sm:$0xff]  ;;  %v576_v9 = vld [vmem:[#allocation2 + $0x1b0] sm:$0xff] }
  0x9e   : > { %523 = vst.msk [vmem:[#allocation2 + $0x101] sm:$0xff] %vm429_vm0, %v505_v19  ;;  %573 = vst.msk [vmem:[#allocation2 + $0x221] sm:$0xff] %vm429_vm0, %v555_v20  ;;  %v605_v33 = vld [vmem:[#allocation2 + $0xe0] sm:$0xff]  ;;  %v3819_v35 = vpack.i.bf16 %v598_v30, %v644_v24 }
  0x9f   : > { %v621_v43 = vld [vmem:[#allocation2 + $0xe1] sm:$0xff] }
  0xa0   : > { %3795 = vrot.lane.b32.xlu1 %v3794_v21, %s3927_s20  ;;  %3810 = vrot.lane.b32.xlu0 %v3809_v22, %s3929_s26  ;;  %v4183_v47 = vld [vmem:[#allocation2 + $0x200] sm:$0xff] }
  0xa1   : > { %v557_v25 = vpop.permute.xlu1 %556  ;;  %v507_v26 = vpop.permute.xlu0 %506  ;;  %v599_v31 = vld [vmem:[#allocation2 + $0x211] sm:$0xff] }
  0xa2   : > { %574 = vst.msk [vmem:[#allocation2 + $0x231] sm:$0xff] %vm429_vm0, %v557_v25  ;;  %524 = vst.msk [vmem:[#allocation2 + $0x111] sm:$0xff] %vm429_vm0, %v507_v26  ;;  %v606_v34 = vld [vmem:[#allocation2 + $0xf0] sm:$0xff]  ;;  %v3859_v54 = vpack.i.bf16 %v599_v31, %v598_v30 }
  0xa3   : > { %v3829_v38 = vpack.i.bf16 %v606_v34, %v605_v33  ;;  %v622_v44 = vld [vmem:[#allocation2 + $0xf1] sm:$0xff] }
  0xa4   : > { %3805 = vrot.lane.b32.xlu1 %v3804_v28, %s3928_s25  ;;  %3815 = vrot.lane.b32.xlu0 %v3814_v29, %s3929_s26  ;;  %v3839_v46 = vpack.i.bf16 %v622_v44, %v621_v43  ;;  %v4185_v48 = vld [vmem:[#allocation2 + $0x210] sm:$0xff] }
  0xa5   : > { %v600_v32 = vld [vmem:[#allocation2 + $0x221] sm:$0xff]  ;;  %v3849_v51 = vpack.i.bf16 %v4185_v48, %v4183_v47  ;;  %v3716_v56 = vpop.permute.xlu1 %3715  ;;  %v3711_v57 = vpop.permute.xlu0 %3710 }
  0xa6   : > { %v3824_v36 = vpack.i.bf16 %v600_v32, %v599_v31  ;;  %v607_v37 = vld [vmem:[#allocation2 + $0x100] sm:$0xff]  ;;  %v3713_v6 = vunpack.i.h.bf16 %v3711_v57  ;;  %v3712_v7 = vunpack.i.l.bf16 %v3711_v57  ;;  %v3718_v30 = vunpack.i.h.bf16 %v3716_v56 }
  0xa7   : > { %v623_v41 = vld [vmem:[#allocation2 + $0x101] sm:$0xff] }
  0xa8   : > { %3820 = vrot.lane.b32.xlu0 %v3819_v35, %s3925_s14  ;;  %3825 = vrot.lane.b32.xlu1 %v3824_v36, %s3925_s14  ;;  %v4188_v49 = vld [vmem:[#allocation2 + $0x220] sm:$0xff]  ;;  %v906_v16 = vsel %vm429_vm0, %v4150_v12, %v3713_v6  ;;  %v905_v17 = vsel %vm429_vm0, %v576_v9, %v3712_v7  ;;  %v3717_v12 = vunpack.i.l.bf16 %v3716_v56  ;;  %v908_v44 = vsel %vm429_vm0, %v4171_v27, %v3718_v30 }
  0xa9   : > { %v608_v39 = vld [vmem:[#allocation2 + $0x110] sm:$0xff]  ;;  %v4198_v58 = vpop.permute.xlu1 %3725  ;;  %v3721_v59 = vpop.permute.xlu0 %3720 }
  0xaa   : > { %v3834_v40 = vpack.i.bf16 %v608_v39, %v607_v37  ;;  %v624_v42 = vld [vmem:[#allocation2 + $0x111] sm:$0xff]  ;;  %v3723_v25 = vunpack.i.h.bf16 %v3721_v59  ;;  %v3722_v26 = vunpack.i.l.bf16 %v3721_v59  ;;  %v907_v43 = vsel %vm429_vm0, %v4146_v8, %v3717_v12 }
  0xab   : > { %v3844_v45 = vpack.i.bf16 %v624_v42, %v623_v41  ;;  %v632_v50 = vld [vmem:[#allocation2 + $0x230] sm:$0xff]  ;;  %v3727_v9 = vunpack.i.l.bf16 %v4198_v58 }
  0xac   : > { %3830 = vrot.lane.b32.xlu0 %v3829_v38, %s3926_s17  ;;  %3835 = vrot.lane.b32.xlu1 %v3834_v40, %s3926_s17  ;;  %v3854_v52 = vpack.i.bf16 %v632_v50, %v4188_v49  ;;  %v648_v53 = vld [vmem:[#allocation2 + $0x231] sm:$0xff]  ;;  %s3937_s17 = smov 112  }
  0xad   : > { %v3864_v55 = vpack.i.bf16 %v648_v53, %v600_v32  ;;  %v4200_v60 = vpop.permute.xlu1 %3735  ;;  %v4202_v61 = vpop.permute.xlu0 %3730 }
  0xae   : > { %v3733_v50 = vunpack.i.h.bf16 %v4202_v61 }
  0xb0   : > { %3840 = vrot.lane.b32.xlu0 %v3839_v46, %s3927_s20  ;;  %3845 = vrot.lane.b32.xlu1 %v3844_v45, %s3927_s20 }
  0xb1   : > { %v4204_v62 = vpop.permute.xlu1 %3740  ;;  %v4206_v63 = vpop.permute.xlu0 %3750 }
  0xb4   : > { %3850 = vrot.lane.b32.xlu0 %v3849_v51, %s3928_s25  ;;  %3855 = vrot.lane.b32.xlu1 %v3854_v52, %s3928_s25  ;;  %v3732_v51 = vunpack.i.l.bf16 %v4202_v61  ;;  %v3728_v61 = vunpack.i.h.bf16 %v4198_v58 }
  0xb5   : > { %v4208_v1 = vpop.permute.xlu1 %3745  ;;  %v4210_v2 = vpop.permute.xlu0 %3760 }
  0xb8   : > { %3860 = vrot.lane.b32.xlu0 %v3859_v54, %s3929_s26  ;;  %3865 = vrot.lane.b32.xlu1 %v3864_v55, %s3929_s26 }
  0xb9   : > { %v4212_v3 = vpop.permute.xlu1 %3755 }
  0xbd   : > { %v4214_v5 = vpop.permute.xlu1 %3765 }
 0x102   : > { %v3771_v4 = vpop.permute.xlu0 %3770 }
 0x103   : > { %v3773_v10 = vunpack.i.h.bf16 %v3771_v4  ;;  %v3772_v11 = vunpack.i.l.bf16 %v3771_v4 }
 0x105   : > { %v915_v18 = vsel %vm913_vm3, %v906_v16, %v3773_v10  ;;  %v914_v19 = vsel %vm913_vm3, %v905_v17, %v3772_v11 }
 0x106   : > { %v3781_v13 = vpop.permute.xlu0 %3780 }
 0x107   : > { %v3783_v14 = vunpack.i.h.bf16 %v3781_v13  ;;  %v3782_v15 = vunpack.i.l.bf16 %v3781_v13 }
 0x109   : > { %v923_v22 = vsel %vm922_vm4, %v914_v19, %v3782_v15  ;;  %v924_v24 = vsel %vm922_vm4, %v915_v18, %v3783_v14 }
 0x10a   : > { %v3776_v20 = vpop.permute.xlu1 %3775  ;;  %v3791_v21 = vpop.permute.xlu0 %3790  ;;  %v932_v33 = vsel %vm931_vm5, %v923_v22, %v3722_v26  ;;  %v933_v34 = vsel %vm931_vm5, %v924_v24, %v3723_v25 }
 0x10b   : > { %v3793_v28 = vunpack.i.h.bf16 %v3791_v21  ;;  %v3792_v29 = vunpack.i.l.bf16 %v3791_v21  ;;  %v3778_v31 = vunpack.i.h.bf16 %v3776_v20  ;;  %v3777_v32 = vunpack.i.l.bf16 %v3776_v20 }
 0x10c   : > { %v3738_v20 = vunpack.i.h.bf16 %v4200_v60  ;;  %v3737_v21 = vunpack.i.l.bf16 %v4200_v60 }
 0x10d   : > { %v941_v41 = vsel %vm940_vm6, %v932_v33, %v3792_v29  ;;  %v942_v42 = vsel %vm940_vm6, %v933_v34, %v3793_v28  ;;  %v916_v52 = vsel %vm913_vm3, %v907_v43, %v3777_v32  ;;  %v917_v53 = vsel %vm913_vm3, %v908_v44, %v3778_v31 }
 0x10e   : > { %v3786_v35 = vpop.permute.xlu1 %3785  ;;  %v3801_v36 = vpop.permute.xlu0 %3800  ;;  %v3743_v34 = vunpack.i.h.bf16 %v4204_v62 }
 0x10f   : > { %v3788_v37 = vunpack.i.h.bf16 %v3786_v35  ;;  %v3787_v38 = vunpack.i.l.bf16 %v3786_v35  ;;  %v3803_v39 = vunpack.i.h.bf16 %v3801_v36  ;;  %v3802_v40 = vunpack.i.l.bf16 %v3801_v36 }
 0x110   : > { %v3742_v35 = vunpack.i.l.bf16 %v4204_v62  ;;  %v3748_v36 = vunpack.i.h.bf16 %v4208_v1  ;;  %v910_v62 = vsel %vm429_vm0, %v4183_v47, %v3743_v34 }
 0x111   : > { %v950_v45 = vsel %vm949_vm7, %v941_v41, %v3802_v40  ;;  %v951_v46 = vsel %vm949_vm7, %v942_v42, %v3803_v39  ;;  %v926_v56 = vsel %vm922_vm4, %v917_v53, %v3788_v37  ;;  %v925_v8 = vsel %vm922_vm4, %v916_v52, %v3787_v38 }
 0x112   : > { %v3796_v54 = vpop.permute.xlu1 %3795  ;;  %v3811_v55 = vpop.permute.xlu0 %3810  ;;  %v959_v6 = vsel %vm958_vm8, %v950_v45, %v3732_v51  ;;  %v960_v7 = vsel %vm958_vm8, %v951_v46, %v3733_v50  ;;  %v934_v16 = vsel %vm931_vm5, %v925_v8, %v3727_v9  ;;  %v935_v17 = vsel %vm931_vm5, %v926_v56, %v3728_v61 }
 0x113   : > { %v3813_v57 = vunpack.i.h.bf16 %v3811_v55  ;;  %v3812_v27 = vunpack.i.l.bf16 %v3811_v55  ;;  %v3798_v59 = vunpack.i.h.bf16 %v3796_v54  ;;  %v3797_v4 = vunpack.i.l.bf16 %v3796_v54 }
 0x114   : > { %v3747_v37 = vunpack.i.l.bf16 %v4208_v1  ;;  %v909_v51 = vsel %vm429_vm0, %v4166_v23, %v3742_v35  ;;  %v3753_v1 = vunpack.i.h.bf16 %v4206_v63  ;;  %v3752_v52 = vunpack.i.l.bf16 %v4206_v63 }
 0x115   : > { %v968_v10 = vsel %vm967_vm9, %v959_v6, %v3812_v27  ;;  %v969_v11 = vsel %vm967_vm9, %v960_v7, %v3813_v57  ;;  %v943_v22 = vsel %vm940_vm6, %v934_v16, %v3797_v4  ;;  %v944_v58 = vsel %vm940_vm6, %v935_v17, %v3798_v59 }
 0x116   : > { %v3806_v13 = vpop.permute.xlu1 %3805  ;;  %v3816_v14 = vpop.permute.xlu0 %3815  ;;  %v976_v15 = vpack.c.bf16 %v969_v11, %v968_v10  ;;  %v911_v53 = vsel %vm429_vm0, %v4185_v48, %v3747_v37  ;;  %v912_v54 = vsel %vm429_vm0, %v4188_v49, %v3748_v36  ;;  %v3758_v6 = vunpack.i.h.bf16 %v4212_v3 }
 0x117   : > { %v3808_v18 = vunpack.i.h.bf16 %v3806_v13  ;;  %v3807_v19 = vunpack.i.l.bf16 %v3806_v13  ;;  %v3818_v26 = vunpack.i.h.bf16 %v3816_v14  ;;  %v3817_v28 = vunpack.i.l.bf16 %v3816_v14 }
 0x118   : > { %3627 = vmatprep.mubr.msk.bf16.mxu0 %vm1007_vm10, %v976_v15  ;;  %v3757_v7 = vunpack.i.l.bf16 %v4212_v3  ;;  %vm1343_vm0 = vcmask 60416  }
 0x119   : > { %v952_v24 = vsel %vm949_vm7, %v943_v22, %v3807_v19  ;;  %v953_v25 = vsel %vm949_vm7, %v944_v58, %v3808_v18 }
 0x11a   : > { %v961_v29 = vsel %vm958_vm8, %v952_v24, %v3737_v21  ;;  %v962_v30 = vsel %vm958_vm8, %v953_v25, %v3738_v20  ;;  %v3821_v12 = vpop.permute.xlu0 %3820  ;;  %v3826_v32 = vpop.permute.xlu1 %3825 }
 0x11b   : > { %v971_v31 = vsel %vm967_vm9, %v962_v30, %v3818_v26  ;;  %v970_v60 = vsel %vm967_vm9, %v961_v29, %v3817_v28  ;;  %v3823_v38 = vunpack.i.h.bf16 %v3821_v12  ;;  %v3822_v39 = vunpack.i.l.bf16 %v3821_v12 }
 0x11c   : > { %v977_v33 = vpack.c.bf16 %v971_v31, %v970_v60  ;;  %v3828_v41 = vunpack.i.h.bf16 %v3826_v32  ;;  %v3827_v42 = vunpack.i.l.bf16 %v3826_v32  ;;  %v3763_v26 = vunpack.i.h.bf16 %v4210_v2 }
 0x11d   : > { %v919_v55 = vsel %vm913_vm3, %v910_v62, %v3823_v38  ;;  %v918_v56 = vsel %vm913_vm3, %v909_v51, %v3822_v39  ;;  %v3762_v28 = vunpack.i.l.bf16 %v4210_v2  ;;  %v3768_v31 = vunpack.i.h.bf16 %v4214_v5 }
 0x11e   : > { %v3831_v40 = vpop.permute.xlu0 %3830  ;;  %3628 = vmatmul.mubr.msk.bf16.vlgmr.msra.gmra.mrb[0].mxu0 %vm1007_vm10, %v977_v33  ;;  %v3836_v43 = vpop.permute.xlu1 %3835  ;;  %v920_v23 = vsel %vm913_vm3, %v911_v53, %v3827_v42  ;;  %v921_v57 = vsel %vm913_vm3, %v912_v54, %v3828_v41  ;;  %v3767_v60 = vunpack.i.l.bf16 %v4214_v5  ;;  %v1101_v62 = vlaneseq  ;;  %v4327_v53 = vld [vmem:[%s5639_s2] ss:$0 sm:$0xff] }
 0x11f   : > { %v3833_v44 = vunpack.i.h.bf16 %v3831_v40  ;;  %v3832_v45 = vunpack.i.l.bf16 %v3831_v40  ;;  %v3838_v46 = vunpack.i.h.bf16 %v3836_v43  ;;  %v3837_v50 = vunpack.i.l.bf16 %v3836_v43 }
 0x121   : > { %v927_v47 = vsel %vm922_vm4, %v918_v56, %v3832_v45  ;;  %v928_v27 = vsel %vm922_vm4, %v919_v55, %v3833_v44  ;;  %v930_v59 = vsel %vm922_vm4, %v921_v57, %v3838_v46  ;;  %v929_v48 = vsel %vm922_vm4, %v920_v23, %v3837_v50  ;;  %v1611_v45 = vld [vmem:[#allocation3 + $0x51] sm:$0xf]  ;;  %v1615_v46 = vld [vmem:[#allocation3 + $0x79] sm:$0xf] }
 0x122   : > { %v3841_v8 = vpop.permute.xlu0 %3840  ;;  %v3846_v63 = vpop.permute.xlu1 %3845  ;;  %v936_v10 = vsel %vm931_vm5, %v927_v47, %v3752_v52  ;;  %v937_v11 = vsel %vm931_vm5, %v928_v27, %v3753_v1  ;;  %v938_v14 = vsel %vm931_vm5, %v929_v48, %v3757_v7  ;;  %v939_v15 = vsel %vm931_vm5, %v930_v59, %v3758_v6  ;;  %1647 = vrot.lane.b32.xlu0 %v1611_v45, %s3925_s14 }
 0x123   : > { %v3843_v4 = vunpack.i.h.bf16 %v3841_v8  ;;  %v3842_v49 = vunpack.i.l.bf16 %v3841_v8  ;;  %v3848_v61 = vunpack.i.h.bf16 %v3846_v63  ;;  %v3847_v9 = vunpack.i.l.bf16 %v3846_v63 }
 0x124   : > { %v3930_v50 = vmov 1983009808   ;;  %v4322_v52 = vshrl.u32 %v1101_v62, 7  ;;  %vm1430_vm4 = vcmask 61441  }
 0x125   : > { %v945_v19 = vsel %vm940_vm6, %v936_v10, %v3842_v49  ;;  %v946_v20 = vsel %vm940_vm6, %v937_v11, %v3843_v4  ;;  %v947_v22 = vsel %vm940_vm6, %v938_v14, %v3847_v9  ;;  %v948_v58 = vsel %vm940_vm6, %v939_v15, %v3848_v61 }
 0x126   : > { %v3851_v13 = vpop.permute.xlu0 %3850  ;;  %v3856_v16 = vpop.permute.xlu1 %3855  ;;  %1663 = vrot.lane.b32.xlu0 %v1615_v46, %s3923_s30  ;;  %v1099_v51 = vunpack.c.l.s4 %v3930_v50  ;;  %v4334_v8 = vsub.s32 0, %v4322_v52  ;;  %v4337_v23 = vsub.s32 1, %v4322_v52  ;;  %vm1863_vm6 = vcmask 1043456  }
 0x127   : > { %v3853_v17 = vunpack.i.h.bf16 %v3851_v13  ;;  %v3852_v18 = vunpack.i.l.bf16 %v3851_v13  ;;  %v3858_v21 = vunpack.i.h.bf16 %v3856_v16  ;;  %v3857_v3 = vunpack.i.l.bf16 %v3856_v16 }
 0x128   : > { %v1100_v1 = vunpack.c.0.s8 %v1099_v51  ;;  %5717 = vst [vmem:[#allocation4_spill] sm:$0xff] %v4334_v8  ;;  %5718 = vst [vmem:[#allocation5_spill] sm:$0xff] %v4337_v23 }
 0x129   : > { %v954_v24 = vsel %vm949_vm7, %v945_v19, %v3852_v18  ;;  %v955_v25 = vsel %vm949_vm7, %v946_v20, %v3853_v17  ;;  %v956_v29 = vsel %vm949_vm7, %v947_v22, %v3857_v3  ;;  %v957_v30 = vsel %vm949_vm7, %v948_v58, %v3858_v21 }
 0x12a   : > { %v3861_v12 = vpop.permute.xlu0 %3860  ;;  %v3866_v32 = vpop.permute.xlu1 %3865  ;;  %v963_v37 = vsel %vm958_vm8, %v954_v24, %v3762_v28  ;;  %v964_v38 = vsel %vm958_vm8, %v955_v25, %v3763_v26  ;;  %v965_v2 = vsel %vm958_vm8, %v956_v29, %v3767_v60  ;;  %v966_v39 = vsel %vm958_vm8, %v957_v30, %v3768_v31 }
 0x12b   : > { %v3863_v33 = vunpack.i.h.bf16 %v3861_v12  ;;  %v3862_v34 = vunpack.i.l.bf16 %v3861_v12  ;;  %v3868_v35 = vunpack.i.h.bf16 %v3866_v32  ;;  %v3867_v36 = vunpack.i.l.bf16 %v3866_v32 }
 0x12c   : > { %v4330_v54 = vsub.s32 %v1100_v1, %v4322_v52  ;;  %vm3935_vm8 = vmmov 0  }
 0x12d   : > { %v972_v40 = vsel %vm967_vm9, %v963_v37, %v3862_v34  ;;  %v973_v41 = vsel %vm967_vm9, %v964_v38, %v3863_v33  ;;  %v974_v42 = vsel %vm967_vm9, %v965_v2, %v3867_v36  ;;  %v975_v5 = vsel %vm967_vm9, %v966_v39, %v3868_v35  ;;  %3645 = vmatprep.mubr.msk.bf16.mxu1 %vm3935_vm8, %v5650_v0 }
 0x12e   : > { %v978_v43 = vpack.c.bf16 %v973_v41, %v972_v40  ;;  %v979_v44 = vpack.c.bf16 %v975_v5, %v974_v42 }
 0x130   : > { %3631 = vmatprep.mubr.msk.bf16.mxu0 %vm1007_vm10, %v978_v43 }
 0x131   : > { %3632 = vmatmul.mubr.msk.bf16.gmra.mrb[4].mxu0 %vm1007_vm10, %v979_v44  ;;  %vm1787_vm10 = vcmask 326656  }
 0x132   : > { %3651 = vmatprep.mubr.msk.bf16.mxu0 %vm3935_vm8, %v5650_v0 }
 0x1f1   : > { %v3629_v55 = vpop.f32.mrb[0].mxu0 }
 0x1f2   : > { %v1067_v56 = vadd.f32 %v3629_v55, %v4327_v53  ;;  %v1058_v57 = vpop.f32.mrb[1].mxu0 }
 0x1f3   : > { %v1059_v47 = vadd.f32 %v4327_v53, %v1058_v57  ;;  %v3630_v27 = vpop.f32.mrb[2].mxu0 }
 0x1f4   : > { %v1131_v63 = vcombine.high %v1067_v56, %v1067_v56  ;;  %v1138_v59 = vrot.slane %v1067_v56, %v4330_v54  ;;  %v1061_v48 = vpop.f32.mrb[3].mxu0  ;;  %v1070_v6 = vadd.f32 %v3630_v27, %v4327_v53 }
 0x1f5   : > { %v1097_v4 = vcombine.high %v1059_v47, %v1059_v47  ;;  %v1104_v49 = vrot.slane %v1059_v47, %v4330_v54  ;;  %v1062_v7 = vadd.f32 %v4327_v53, %v1061_v48 }
 0x1f6   : > { %v1145_v61 = vrot.slane %v1131_v63, %v4330_v54  ;;  %v1146_v9 = vcombine.high %v1138_v59, %v1138_v59  ;;  %v1278_v10 = vrot.slane %v1138_v59, %v4334_v8  ;;  %v1367_v11 = vrot.slane %v1138_v59, %v4337_v23 }
 0x1f7   : > { %v1111_v13 = vrot.slane %v1097_v4, %v4330_v54  ;;  %v1112_v14 = vcombine.high %v1104_v49, %v1104_v49  ;;  %v1262_v15 = vrot.slane %v1104_v49, %v4334_v8  ;;  %v1351_v16 = vrot.slane %v1104_v49, %v4337_v23 }
 0x1f8   : > { %v1147_v17 = vcombine.high %v1145_v61, %v1145_v61  ;;  %v1282_v18 = vrot.slane %v1146_v9, %v4334_v8  ;;  %v1286_v19 = vrot.slane %v1145_v61, %v4334_v8  ;;  %v1371_v20 = vrot.slane %v1146_v9, %v4337_v23 }
 0x1f9   : > { %v1375_v21 = vrot.slane %v1145_v61, %v4337_v23  ;;  %v1113_v3 = vcombine.high %v1111_v13, %v1111_v13  ;;  %v1266_v22 = vrot.slane %v1112_v14, %v4334_v8  ;;  %v1270_v58 = vrot.slane %v1111_v13, %v4334_v8 }
 0x1fa   : > { %v1290_v24 = vrot.slane %v1147_v17, %v4334_v8  ;;  %v1329_v25 = vsel %vm1323_vm13, %v1282_v18, %v1278_v10  ;;  %v1379_v26 = vrot.slane %v1147_v17, %v4337_v23  ;;  %v1416_v28 = vsel %vm1325_vm14, %v1371_v20, %v1367_v11 }
 0x1fb   : > { %v1330_v29 = vsel %vm1325_vm14, %v1286_v19, %v1329_v25  ;;  %v1417_v30 = vsel %vm1327_vm15, %v1375_v21, %v1416_v28  ;;  %v1274_v12 = vrot.slane %v1113_v3, %v4334_v8  ;;  %v1324_v31 = vsel %vm1323_vm13, %v1266_v22, %v1262_v15 }
 0x1fc   : > { %v1331_v60 = vsel %vm1327_vm15, %v1290_v24, %v1330_v29  ;;  %v1418_v32 = vsel %vm1414_vm1, %v1379_v26, %v1417_v30  ;;  %v1326_v33 = vsel %vm1325_vm14, %v1270_v58, %v1324_v31  ;;  %v1355_v34 = vrot.slane %v1112_v14, %v4337_v23 }
 0x1fd   : > { %1345 = vst.msk [vmem:[#allocation3 + $0x11] sm:$0xf] %vm1343_vm0, %v1331_v60  ;;  %v1328_v35 = vsel %vm1327_vm15, %v1274_v12, %v1326_v33  ;;  %v1359_v36 = vrot.slane %v1111_v13, %v4337_v23  ;;  %v1363_v37 = vrot.slane %v1113_v3, %v4337_v23  ;;  %v1148_v38 = vcombine.high %v1070_v6, %v1070_v6 }
 0x1fe   : > { %1432 = vst.msk [vmem:[#allocation3 + $0x38] sm:$0x1e] %vm1430_vm4, %v1418_v32  ;;  %v1412_v2 = vsel %vm1325_vm14, %v1355_v34, %v1351_v16  ;;  %v1155_v39 = vrot.slane %v1070_v6, %v4330_v54  ;;  %v1114_v40 = vcombine.high %v1062_v7, %v1062_v7  ;;  %v1121_v41 = vrot.slane %v1062_v7, %v4330_v54 }
 0x1ff   : > { %1344 = vst.msk [vmem:[#allocation3 + $0x9] sm:$0xf] %vm1343_vm0, %v1328_v35  ;;  %v1413_v42 = vsel %vm1327_vm15, %v1359_v36, %v1412_v2  ;;  %v1162_v5 = vrot.slane %v1148_v38, %v4330_v54 }
 0x200   : > { %v1415_v43 = vsel %vm1414_vm1, %v1363_v37, %v1413_v42  ;;  %v1163_v44 = vcombine.high %v1155_v39, %v1155_v39  ;;  %v1454_v45 = vrot.slane %v1155_v39, %v4334_v8  ;;  %v1539_v46 = vrot.slane %v1155_v39, %v4337_v23 }
 0x201   : > { %1431 = vst.msk [vmem:[#allocation3 + $0x30] sm:$0x1e] %vm1430_vm4, %v1415_v43  ;;  %v1164_v50 = vcombine.high %v1162_v5, %v1162_v5  ;;  %v1462_v51 = vrot.slane %v1162_v5, %v4334_v8  ;;  %v1547_v62 = vrot.slane %v1162_v5, %v4337_v23  ;;  %v1128_v1 = vrot.slane %v1114_v40, %v4330_v54 }
 0x202   : > { %v1458_v55 = vrot.slane %v1163_v44, %v4334_v8  ;;  %v1543_v56 = vrot.slane %v1163_v44, %v4337_v23  ;;  %v1129_v57 = vcombine.high %v1121_v41, %v1121_v41  ;;  %v1438_v47 = vrot.slane %v1121_v41, %v4334_v8 }
 0x203   : > { %v1466_v27 = vrot.slane %v1164_v50, %v4334_v8  ;;  %v1551_v63 = vrot.slane %v1164_v50, %v4337_v23  ;;  %v1130_v59 = vcombine.high %v1128_v1, %v1128_v1  ;;  %v1446_v48 = vrot.slane %v1128_v1, %v4334_v8 }
 0x204   : > { %v1502_v4 = vsel %vm1323_vm13, %v1458_v55, %v1454_v45  ;;  %v1587_v49 = vsel %vm1325_vm14, %v1543_v56, %v1539_v46  ;;  %v1442_v6 = vrot.slane %v1129_v57, %v4334_v8  ;;  %v1523_v7 = vrot.slane %v1121_v41, %v4337_v23  ;;  %v3633_v61 = vpop.f32.mrb[4].mxu0  ;;  %v1624_v33 = vld [vmem:[#allocation3 + $0x11] sm:$0xf] }
 0x205   : > { %v1620_v9 = vld [vmem:[#allocation3 + $0x38] sm:$0xf]  ;;  %v1503_v10 = vsel %vm1325_vm14, %v1462_v51, %v1502_v4  ;;  %v1588_v11 = vsel %vm1327_vm15, %v1547_v62, %v1587_v49  ;;  %v1450_v13 = vrot.slane %v1130_v59, %v4334_v8  ;;  %v1527_v14 = vrot.slane %v1129_v57, %v4337_v23  ;;  %v1074_v15 = vpop.f32.mrb[5].mxu0 }
 0x206   : > { %1681 = vrot.lane.b32.xlu1 %v1620_v9, %s3928_s25  ;;  %v1504_v16 = vsel %vm1327_vm15, %v1466_v27, %v1503_v10  ;;  %v1589_v17 = vsel %vm1414_vm1, %v1551_v63, %v1588_v11  ;;  %v1499_v18 = vsel %vm1323_vm13, %v1442_v6, %v1438_v47  ;;  %v1531_v19 = vrot.slane %v1128_v1, %v4337_v23  ;;  %v3634_v20 = vpop.f32.mrb[6].mxu0  ;;  %v1623_v43 = vld [vmem:[#allocation3 + $0x9] sm:$0xf]  ;;  %v1628_v51 = vld [vmem:[#allocation3 + $0x39] sm:$0xf] }
 0x207   : > { %1517 = vst.msk [vmem:[#allocation3 + $0x61] sm:$0xf] %vm1343_vm0, %v1504_v16  ;;  %v1500_v21 = vsel %vm1325_vm14, %v1446_v48, %v1499_v18  ;;  %v1535_v3 = vrot.slane %v1130_v59, %v4337_v23  ;;  %v1584_v22 = vsel %vm1325_vm14, %v1527_v14, %v1523_v7  ;;  %v1083_v58 = vadd.f32 %v3633_v61, %v4327_v53  ;;  %v1077_v24 = vpop.f32.mrb[7].mxu0 }
 0x208   : > { %1602 = vst.msk [vmem:[#allocation3 + $0x88] sm:$0x1e] %vm1430_vm4, %v1589_v17  ;;  %v1501_v25 = vsel %vm1327_vm15, %v1450_v13, %v1500_v21  ;;  %v1585_v26 = vsel %vm1327_vm15, %v1531_v19, %v1584_v22  ;;  %v1075_v28 = vadd.f32 %v4327_v53, %v1074_v15  ;;  %v1086_v29 = vadd.f32 %v3634_v20, %v4327_v53  ;;  %v1619_v30 = vld [vmem:[#allocation3 + $0x30] sm:$0xf] }
 0x209   : > { %1516 = vst.msk [vmem:[#allocation3 + $0x59] sm:$0xf] %vm1343_vm0, %v1501_v25  ;;  %v1586_v12 = vsel %vm1414_vm1, %v1535_v3, %v1585_v26  ;;  %v1199_v31 = vcombine.high %v1083_v58, %v1083_v58  ;;  %v1206_v60 = vrot.slane %v1083_v58, %v4330_v54  ;;  %1679 = vrot.lane.b32.xlu0 %v1619_v30, %s3928_s25  ;;  %v1627_v6 = vld [vmem:[#allocation3 + $0x31] sm:$0xf] }
 0x20a   : > { %v4420_v32 = vadd.f32 %v4327_v53, %v1077_v24  ;;  %1601 = vst.msk [vmem:[#allocation3 + $0x80] sm:$0x1e] %vm1430_vm4, %v1586_v12  ;;  %v1165_v34 = vcombine.high %v1075_v28, %v1075_v28  ;;  %v1172_v35 = vrot.slane %v1075_v28, %v4330_v54  ;;  %v1216_v36 = vcombine.high %v1086_v29, %v1086_v29 }
 0x20b   : > { %v4425_v37 = vrot.slane %v1086_v29, %v4330_v54  ;;  %1697 = vrot.lane.b32.xlu1 %v1624_v33, %s3929_s26  ;;  %v1213_v38 = vrot.slane %v1199_v31, %v4330_v54  ;;  %v1214_v2 = vcombine.high %v1206_v60, %v1206_v60  ;;  %v1310_v39 = vrot.slane %v1206_v60, %v4334_v8 }
 0x20c   : > { %v1399_v53 = vrot.slane %v1206_v60, %v4337_v23  ;;  %v1179_v40 = vrot.slane %v1165_v34, %v4330_v54  ;;  %v1180_v41 = vcombine.high %v1172_v35, %v1172_v35  ;;  %v1294_v42 = vrot.slane %v1172_v35, %v4334_v8 }
 0x20d   : > { %v1383_v5 = vrot.slane %v1172_v35, %v4337_v23  ;;  %v1215_v44 = vcombine.high %v1213_v38, %v1213_v38  ;;  %v1314_v45 = vrot.slane %v1214_v2, %v4334_v8  ;;  %v1318_v46 = vrot.slane %v1213_v38, %v4334_v8  ;;  %1695 = vrot.lane.b32.xlu0 %v1623_v43, %s3929_s26 }
 0x20e   : > { %v1403_v50 = vrot.slane %v1214_v2, %v4337_v23  ;;  %v1407_v62 = vrot.slane %v1213_v38, %v4337_v23  ;;  %v1181_v1 = vcombine.high %v1179_v40, %v1179_v40  ;;  %v1298_v55 = vrot.slane %v1180_v41, %v4334_v8  ;;  %v1613_v24 = vld [vmem:[#allocation3 + $0x61] sm:$0xf] }
 0x20f   : > { %v1302_v56 = vrot.slane %v1179_v40, %v4334_v8  ;;  %1713 = vrot.lane.b32.xlu1 %v1628_v51, %s3931_s29  ;;  %v1322_v57 = vrot.slane %v1215_v44, %v4334_v8  ;;  %v1335_v47 = vsel %vm1323_vm13, %v1314_v45, %v1310_v39  ;;  %v1411_v27 = vrot.slane %v1215_v44, %v4337_v23  ;;  %v1632_v11 = vld [vmem:[#allocation3 + $0x88] sm:$0xf]  ;;  %v1636_v30 = vld [vmem:[#allocation3 + $0x61] sm:$0xf] }
 0x210   : > { %v1422_v63 = vsel %vm1325_vm14, %v1403_v50, %v1399_v53  ;;  %v1336_v59 = vsel %vm1325_vm14, %v1318_v46, %v1335_v47  ;;  %v1306_v4 = vrot.slane %v1181_v1, %v4334_v8  ;;  %v1332_v49 = vsel %vm1323_vm13, %v1298_v55, %v1294_v42  ;;  %v1617_v39 = vld [vmem:[#allocation3 + $0x89] sm:$0xf]  ;;  %v1612_v42 = vld [vmem:[#allocation3 + $0x59] sm:$0xf] }
 0x211   : > { %v1423_v48 = vsel %vm1327_vm15, %v1407_v62, %v1422_v63  ;;  %v1337_v7 = vsel %vm1327_vm15, %v1322_v57, %v1336_v59  ;;  %v1333_v9 = vsel %vm1325_vm14, %v1302_v56, %v1332_v49  ;;  %v1387_v10 = vrot.slane %v1180_v41, %v4337_v23  ;;  %1711 = vrot.lane.b32.xlu0 %v1627_v6, %s3931_s29  ;;  %v1631_v62 = vld [vmem:[#allocation3 + $0x80] sm:$0xf] }
 0x212   : > { %v1424_v61 = vsel %vm1414_vm1, %v1411_v27, %v1423_v48  ;;  %1347 = vst.msk [vmem:[#allocation3 + $0x21] sm:$0xf] %vm1343_vm0, %v1337_v7  ;;  %v1334_v13 = vsel %vm1327_vm15, %v1306_v4, %v1333_v9  ;;  %v1391_v14 = vrot.slane %v1179_v40, %v4337_v23  ;;  %v1395_v15 = vrot.slane %v1181_v1, %v4337_v23  ;;  %v1616_v56 = vld [vmem:[#allocation3 + $0x81] sm:$0xf]  ;;  %v1635_v27 = vld [vmem:[#allocation3 + $0x59] sm:$0xf] }
 0x213   : > { %1434 = vst.msk [vmem:[#allocation3 + $0x48] sm:$0x1e] %vm1430_vm4, %v1424_v61  ;;  %v1230_v16 = vrot.slane %v1216_v36, %v4330_v54  ;;  %1729 = vrot.lane.b32.xlu1 %v1632_v11, %s3932_s13  ;;  %v1419_v17 = vsel %vm1325_vm14, %v1387_v10, %v1383_v5  ;;  %v1231_v18 = vcombine.high %v4425_v37, %v4425_v37  ;;  %v1639_v59 = vld [vmem:[#allocation3 + $0x81] sm:$0xf]  ;;  %v3873_v61 = vld [vmem:[%s5640_s3 + $0x8] sm:$0xff]   ;;  %v3874_v11 = vld [vmem:[%s5640_s3 + $0x10] sm:$0xff]  }
 0x214   : > { %1346 = vst.msk [vmem:[#allocation3 + $0x19] sm:$0xf] %vm1343_vm0, %v1334_v13  ;;  %v1486_v19 = vrot.slane %v4425_v37, %v4334_v8  ;;  %v1571_v20 = vrot.slane %v4425_v37, %v4337_v23  ;;  %v1420_v21 = vsel %vm1327_vm15, %v1391_v14, %v1419_v17  ;;  %v1182_v29 = vcombine.high %v4420_v32, %v4420_v32  ;;  %v3872_v49 = vld [vmem:[%s5640_s3] sm:$0xff]   ;;  %v3875_v14 = vld [vmem:[%s5640_s3 + $0x18] sm:$0xff]  }
 0x215   : > { %v1232_v3 = vcombine.high %v1230_v16, %v1230_v16  ;;  %v1494_v22 = vrot.slane %v1230_v16, %v4334_v8  ;;  %v1579_v58 = vrot.slane %v1230_v16, %v4337_v23  ;;  %v1421_v25 = vsel %vm1414_vm1, %v1395_v15, %v1420_v21  ;;  %1651 = vrot.lane.b32.xlu0 %v1613_v24, %s3925_s14  ;;  %v3877_v21 = vld [vmem:[%s5642_s5] sm:$0xff]   ;;  %v1648_v24 = vpop.permute.xlu0 %1647 }
 0x216   : > { %v1490_v26 = vrot.slane %v1231_v18, %v4334_v8  ;;  %v1575_v28 = vrot.slane %v1231_v18, %v4337_v23  ;;  %1433 = vst.msk [vmem:[#allocation3 + $0x40] sm:$0x1e] %vm1430_vm4, %v1421_v25  ;;  %v1189_v60 = vrot.slane %v4420_v32, %v4330_v54  ;;  %v1196_v35 = vrot.slane %v1182_v29, %v4330_v54  ;;  %v3876_v18 = vld [vmem:[%s5640_s3 + $0x20] ss:$0 sps:$4 sm:$0xff]  }
 0x217   : > { %v1498_v12 = vrot.slane %v1232_v3, %v4334_v8  ;;  %v1583_v31 = vrot.slane %v1232_v3, %v4337_v23  ;;  %1745 = vrot.lane.b32.xlu1 %v1636_v30, %s3933_s15  ;;  %3636 = vmatpush3.bf16.msra.mxu1 %v3872_v49 }
 0x218   : > { %v1508_v33 = vsel %vm1323_vm13, %v1490_v26, %v1486_v19  ;;  %v1593_v34 = vsel %vm1325_vm14, %v1575_v28, %v1571_v20  ;;  %v1197_v38 = vcombine.high %v1189_v60, %v1189_v60  ;;  %v1470_v2 = vrot.slane %v1189_v60, %v4334_v8  ;;  %3637 = vmatprep.subr.bf16.mxu1 %v5650_v0 }
 0x219   : > { %v1509_v36 = vsel %vm1325_vm14, %v1494_v22, %v1508_v33  ;;  %v1594_v37 = vsel %vm1327_vm15, %v1579_v58, %v1593_v34  ;;  %v1198_v40 = vcombine.high %v1196_v35, %v1196_v35  ;;  %v1478_v41 = vrot.slane %v1196_v35, %v4334_v8  ;;  %1667 = vrot.lane.b32.xlu0 %v1617_v39, %s3923_s30  ;;  %v1626_v48 = vld [vmem:[#allocation3 + $0x21] sm:$0xf]  ;;  %v1640_v22 = vld [vmem:[#allocation3 + $0x89] sm:$0xf]  ;;  %v1664_v25 = vpop.permute.xlu0 %1663 }
 0x21a   : > { %v1510_v53 = vsel %vm1327_vm15, %v1498_v12, %v1509_v36  ;;  %v1595_v32 = vsel %vm1414_vm1, %v1583_v31, %v1594_v37  ;;  %v1474_v54 = vrot.slane %v1197_v38, %v4334_v8  ;;  %v1555_v5 = vrot.slane %v1189_v60, %v4337_v23  ;;  %v1622_v63 = vld [vmem:[#allocation3 + $0x48] sm:$0xf]  ;;  %3650 = vmatpush3.bf16.msra.mxu0 %v3877_v21 }
 0x21b   : > { %1519 = vst.msk [vmem:[#allocation3 + $0x71] sm:$0xf] %vm1343_vm0, %v1510_v53  ;;  %v1559_v43 = vrot.slane %v1197_v38, %v4337_v23  ;;  %v1563_v44 = vrot.slane %v1196_v35, %v4337_v23  ;;  %1649 = vrot.lane.b32.xlu1 %v1612_v42, %s3925_s14  ;;  %v1482_v45 = vrot.slane %v1198_v40, %v4334_v8  ;;  %v1630_v6 = vld [vmem:[#allocation3 + $0x49] sm:$0xf]  ;;  %v1625_v7 = vld [vmem:[#allocation3 + $0x19] sm:$0xf] }
 0x21c   : > { %1604 = vst.msk [vmem:[#allocation3 + $0x98] sm:$0x1e] %vm1430_vm4, %v1595_v32  ;;  %v1567_v46 = vrot.slane %v1198_v40, %v4337_v23  ;;  %v1505_v50 = vsel %vm1323_vm13, %v1474_v54, %v1470_v2  ;;  %3638 = vmatpush3.bf16.msra.mxu1 %v3873_v61  ;;  %v1865_v20 = vsel %vm1863_vm6, %v3876_v18, 0  ;;  %3661 = vmatprep.subr.bf16.mxu0 %v5650_v0  ;;  %vm2061_vm13 = vcmask 1040384  }
 0x21d   : > { %v1590_v51 = vsel %vm1325_vm14, %v1559_v43, %v1555_v5  ;;  %v1506_v1 = vsel %vm1325_vm14, %v1478_v41, %v1505_v50  ;;  %1727 = vrot.lane.b32.xlu0 %v1631_v62, %s3932_s13  ;;  %v1621_v4 = vld [vmem:[#allocation3 + $0x40] sm:$0xf]  ;;  %3639 = vmatprep.subr.bf16.mxu1 %v5650_v0 }
 0x21e   : > { %v1591_v55 = vsel %vm1327_vm15, %v1563_v44, %v1590_v51  ;;  %v1507_v57 = vsel %vm1327_vm15, %v1482_v45, %v1506_v1  ;;  %v1629_v10 = vld [vmem:[#allocation3 + $0x41] sm:$0xf]  ;;  %v1606_v51 = vld [vmem:[#allocation3 + $0x78] sm:$0xf]  ;;  %vm2074_vm15 = vcmask 1042432  }
 0x21f   : > { %v1592_v47 = vsel %vm1414_vm1, %v1567_v46, %v1591_v55  ;;  %1665 = vrot.lane.b32.xlu1 %v1616_v56, %s3923_s30  ;;  %1518 = vst.msk [vmem:[#allocation3 + $0x69] sm:$0xf] %vm1343_vm0, %v1507_v57  ;;  %v1607_v5 = vld [vmem:[#allocation3 + $0x80] sm:$0xf]  ;;  %v1771_v56 = vsel %vm913_vm3, %v1606_v51, %v1648_v24 }
 0x220   : > { %1603 = vst.msk [vmem:[#allocation3 + $0x90] sm:$0x1e] %vm1430_vm4, %v1592_v47  ;;  %3640 = vmatpush3.bf16.msra.mxu1 %v3874_v11 }
 0x221   : > { %1743 = vrot.lane.b32.xlu0 %v1635_v27, %s3933_s15  ;;  %3641 = vmatprep.subr.bf16.mxu1 %v5650_v0 }
 0x222   : > { %v1638_v13 = vld [vmem:[#allocation3 + $0x71] sm:$0xf] }
 0x223   : > { %1685 = vrot.lane.b32.xlu1 %v1622_v63, %s3928_s25  ;;  %v1634_v9 = vld [vmem:[#allocation3 + $0x98] sm:$0xf] }
 0x224   : > { %3642 = vmatpush3.bf16.msra.mxu1 %v3875_v14  ;;  %v1642_v58 = vld [vmem:[#allocation3 + $0x99] sm:$0xf] }
 0x225   : > { %1759 = vrot.lane.b32.xlu0 %v1639_v59, %s3934_s16  ;;  %3643 = vmatprep.subr.bf16.mxu1 %v5650_v0 }
 0x226   : > { %v1614_v16 = vld [vmem:[#allocation3 + $0x69] sm:$0xf] }
 0x227   : > { %1701 = vrot.lane.b32.xlu1 %v1626_v48, %s3929_s26  ;;  %v1633_v15 = vld [vmem:[#allocation3 + $0x90] sm:$0xf]  ;;  %v1637_v17 = vld [vmem:[#allocation3 + $0x69] sm:$0xf]  ;;  %v1775_v48 = vsel %vm931_vm5, %v1771_v56, %v1664_v25 }
 0x228   : > { %v1618_v19 = vld [vmem:[#allocation3 + $0x91] sm:$0xf]  ;;  %3644 = vmatpush3.bf16.msra.mxu1 %v1865_v20 }
 0x229   : > { %1683 = vrot.lane.b32.xlu0 %v1621_v4, %s3928_s25  ;;  %v1641_v3 = vld [vmem:[#allocation3 + $0x91] sm:$0xf]  ;;  %3655 = vmatprep.subr.bf16.mxu1 %v5650_v0  ;;  %v1608_v4 = vld [vmem:[#allocation3 + $0x88] sm:$0xf] }
 0x22a   : > { %v1609_v57 = vld [vmem:[#allocation3 + $0x90] sm:$0xf] }
 0x22b   : > { %1717 = vrot.lane.b32.xlu1 %v1630_v6, %s3931_s29 }
 0x22d   : > { %1699 = vrot.lane.b32.xlu0 %v1625_v7, %s3929_s26 }
 0x22f   : > { %1733 = vrot.lane.b32.xlu1 %v1634_v9, %s3932_s13 }
 0x231   : > { %1715 = vrot.lane.b32.xlu0 %v1629_v10, %s3931_s29 }
 0x233   : > { %1749 = vrot.lane.b32.xlu1 %v1638_v13, %s3933_s15 }
 0x235   : > { %1731 = vrot.lane.b32.xlu0 %v1633_v15, %s3932_s13 }
 0x237   : > { %1653 = vrot.lane.b32.xlu1 %v1614_v16, %s3925_s14  ;;  %s3936_s14 = smov 80  }
 0x239   : > { %1747 = vrot.lane.b32.xlu0 %v1637_v17, %s3933_s15  ;;  %s3938_s15 = smov 96  }
 0x23b   : > { %1669 = vrot.lane.b32.xlu1 %v1618_v19, %s3923_s30 }
 0x23d   : > { %1763 = vrot.lane.b32.xlu0 %v1641_v3, %s3934_s16 }
 0x23f   : > { %1761 = vrot.lane.b32.xlu1 %v1640_v22, %s3934_s16 }
 0x243   : > { %1765 = vrot.lane.b32.xlu1 %v1642_v58, %s3934_s16 }
 0x278   : > { %v1682_v26 = vpop.permute.xlu1 %1681 }
 0x27b   : > { %v1680_v28 = vpop.permute.xlu0 %1679 }
 0x27c   : > { %v1779_v11 = vsel %vm949_vm7, %v1775_v48, %v1680_v28 }
 0x27d   : > { %v1698_v29 = vpop.permute.xlu1 %1697 }
 0x27f   : > { %v1696_v30 = vpop.permute.xlu0 %1695 }
 0x280   : > { %v1783_v16 = vsel %vm967_vm9, %v1779_v11, %v1696_v30 }
 0x281   : > { %v1714_v12 = vpop.permute.xlu1 %1713 }
 0x283   : > { %v1712_v31 = vpop.permute.xlu0 %1711 }
 0x284   : > { %v1788_v19 = vsel %vm1787_vm10, %v1783_v16, %v1712_v31  ;;  %v4628_v16 = vsub.s32 3, %v4322_v52 }
 0x285   : > { %v1730_v60 = vpop.permute.xlu1 %1729 }
 0x286   : > { %5723 = vst [vmem:[#allocation10_spill] sm:$0xff] %v4628_v16 }
 0x287   : > { %v1652_v33 = vpop.permute.xlu0 %1651 }
 0x288   : > { %v1773_v6 = vsel %vm913_vm3, %v1608_v4, %v1652_v33 }
 0x289   : > { %v1746_v34 = vpop.permute.xlu1 %1745 }
 0x28b   : > { %v1668_v35 = vpop.permute.xlu0 %1667 }
 0x28c   : > { %v1777_v61 = vsel %vm931_vm5, %v1773_v6, %v1668_v35  ;;  %v3571_v35 = vld [vmem:[%s5641_s4] ss:$0 sm:$0xff] }
 0x28d   : > { %v1650_v36 = vpop.permute.xlu1 %1649 }
 0x28e   : > { %v1772_v43 = vsel %vm913_vm3, %v1607_v5, %v1650_v36 }
 0x28f   : > { %v1728_v37 = vpop.permute.xlu0 %1727 }
 0x290   : > { %v1793_v22 = vsel %vm1792_vm11, %v1788_v19, %v1728_v37 }
 0x291   : > { %v1666_v38 = vpop.permute.xlu1 %1665 }
 0x292   : > { %v1776_v44 = vsel %vm931_vm5, %v1772_v43, %v1666_v38 }
 0x293   : > { %v1744_v2 = vpop.permute.xlu0 %1743  ;;  %v1780_v50 = vsel %vm949_vm7, %v1776_v44, %v1682_v26 }
 0x294   : > { %v1784_v55 = vsel %vm967_vm9, %v1780_v50, %v1698_v29  ;;  %v1798_v25 = vsel %vm1797_vm12, %v1793_v22, %v1744_v2  ;;  %v1909_v22 = vld [vmem:[%s5643_s6 + $0x8] sm:$0xff] }
 0x295   : > { %v1686_v39 = vpop.permute.xlu1 %1685  ;;  %v1789_v59 = vsel %vm1787_vm10, %v1784_v55, %v1714_v12 }
 0x296   : > { %v1794_v10 = vsel %vm1792_vm11, %v1789_v59, %v1730_v60 }
 0x297   : > { %v1760_v53 = vpop.permute.xlu0 %1759  ;;  %v1799_v3 = vsel %vm1797_vm12, %v1794_v10, %v1746_v34 }
 0x299   : > { %v1702_v32 = vpop.permute.xlu1 %1701 }
 0x29b   : > { %v1684_v40 = vpop.permute.xlu0 %1683 }
 0x29c   : > { %v1781_v13 = vsel %vm949_vm7, %v1777_v61, %v1684_v40  ;;  %v3878_v40 = vld [vmem:[%s5642_s5 + $0x8] sm:$0xff]  }
 0x29d   : > { %v1718_v41 = vpop.permute.xlu1 %1717 }
 0x29f   : > { %v1700_v42 = vpop.permute.xlu0 %1699 }
 0x2a0   : > { %v1785_v17 = vsel %vm967_vm9, %v1781_v13, %v1700_v42 }
 0x2a1   : > { %v1734_v54 = vpop.permute.xlu1 %1733 }
 0x2a3   : > { %v1716_v45 = vpop.permute.xlu0 %1715 }
 0x2a4   : > { %v1790_v20 = vsel %vm1787_vm10, %v1785_v17, %v1716_v45 }
 0x2a5   : > { %v1750_v46 = vpop.permute.xlu1 %1749 }
 0x2a7   : > { %v1732_v62 = vpop.permute.xlu0 %1731 }
 0x2a8   : > { %v1795_v58 = vsel %vm1792_vm11, %v1790_v20, %v1732_v62  ;;  %v4634_v20 = vsub.s32 4, %v4322_v52 }
 0x2a9   : > { %v1654_v1 = vpop.permute.xlu1 %1653 }
 0x2aa   : > { %v1774_v47 = vsel %vm913_vm3, %v1609_v57, %v1654_v1  ;;  %vm1802_vm3 = vcmask 523264   ;;  %5724 = vst [vmem:[#allocation11_spill] sm:$0xff] %v4634_v20 }
 0x2ab   : > { %v1748_v27 = vpop.permute.xlu0 %1747  ;;  %v1803_v30 = vsel %vm1802_vm3, %v1798_v25, %v1760_v53  ;;  %v1910_v25 = vld [vmem:[%s5643_s6 + $0x10] sm:$0xff] }
 0x2ac   : > { %v1800_v26 = vsel %vm1797_vm12, %v1795_v58, %v1748_v27  ;;  %v4646_v58 = vsub.s32 5, %v4322_v52 }
 0x2ad   : > { %v1670_v63 = vpop.permute.xlu1 %1669 }
 0x2ae   : > { %v1778_v49 = vsel %vm931_vm5, %v1774_v47, %v1670_v63  ;;  %5726 = vst [vmem:[#allocation13_spill] sm:$0xff] %v4646_v58 }
 0x2af   : > { %v1782_v7 = vsel %vm949_vm7, %v1778_v49, %v1686_v39  ;;  %v1764_v21 = vpop.permute.xlu0 %1763  ;;  %vm1859_vm7 = vcmask 588800  }
 0x2b0   : > { %v1786_v9 = vsel %vm967_vm9, %v1782_v7, %v1702_v32  ;;  %v1805_v12 = vsel %vm1802_vm3, %v1800_v26, %v1764_v21  ;;  %v4637_v21 = vsub.s32 6, %v4322_v52 }
 0x2b1   : > { %v1762_v14 = vpop.permute.xlu1 %1761  ;;  %v1791_v15 = vsel %vm1787_vm10, %v1786_v9, %v1718_v41  ;;  %v4608_v41 = vld [vmem:[%s5647_s10] sm:$0xff]  ;;  %vm3497_vm10 = vcmask 785408  }
 0x2b2   : > { %v1796_v18 = vsel %vm1792_vm11, %v1791_v15, %v1734_v54  ;;  %v1804_v24 = vsel %vm1802_vm3, %v1799_v3, %v1762_v14  ;;  %5721 = vst [vmem:[#allocation8_spill] sm:$0xff] %v4608_v41  ;;  %v1930_v42 = vrot.slane %v4608_v41, %v4334_v8  ;;  %v4625_v15 = vsub.s32 2, %v4322_v52  ;;  %5725 = vst [vmem:[#allocation12_spill] sm:$0xff] %v4637_v21 }
 0x2b3   : > { %v1801_v28 = vsel %vm1797_vm12, %v1796_v18, %v1750_v46  ;;  %v1811_v60 = vcombine.low %v1803_v30, %v1804_v24  ;;  %v1908_v18 = vld [vmem:[%s5643_s6] sm:$0xff]  ;;  %v4640_v3 = vsub.s32 7, %v4322_v52  ;;  %vm3499_vm12 = vcmask 916480  }
 0x2b4   : > { %5722 = vst [vmem:[#allocation9_spill] sm:$0xff] %v4625_v15  ;;  %v4658_v30 = vrot.slane %v1908_v18, %v4625_v15  ;;  %v4664_v52 = vrot.slane %v1908_v18, %v4634_v20 }
 0x2b5   : > { %v1766_v29 = vpop.permute.xlu1 %1765 }
 0x2b6   : > { %v1806_v31 = vsel %vm1802_vm3, %v1801_v28, %v1766_v29  ;;  %v4652_v28 = vrot.slane %v1908_v18, %v4334_v8  ;;  %v4655_v29 = vrot.slane %v1908_v18, %v4337_v23 }
 0x2b7   : > { %v1812_v33 = vcombine.low %v1805_v12, %v1806_v31  ;;  %v4661_v12 = vrot.slane %v1908_v18, %v4628_v16 }
 0x2b9   : > { %v1815_v34 = vpack.c.bf16 %v1812_v33, %v1811_v60  ;;  %v4667_v33 = vrot.slane %v1908_v18, %v4637_v21 }
 0x2bb   : > { %3646 = vmatmul.mubr.msk.bf16.vlgmr.msra.gmra.mrb[0].mxu1 %vm1859_vm7, %v1815_v34  ;;  %v4670_v34 = vrot.slane %v1908_v18, %v4640_v3 }
 0x2bc   : > { %3657 = vmatprep.mubr.msk.bf16.mxu1 %vm3935_vm8, %v5650_v0  ;;  %3656 = vmatpush3.bf16.msra.mxu1 %v3878_v40  ;;  %v4685_v40 = vrot.slane %v1909_v22, %v4337_v23 }
 0x2bd   : > { %3667 = vmatprep.subr.bf16.mxu1 %v5650_v0 }
 0x38e   : > { %v1901_v36 = vpop.f32.mrb[0].mxu1 }
 0x38f   : > { %v3647_v37 = vpop.f32.mrb[1].mxu1  ;;  %v4592_v2 = vadd.f32 %v3571_v35, %v1901_v36  ;;  %v4676_v36 = vrot.slane %v1908_v18, %v4646_v58 }
 0x390   : > { %v1904_v38 = vpop.f32.mrb[2].mxu1  ;;  %v4679_v37 = vrot.slane %v1909_v22, %v4334_v8 }
 0x391   : > { %5719 = vst [vmem:[#allocation6_spill] sm:$0xff] %v4592_v2  ;;  %v4594_v39 = vadd.f32 %v3571_v35, %v1904_v38  ;;  %v3648_v53 = vpop.f32.mrb[3].mxu1  ;;  %v4673_v35 = vrot.slane %v1909_v22, %v4634_v20  ;;  %v4682_v38 = vrot.slane %v1910_v25, %v4337_v23 }
 0x393   : > { %5720 = vst [vmem:[#allocation7_spill] sm:$0xff] %v4594_v39  ;;  %v1926_v32 = vpack.c.bf16 %v4594_v39, %v4592_v2 }
 0x395   : > { %3652 = vmatmul.mubr.msk.bf16.vlgmr.msra.gmra.mrb[8].mxu0 %vm931_vm5, %v1926_v32 }
 0x396   : > { %3663 = vmatprep.mubr.msk.bf16.mxu0 %vm3935_vm8, %v5650_v0 }
 0x468   : > { %v1974_v54 = vpop.f32.mrb[8].mxu0 }
 0x469   : > { %v4612_v5 = vadd.f32 %v1974_v54, %v1930_v42  ;;  %v3653_v43 = vpop.f32.mrb[9].mxu0  ;;  %v4691_v54 = vrot.slane %v1909_v22, %v4628_v16 }
 0x46a   : > { %v1977_v44 = vpop.f32.mrb[10].mxu0  ;;  %v4694_v43 = vrot.slane %v1909_v22, %v4646_v58 }
 0x46b   : > { %v4615_v45 = vmul.f32 0.70710677, %v4612_v5  ;;  %v4617_v46 = vadd.f32 %v1977_v44, %v1930_v42  ;;  %v3654_v50 = vpop.f32.mrb[11].mxu0  ;;  %v4688_v42 = vrot.slane %v1909_v22, %v4625_v15  ;;  %v4697_v44 = vrot.slane %v1909_v22, %v4637_v21 }
 0x46c   : > { %v4700_v50 = vrot.slane %v1909_v22, %v4640_v3 }
 0x46d   : > { %v1985_v51 = vand.u32 2147483647, %v4615_v45  ;;  %v4621_v62 = vmul.f32 0.70710677, %v4617_v46  ;;  %vm2025_vm14 = vcmp.ge.f32.partialorder %v4615_v45, 0.0  ;;  %v1981_v45 = vmul.f32 0.5, %v4612_v5 }
 0x46f   : > { %v1987_v1 = vmul.f32 0.3275911, %v1985_v51  ;;  %v1986_v55 = vand.u32 2147483647, %v4621_v62  ;;  %v2013_v27 = vsub.f32 0.0, %v1985_v51  ;;  %vm2026_vm0 = vcmp.ge.f32.partialorder %v4621_v62, 0.0 }
 0x471   : > { %v1989_v56 = vadd.f32 1.0, %v1987_v1  ;;  %v1988_v57 = vmul.f32 0.3275911, %v1986_v55  ;;  %v2014_v63 = vsub.f32 0.0, %v1986_v55  ;;  %v2015_v48 = vmul.f32 %v2013_v27, %v1985_v51 }
 0x473   : > { %3883 = vrcp.f32 %v1989_v56  ;;  %v1990_v47 = vadd.f32 1.0, %v1988_v57  ;;  %v2016_v7 = vmul.f32 %v2014_v63, %v1986_v55  ;;  %v2017_v61 = vmul.f32 1.442695, %v2015_v48 }
 0x474   : > { %v4703_v55 = vrot.slane %v1910_v25, %v4334_v8  ;;  %v4706_v56 = vrot.slane %v1910_v25, %v4625_v15  ;;  %v4709_v57 = vrot.slane %v1910_v25, %v4628_v16  ;;  %v4716_v63 = vrot.slane %v4608_v41, %v4337_v23 }
 0x475   : > { %3885 = vrcp.f32 %v1990_v47  ;;  %v2019_v14 = vmul.f32 1.442695, %v2016_v7  ;;  %v1911_v47 = vld [vmem:[%s5643_s6 + $0x18] sm:$0xff]  ;;  %v4724_v48 = vrot.slane %v4608_v41, %v4634_v20  ;;  %v4728_v7 = vrot.slane %v4608_v41, %v4637_v21 }
 0x476   : > { %3887 = vpow2.f32 %v2017_v61  ;;  %v4731_v61 = vrot.slane %v1910_v25, %v4634_v20  ;;  %v4751_v22 = vrot.slane %v1911_v47, %v4337_v23 }
 0x477   : > { %3889 = vpow2.f32 %v2019_v14  ;;  %5728 = vst [vmem:[#allocation15_spill] sm:$0xff] %v4724_v48  ;;  %5729 = vst [vmem:[#allocation16_spill] sm:$0xff] %v4728_v7  ;;  %v4743_v14 = vrot.slane %v1911_v47, %v4334_v8  ;;  %v4826_v48 = vld [vmem:[%s5643_s6 + $0x40] sm:$0xff] }
 0x47d   : > { %v3884_v59 = vpop.eup %3883 }
 0x47e   : > { %v1995_v4 = vmul.f32 1.0614054, %v3884_v59 }
 0x47f   : > { %v3886_v49 = vpop.eup %3885 }
 0x480   : > { %v1997_v6 = vadd.f32 -1.4531521, %v1995_v4  ;;  %v1996_v9 = vmul.f32 1.0614054, %v3886_v49  ;;  %v3888_v27 = vpop.eup %3887 }
 0x482   : > { %v1999_v10 = vmul.f32 %v3884_v59, %v1997_v6  ;;  %v1998_v11 = vadd.f32 -1.4531521, %v1996_v9  ;;  %v4734_v9 = vrot.slane %v1910_v25, %v4637_v21 }
 0x484   : > { %v2001_v13 = vadd.f32 1.4214138, %v1999_v10  ;;  %v2000_v17 = vmul.f32 %v3886_v49, %v1998_v11  ;;  %v4737_v11 = vrot.slane %v1910_v25, %v4646_v58 }
 0x486   : > { %v2003_v19 = vmul.f32 %v3884_v59, %v2001_v13  ;;  %v2002_v24 = vadd.f32 1.4214138, %v2000_v17  ;;  %v4740_v13 = vrot.slane %v1910_v25, %v4640_v3  ;;  %v3890_v17 = vpop.eup %3889 }
 0x488   : > { %v2005_v26 = vadd.f32 -0.28449672, %v2003_v19  ;;  %v2004_v31 = vmul.f32 %v3886_v49, %v2002_v24  ;;  %v4748_v19 = vld [vmem:[%s5643_s6 + $0x20] sm:$0xff]  ;;  %v4757_v24 = vrot.slane %v1911_v47, %v4634_v20 }
 0x489   : > { %5730 = vst [vmem:[#allocation17_spill] sm:$0xff] %v4748_v19  ;;  %v4800_v2 = vrot.slane %v4748_v19, %v4628_v16  ;;  %v4811_v7 = vrot.slane %v4748_v19, %v4646_v58 }
 0x48a   : > { %v2007_v60 = vmul.f32 %v3884_v59, %v2005_v26  ;;  %v2006_v53 = vadd.f32 -0.28449672, %v2004_v31  ;;  %5731 = vst [vmem:[#allocation18_spill] sm:$0xff] %v4757_v24  ;;  %v1913_v26 = vld [vmem:[%s5643_s6 + $0x28] sm:$0xff]  ;;  %v4763_v31 = vrot.slane %v1911_v47, %v4628_v16 }
 0x48b   : > { %v4792_v0 = vrot.slane %v1913_v26, %v4628_v16  ;;  %v4795_v39 = vrot.slane %v1913_v26, %v4634_v20  ;;  %5741 = vst [vmem:[#allocation28_spill] sm:$0xff] %v4800_v2  ;;  %5743 = vst [vmem:[#allocation30_spill] sm:$0xff] %v4811_v7  ;;  %v4833_v5 = vrot.slane %v1913_v26, %v4646_v58 }
 0x48c   : > { %v2009_v32 = vadd.f32 0.2548296, %v2007_v60  ;;  %v2008_v51 = vmul.f32 %v3886_v49, %v2006_v53  ;;  %v4766_v60 = vrot.slane %v1911_v47, %v4646_v58  ;;  %v4769_v53 = vrot.slane %v1911_v47, %v4637_v21 }
 0x48d   : > { %5739 = vst [vmem:[#allocation26_spill] sm:$0xff] %v4792_v0  ;;  %5740 = vst [vmem:[#allocation27_spill] sm:$0xff] %v4795_v39  ;;  %v4830_v39 = vrot.slane %v4608_v41, %v4628_v16  ;;  %v4839_v62 = vrot.slane %v1913_v26, %v4640_v3  ;;  %v4847_v7 = vrot.slane %v4826_v48, %v4646_v58 }
 0x48e   : > { %v2011_v1 = vmul.f32 %v3884_v59, %v2009_v32  ;;  %v4720_v59 = vrot.slane %v4608_v41, %v4625_v15  ;;  %v2010_v4 = vadd.f32 0.2548296, %v2008_v51  ;;  %5732 = vst [vmem:[#allocation19_spill] sm:$0xff] %v4766_v60  ;;  %5733 = vst [vmem:[#allocation20_spill] sm:$0xff] %v4769_v53  ;;  %v4772_v51 = vrot.slane %v1911_v47, %v4640_v3 }
 0x48f   : > { %5745 = vst [vmem:[#allocation32_spill] sm:$0xff] %v4830_v39  ;;  %5746 = vst [vmem:[#allocation33_spill] sm:$0xff] %v4833_v5 }
 0x490   : > { %5727 = vst [vmem:[#allocation14_spill] sm:$0xff] %v4720_v59  ;;  %v2021_v6 = vmul.f32 %v3888_v27, %v2011_v1  ;;  %v2012_v10 = vmul.f32 %v3886_v49, %v2010_v4  ;;  %v4754_v49 = vrot.slane %v1911_v47, %v4625_v15  ;;  %5734 = vst [vmem:[#allocation21_spill] sm:$0xff] %v4772_v51 }
 0x491   : > { %v4775_v1 = vrot.slane %v1913_v26, %v4337_v23  ;;  %v4778_v27 = vrot.slane %v1913_v26, %v4625_v15  ;;  %v4789_v47 = vrot.slane %v4748_v19, %v4625_v15  ;;  %5748 = vst [vmem:[#allocation35_spill] sm:$0xff] %v4839_v62  ;;  %5750 = vst [vmem:[#allocation37_spill] sm:$0xff] %v4847_v7 }
 0x492   : > { %v2023_v18 = vsub.f32 1.0, %v2021_v6  ;;  %v2022_v25 = vmul.f32 %v3890_v17, %v2012_v10  ;;  %v4785_v10 = vrot.slane %v4748_v19, %v4337_v23 }
 0x493   : > { %5735 = vst [vmem:[#allocation22_spill] sm:$0xff] %v4775_v1  ;;  %5736 = vst [vmem:[#allocation23_spill] sm:$0xff] %v4778_v27 }
 0x494   : > { %v2027_v32 = vsub.f32 0.0, %v2023_v18  ;;  %v2024_v4 = vsub.f32 1.0, %v2022_v25  ;;  %5737 = vst [vmem:[#allocation24_spill] sm:$0xff] %v4785_v10  ;;  %5738 = vst [vmem:[#allocation25_spill] sm:$0xff] %v4789_v47 }
 0x496   : > { %v2029_v17 = vsel %vm2025_vm14, %v2023_v18, %v2027_v32  ;;  %v2028_v6 = vsub.f32 0.0, %v2024_v4  ;;  %v4803_v18 = vmul.f32 0.5, %v4617_v46  ;;  %v4807_v32 = vrot.slane %v4748_v19, %v4634_v20  ;;  %v4821_v46 = vld [vmem:[%s5643_s6 + $0x30] sm:$0xff] }
 0x497   : > { %v2031_v25 = vadd.f32 1.0, %v2029_v17  ;;  %v4864_v7 = vrot.slane %v4821_v46, %v4637_v21 }
 0x498   : > { %5742 = vst [vmem:[#allocation29_spill] sm:$0xff] %v4807_v32 }
 0x499   : > { %v4815_v17 = vmul.f32 %v2031_v25, %v1981_v45  ;;  %v4836_v45 = vrot.slane %v1913_v26, %v4637_v21  ;;  %v4843_v25 = vrot.slane %v4826_v48, %v4634_v20  ;;  %5752 = vst [vmem:[#allocation39_spill] sm:$0xff] %v4864_v7 }
 0x49b   : > { %5744 = vst [vmem:[#allocation31_spill] sm:$0xff] %v4815_v17  ;;  %5747 = vst [vmem:[#allocation34_spill] sm:$0xff] %v4836_v45  ;;  %v4851_v39 = vcombine.high %v4815_v17, %v4815_v17  ;;  %v2041_v5 = vrot.slane %v4815_v17, 6  ;;  %v2053_v0 = vrot.slane %v4815_v17, 7  ;;  %v2030_v45 = vsel %vm2026_vm0, %v2024_v4, %v2028_v6 }
 0x49c   : > { %5749 = vst [vmem:[#allocation36_spill] sm:$0xff] %v4843_v25  ;;  %v2066_v26 = vrot.slane %v4815_v17, 1  ;;  %v4860_v25 = vrot.slane %v4821_v46, %v4646_v58  ;;  %v2079_v62 = vrot.slane %v4815_v17, 2  ;;  %v2032_v19 = vadd.f32 1.0, %v2030_v45 }
 0x49d   : > { %v2042_v32 = vrot.slane %v4851_v39, 6  ;;  %v2049_v2 = vsel %vm1020_vm2, 0.0, %v2041_v5  ;;  %v2054_v47 = vrot.slane %v4851_v39, 7  ;;  %v2062_v4 = vsel %vm2061_vm13, 0.0, %v2053_v0 }
 0x49e   : > { %5751 = vst [vmem:[#allocation38_spill] sm:$0xff] %v4860_v25  ;;  %v2067_v6 = vrot.slane %v4851_v39, 1  ;;  %v4874_v25 = vrot.slane %v4826_v48, %v4637_v21  ;;  %v2095_v16 = vmul.f32 %v4652_v28, %v2049_v2  ;;  %v2101_v5 = vmul.f32 %v4655_v29, %v2062_v4 }
 0x49f   : > { %v2050_v20 = vsel %vm1020_vm2, 0.0, %v2042_v32  ;;  %v2063_v7 = vsel %vm2061_vm13, 0.0, %v2054_v47  ;;  %v2080_v10 = vrot.slane %v4851_v39, 2  ;;  %v2109_v45 = vmul.f32 %v4658_v30, %v4815_v17 }
 0x4a0   : > { %5753 = vst [vmem:[#allocation40_spill] sm:$0xff] %v4874_v25  ;;  %v2096_v0 = vmul.f32 %v4652_v28, %v2050_v20  ;;  %v2102_v27 = vmul.f32 %v4655_v29, %v2063_v7  ;;  %v2075_v21 = vsel %vm2074_vm15, %v2066_v26, 0.0  ;;  %v2103_v25 = vadd.f32 %v2101_v5, %v2095_v16 }
 0x4a1   : > { %v2150_v32 = vmul.f32 %v4670_v34, %v4815_v17  ;;  %v2203_v47 = vmul.f32 %v4673_v35, %v4815_v17  ;;  %v2076_v1 = vsel %vm2074_vm15, %v2067_v6, 0.0  ;;  %v2110_v28 = vmul.f32 %v4658_v30, %v4851_v39 }
 0x4a2   : > { %v2104_v59 = vadd.f32 %v2102_v27, %v2096_v0  ;;  %v2133_v29 = vmul.f32 %v4676_v36, %v2049_v2  ;;  %v2111_v41 = vadd.f32 %v2109_v45, %v2103_v25  ;;  %v2134_v58 = vmul.f32 %v4676_v36, %v2050_v20 }
 0x4a3   : > { %v2140_v26 = vmul.f32 %v4667_v33, %v2062_v4  ;;  %v2141_v16 = vmul.f32 %v4667_v33, %v2063_v7  ;;  %v2087_v5 = vsel %vm1020_vm2, %v2079_v62, 0.0  ;;  %v2088_v15 = vsel %vm1020_vm2, %v2080_v10, 0.0 }
 0x4a4   : > { %v2112_v17 = vadd.f32 %v2110_v28, %v2104_v59  ;;  %v2117_v6 = vmul.f32 %v4661_v12, %v2075_v21  ;;  %v2118_v27 = vmul.f32 %v4661_v12, %v2076_v1  ;;  %v2151_v25 = vmul.f32 %v4670_v34, %v4851_v39 }
 0x4a5   : > { %v2143_v0 = vadd.f32 %v2140_v26, %v2133_v29  ;;  %v2144_v30 = vadd.f32 %v2141_v16, %v2134_v58  ;;  %v2160_v23 = vmul.f32 %v4679_v37, %v2075_v21  ;;  %v2183_v51 = vmul.f32 %v4688_v42, %v2049_v2 }
 0x4a6   : > { %v2119_v45 = vadd.f32 %v2117_v6, %v2111_v41  ;;  %v2184_v53 = vmul.f32 %v4688_v42, %v2050_v20  ;;  %v2120_v62 = vadd.f32 %v2118_v27, %v2112_v17  ;;  %v2191_v59 = vmul.f32 %v4691_v54, %v2062_v4 }
 0x4a7   : > { %v2153_v60 = vadd.f32 %v2150_v32, %v2143_v0  ;;  %v2154_v10 = vadd.f32 %v2151_v25, %v2144_v30  ;;  %v2125_v28 = vmul.f32 %v4664_v52, %v2087_v5  ;;  %v2126_v12 = vmul.f32 %v4664_v52, %v2088_v15 }
 0x4a8   : > { %v2161_v58 = vmul.f32 %v4679_v37, %v2076_v1  ;;  %v2192_v29 = vmul.f32 %v4691_v54, %v2063_v7  ;;  %v2170_v26 = vmul.f32 %v4685_v40, %v2087_v5  ;;  %v2171_v2 = vmul.f32 %v4685_v40, %v2088_v15 }
 0x4a9   : > { %v2163_v41 = vadd.f32 %v2160_v23, %v2153_v60  ;;  %v2204_v17 = vmul.f32 %v4673_v35, %v4851_v39  ;;  %v2195_v16 = vadd.f32 %v2191_v59, %v2183_v51  ;;  %v2243_v4 = vmul.f32 %v4700_v50, %v2050_v20 }
 0x4aa   : > { %v2164_v32 = vadd.f32 %v2161_v58, %v2154_v10  ;;  %v2196_v6 = vadd.f32 %v2192_v29, %v2184_v53  ;;  %v2127_v27 = vadd.f32 %v2125_v28, %v2119_v45  ;;  %v4916_v0 = vadd.f32 %v2126_v12, %v2120_v62 }
 0x4ab   : > { %v2215_v52 = vmul.f32 %v4694_v43, %v2075_v21  ;;  %v2250_v30 = vmul.f32 %v4703_v55, %v2063_v7  ;;  %v2216_v60 = vmul.f32 %v4694_v43, %v2076_v1  ;;  %v4922_v25 = vmul.f32 %v4697_v44, %v2087_v5 }
 0x4ac   : > { %v2208_v23 = vadd.f32 %v2204_v17, %v2196_v6  ;;  %v2228_v24 = vmul.f32 %v4697_v44, %v2088_v15  ;;  %v2173_v10 = vadd.f32 %v2170_v26, %v2163_v41  ;;  %v2260_v20 = vmul.f32 %v4682_v38, %v4851_v39 }
 0x4ad   : > { %v2253_v51 = vadd.f32 %v2250_v30, %v2243_v4  ;;  %v4928_v53 = vmul.f32 %v2032_v19, %v4803_v18  ;;  %v2174_v45 = vadd.f32 %v2171_v2, %v2164_v32  ;;  %v2207_v21 = vadd.f32 %v2203_v47, %v2195_v16 }
 0x4ae   : > { %v2220_v62 = vadd.f32 %v2216_v60, %v2208_v23  ;;  %v2270_v7 = vmul.f32 %v4706_v56, %v2076_v1  ;;  %v2280_v28 = vmul.f32 %v4709_v57, %v2088_v15 }
 0x4af   : > { %5754 = vst [vmem:[#allocation41_spill] sm:$0xff] %v4928_v53  ;;  %v2263_v59 = vadd.f32 %v2260_v20, %v2253_v51  ;;  %v4934_v5 = vcombine.high %v4928_v53, %v4928_v53  ;;  %v2043_v12 = vrot.slane %v4928_v53, 6  ;;  %v2055_v39 = vrot.slane %v4928_v53, 7 }
 0x4b0   : > { %v2232_v58 = vadd.f32 %v2228_v24, %v2220_v62  ;;  %v2068_v19 = vrot.slane %v4928_v53, 1  ;;  %v2081_v18 = vrot.slane %v4928_v53, 2  ;;  %v2177_v41 = vadd.f32 %v2174_v45, %v2127_v27 }
 0x4b1   : > { %v2273_v47 = vadd.f32 %v2270_v7, %v2263_v59  ;;  %v2044_v29 = vrot.slane %v4934_v5, 6  ;;  %v2051_v1 = vsel %vm1020_vm2, 0.0, %v2043_v12  ;;  %v2056_v15 = vrot.slane %v4934_v5, 7 }
 0x4b2   : > { %v4943_v26 = vadd.f32 %v2215_v52, %v2207_v21  ;;  %v2064_v2 = vsel %vm2061_vm13, 0.0, %v2055_v39  ;;  %v2069_v24 = vrot.slane %v4934_v5, 1  ;;  %v4947_v17 = vadd.f32 %v2232_v58, %v2173_v10 }
 0x4b3   : > { %v2052_v32 = vsel %vm1020_vm2, 0.0, %v2044_v29  ;;  %v4951_v16 = vsel %vm2074_vm15, %v2068_v19, 0.0  ;;  %v2082_v6 = vrot.slane %v4934_v5, 2  ;;  %v2065_v4 = vsel %vm2061_vm13, 0.0, %v2056_v15 }
 0x4b4   : > { %v4956_v30 = vsel %vm1020_vm2, %v2081_v18, 0.0  ;;  %v2135_v27 = vmul.f32 %v4676_v36, %v2051_v1  ;;  %v2142_v52 = vmul.f32 %v4667_v33, %v2064_v2  ;;  %v4960_v23 = vadd.f32 %v2280_v28, %v2273_v47 }
 0x4b5   : > { %v2078_v60 = vsel %vm2074_vm15, %v2069_v24, 0.0  ;;  %v4964_v10 = vsel %vm1020_vm2, %v2082_v6, 0.0  ;;  %v2152_v51 = vmul.f32 %v4670_v34, %v4928_v53  ;;  %v2162_v45 = vmul.f32 %v4679_v37, %v4951_v16 }
 0x4b6   : > { %v2145_v20 = vadd.f32 %v2142_v52, %v2135_v27  ;;  %v2185_v21 = vmul.f32 %v4688_v42, %v2051_v1  ;;  %v2186_v36 = vmul.f32 %v4688_v42, %v2052_v32  ;;  %v2172_v33 = vmul.f32 %v4685_v40, %v4956_v30 }
 0x4b7   : > { %v2193_v62 = vmul.f32 %v4691_v54, %v2064_v2  ;;  %v2194_v7 = vmul.f32 %v4691_v54, %v2065_v4  ;;  %v2205_v59 = vmul.f32 %v4673_v35, %v4928_v53  ;;  %v2206_v34 = vmul.f32 %v4673_v35, %v4934_v5 }
 0x4b8   : > { %v2155_v28 = vadd.f32 %v2152_v51, %v2145_v20  ;;  %v2217_v37 = vmul.f32 %v4694_v43, %v4951_v16  ;;  %v2218_v12 = vmul.f32 %v4694_v43, %v2078_v60  ;;  %v2229_v40 = vmul.f32 %v4697_v44, %v4956_v30 }
 0x4b9   : > { %v2197_v42 = vadd.f32 %v2193_v62, %v2185_v21  ;;  %v2198_v58 = vadd.f32 %v2194_v7, %v2186_v36  ;;  %v2244_v39 = vmul.f32 %v4700_v50, %v2051_v1  ;;  %v2245_v19 = vmul.f32 %v4700_v50, %v2052_v32 }
 0x4ba   : > { %v2165_v54 = vadd.f32 %v2162_v45, %v2155_v28  ;;  %v2251_v18 = vmul.f32 %v4703_v55, %v2064_v2  ;;  %v2252_v47 = vmul.f32 %v4703_v55, %v2065_v4  ;;  %v2230_v15 = vmul.f32 %v4697_v44, %v4964_v10 }
 0x4bb   : > { %v2209_v35 = vadd.f32 %v2205_v59, %v2197_v42  ;;  %v2210_v29 = vadd.f32 %v2206_v34, %v2198_v58  ;;  %v2261_v43 = vmul.f32 %v4682_v38, %v4928_v53  ;;  %v2262_v52 = vmul.f32 %v4682_v38, %v4934_v5 }
 0x4bc   : > { %v2175_v24 = vadd.f32 %v2172_v33, %v2165_v54  ;;  %v2254_v6 = vadd.f32 %v2251_v18, %v2244_v39  ;;  %v2255_v27 = vadd.f32 %v2252_v47, %v2245_v19  ;;  %v2271_v20 = vmul.f32 %v4706_v56, %v4951_v16 }
 0x4bd   : > { %v2221_v51 = vadd.f32 %v2217_v37, %v2209_v35  ;;  %v2222_v50 = vadd.f32 %v2218_v12, %v2210_v29  ;;  %v2272_v55 = vmul.f32 %v4706_v56, %v2078_v60  ;;  %v2282_v36 = vmul.f32 %v4709_v57, %v4964_v10 }
 0x4be   : > { %v2178_v45 = vadd.f32 %v2175_v24, %v4916_v0  ;;  %v2264_v21 = vadd.f32 %v2261_v43, %v2254_v6  ;;  %v2265_v44 = vadd.f32 %v2262_v52, %v2255_v27  ;;  %v2294_v7 = vmul.f32 %v4731_v61, %v2051_v1 }
 0x4bf   : > { %v2233_v33 = vadd.f32 %v2229_v40, %v2221_v51  ;;  %v2234_v62 = vadd.f32 %v2230_v15, %v2222_v50  ;;  %v2295_v38 = vmul.f32 %v4731_v61, %v2052_v32  ;;  %v2300_v34 = vmul.f32 %v4737_v11, %v2064_v2 }
 0x4c0   : > { %v2274_v59 = vadd.f32 %v2271_v20, %v2264_v21  ;;  %v2275_v28 = vadd.f32 %v2272_v55, %v2265_v44  ;;  %v2301_v37 = vmul.f32 %v4737_v11, %v2065_v4  ;;  %v2281_v0 = vmul.f32 %v4709_v57, %v4956_v30 }
 0x4c1   : > { %v2237_v56 = vadd.f32 %v2233_v33, %v2177_v41  ;;  %v2238_v12 = vadd.f32 %v2234_v62, %v2178_v45  ;;  %v2308_v42 = vmul.f32 %v4734_v9, %v4928_v53  ;;  %v2302_v40 = vadd.f32 %v2300_v34, %v2294_v7  ;;  %v5781_v53 = vld [vmem:[#allocation11_spill] sm:$0xff] }
 0x4c2   : > { %v2285_v58 = vadd.f32 %v2282_v36, %v2275_v28  ;;  %v2303_v39 = vadd.f32 %v2301_v37, %v2295_v38  ;;  %v2309_v61 = vmul.f32 %v4734_v9, %v4934_v5  ;;  %v2231_v1 = vadd.f32 %v4922_v25, %v4943_v26 }
 0x4c3   : > { %v2284_v2 = vadd.f32 %v2281_v0, %v2274_v59  ;;  %v2316_v11 = vmul.f32 %v4740_v13, %v4951_v16  ;;  %v5017_v41 = vrot.slane %v4826_v48, %v4640_v3  ;;  %v2310_v32 = vadd.f32 %v2308_v42, %v2302_v40 }
 0x4c4   : > { %v2288_v57 = vadd.f32 %v2285_v58, %v2237_v56  ;;  %v2311_v4 = vadd.f32 %v2309_v61, %v2303_v39  ;;  %v2317_v54 = vmul.f32 %v4740_v13, %v2078_v60  ;;  %v2286_v19 = vadd.f32 %v4960_v23, %v2231_v1  ;;  %v5035_v13 = vld [vmem:[%s5643_s6 + $0x38] sm:$0xff] }
 0x4c5   : > { %5755 = vst [vmem:[#allocation42_spill] sm:$0xff] %v5017_v41  ;;  %v2324_v9 = vmul.f32 %v4743_v14, %v4956_v30  ;;  %v2325_v25 = vmul.f32 %v4743_v14, %v4964_v10  ;;  %v5026_v5 = vadd.f32 %v4716_v63, %v2238_v12  ;;  %v2287_v26 = vadd.f32 %v2284_v2, %v4947_v17  ;;  %v5786_v41 = vld [vmem:[#allocation28_spill] sm:$0xff] }
 0x4c6   : > { %v2318_v48 = vadd.f32 %v2316_v11, %v2310_v32  ;;  %v2319_v16 = vadd.f32 %v2317_v54, %v2311_v4  ;;  %v5030_v18 = vadd.f32 %v4716_v63, %v2288_v57  ;;  %5756 = vst [vmem:[#allocation43_spill] sm:$0xff] %v5035_v13  ;;  %v5049_v43 = vrot.slane %v4821_v46, %v4640_v3 }
 0x4c7   : > { %v2347_v30 = vrot.slane %v5026_v5, 5  ;;  %v2359_v23 = vrot.slane %v5026_v5, 6  ;;  %v2371_v14 = vrot.slane %v5026_v5, 7  ;;  %v2383_v60 = vrot.slane %v5026_v5, 1 }
 0x4c8   : > { %v2326_v10 = vadd.f32 %v2324_v9, %v2318_v48  ;;  %v2327_v17 = vadd.f32 %v2325_v25, %v2319_v16  ;;  %v2346_v47 = vrot.slane %v5030_v18, 5  ;;  %v2358_v35 = vrot.slane %v5030_v18, 6  ;;  %5757 = vst [vmem:[#allocation44_spill] sm:$0xff] %v5049_v43 }
 0x4c9   : > { %v5044_v29 = vsel %vm2074_vm15, 0.0, %v2347_v30  ;;  %v2370_v15 = vrot.slane %v5030_v18, 7  ;;  %v5053_v24 = vrot.slane %v5035_v13, %v4334_v8  ;;  %v5056_v52 = vsel %vm1020_vm2, 0.0, %v2359_v23 }
 0x4ca   : > { %v2328_v6 = vadd.f32 %v2326_v10, %v2286_v19  ;;  %v2329_v27 = vadd.f32 %v2327_v17, %v2287_v26  ;;  %5758 = vst [vmem:[#allocation45_spill] sm:$0xff] %v5056_v52  ;;  %v5059_v51 = vsel %vm2061_vm13, 0.0, %v2371_v14  ;;  %v5062_v50 = vsel %vm2074_vm15, 0.0, %v2346_v47 }
 0x4cb   : > { %v5065_v20 = vsel %vm1020_vm2, 0.0, %v2358_v35  ;;  %v2382_v55 = vrot.slane %v5030_v18, 1  ;;  %v2394_v45 = vrot.slane %v5030_v18, 2  ;;  %v5076_v36 = vsel %vm2061_vm13, 0.0, %v2370_v15 }
 0x4cc   : > { %5759 = vst [vmem:[#allocation46_spill] sm:$0xff] %v5065_v20  ;;  %v5070_v21 = vadd.f32 %v4716_v63, %v2328_v6  ;;  %v5073_v44 = vadd.f32 %v4716_v63, %v2329_v27  ;;  %5760 = vst [vmem:[#allocation47_spill] sm:$0xff] %v5076_v36  ;;  %v5079_v33 = vsel %vm2074_vm15, %v2383_v60, 0.0  ;;  %v2395_v7 = vrot.slane %v5026_v5, 2 }
 0x4cd   : > { %v5082_v62 = vsel %vm2074_vm15, %v2382_v55, 0.0  ;;  %v5086_v38 = vsel %vm1020_vm2, %v2394_v45, 0.0  ;;  %v2406_v59 = vrot.slane %v5030_v18, 3  ;;  %v2407_v39 = vrot.slane %v5026_v5, 3 }
 0x4ce   : > { %v2344_v28 = vrot.slane %v5070_v21, 5  ;;  %v2345_v63 = vrot.slane %v5073_v44, 5  ;;  %v2356_v34 = vrot.slane %v5070_v21, 6  ;;  %v2357_v37 = vrot.slane %v5073_v44, 6 }
 0x4cf   : > { %v2368_v56 = vrot.slane %v5070_v21, 7  ;;  %v2369_v12 = vrot.slane %v5073_v44, 7  ;;  %v2380_v0 = vrot.slane %v5070_v21, 1  ;;  %v2381_v42 = vrot.slane %v5073_v44, 1 }
 0x4d0   : > { %v5098_v58 = vsel %vm2074_vm15, 0.0, %v2344_v28  ;;  %v5101_v40 = vsel %vm2074_vm15, 0.0, %v2345_v63  ;;  %v2422_v61 = vmul.f32 %v4751_v22, %v5062_v50  ;;  %v5107_v1 = vsel %vm1020_vm2, 0.0, %v2356_v34 }
 0x4d1   : > { %v5110_v2 = vsel %vm1020_vm2, 0.0, %v2357_v37  ;;  %v5113_v11 = vsel %vm2061_vm13, 0.0, %v2368_v56  ;;  %v5116_v57 = vsel %vm2061_vm13, 0.0, %v2369_v12  ;;  %v5119_v32 = vsel %vm2074_vm15, %v2380_v0, 0.0 }
 0x4d2   : > { %v2392_v4 = vrot.slane %v5070_v21, 2  ;;  %v2393_v54 = vrot.slane %v5073_v44, 2  ;;  %v2404_v19 = vrot.slane %v5070_v21, 3  ;;  %v5125_v9 = vsel %vm2074_vm15, %v2381_v42, 0.0 }
 0x4d3   : > { %v5128_v25 = vsel %vm1020_vm2, %v2395_v7, 0.0  ;;  %v2405_v26 = vrot.slane %v5073_v44, 3  ;;  %v2420_v48 = vmul.f32 %v4751_v22, %v5098_v58  ;;  %v5137_v30 = vsel %vm2061_vm13, %v2406_v59, 0.0 }
 0x4d4   : > { %v5134_v16 = vsel %vm1020_vm2, %v2392_v4, 0.0  ;;  %v5140_v23 = vsel %vm2061_vm13, %v2407_v39, 0.0  ;;  %v2421_v14 = vmul.f32 %v4751_v22, %v5101_v40  ;;  %v5145_v60 = vsel %vm1020_vm2, %v2393_v54, 0.0 }
 0x4d5   : > { %v2423_v10 = vmul.f32 %v4751_v22, %v5044_v29  ;;  %v2428_v17 = vmul.f32 %v4754_v49, %v5107_v1  ;;  %v2429_v47 = vmul.f32 %v4754_v49, %v5110_v2  ;;  %v5154_v35 = vsel %vm2061_vm13, %v2404_v19, 0.0 }
 0x4d6   : > { %v5157_v15 = vsel %vm2061_vm13, %v2405_v26, 0.0  ;;  %v2430_v6 = vmul.f32 %v4754_v49, %v5065_v20  ;;  %v2431_v27 = vmul.f32 %v4754_v49, %v5056_v52  ;;  %v2440_v45 = vmul.f32 %v4763_v31, %v5113_v11  ;;  %v5761_v49 = vld [vmem:[#allocation18_spill] sm:$0xff] }
 0x4d7   : > { %v2432_v55 = vadd.f32 %v2428_v17, %v2420_v48  ;;  %v2433_v22 = vadd.f32 %v2429_v47, %v2421_v14  ;;  %v2441_v7 = vmul.f32 %v4763_v31, %v5116_v57  ;;  %v2442_v63 = vmul.f32 %v4763_v31, %v5076_v36 }
 0x4d8   : > { %v2434_v59 = vadd.f32 %v2430_v6, %v2422_v61  ;;  %v2435_v28 = vadd.f32 %v2431_v27, %v2423_v10  ;;  %v2443_v34 = vmul.f32 %v4763_v31, %v5059_v51  ;;  %v2452_v12 = vmul.f32 %v5761_v49, %v5070_v21  ;;  %v5762_v31 = vld [vmem:[#allocation19_spill] sm:$0xff] }
 0x4d9   : > { %v2444_v37 = vadd.f32 %v2440_v45, %v2432_v55  ;;  %v2445_v56 = vadd.f32 %v2441_v7, %v2433_v22  ;;  %v2453_v0 = vmul.f32 %v5761_v49, %v5073_v44  ;;  %v2454_v61 = vmul.f32 %v5761_v49, %v5030_v18  ;;  %v5763_v55 = vld [vmem:[#allocation20_spill] sm:$0xff] }
 0x4da   : > { %v2446_v42 = vadd.f32 %v2442_v63, %v2434_v59  ;;  %v2447_v39 = vadd.f32 %v2443_v34, %v2435_v28  ;;  %v2455_v4 = vmul.f32 %v5761_v49, %v5026_v5  ;;  %v2464_v26 = vmul.f32 %v5762_v31, %v5119_v32  ;;  %v1917_v34 = vld [vmem:[%s5643_s6 + $0x48] sm:$0xff] }
 0x4db   : > { %v2456_v54 = vadd.f32 %v2452_v12, %v2444_v37  ;;  %v2457_v19 = vadd.f32 %v2453_v0, %v2445_v56  ;;  %v2465_v48 = vmul.f32 %v5762_v31, %v5125_v9  ;;  %v2466_v17 = vmul.f32 %v5762_v31, %v5082_v62  ;;  %v5764_v49 = vld [vmem:[#allocation21_spill] sm:$0xff] }
 0x4dc   : > { %v2458_v14 = vadd.f32 %v2454_v61, %v2446_v42  ;;  %v2459_v10 = vadd.f32 %v2455_v4, %v2447_v39  ;;  %v2467_v47 = vmul.f32 %v5762_v31, %v5079_v33  ;;  %v2476_v22 = vmul.f32 %v5763_v55, %v5134_v16  ;;  %v5765_v4 = vld [vmem:[#allocation5_spill] sm:$0xff] }
 0x4dd   : > { %v2468_v6 = vadd.f32 %v2464_v26, %v2456_v54  ;;  %v2469_v27 = vadd.f32 %v2465_v48, %v2457_v19  ;;  %v2477_v45 = vmul.f32 %v5763_v55, %v5145_v60  ;;  %v2478_v28 = vmul.f32 %v5763_v55, %v5086_v38  ;;  %v5211_v19 = vld [vmem:[%s5643_s6 + $0x58] sm:$0xff] }
 0x4de   : > { %v2470_v7 = vadd.f32 %v2466_v17, %v2458_v14  ;;  %v2471_v59 = vadd.f32 %v2467_v47, %v2459_v10  ;;  %v2479_v63 = vmul.f32 %v5763_v55, %v5128_v25  ;;  %v2488_v12 = vmul.f32 %v5764_v49, %v5154_v35  ;;  %v5767_v14 = vld [vmem:[#allocation9_spill] sm:$0xff] }
 0x4df   : > { %v2480_v37 = vadd.f32 %v2476_v22, %v2468_v6  ;;  %v2481_v56 = vadd.f32 %v2477_v45, %v2469_v27  ;;  %v2489_v0 = vmul.f32 %v5764_v49, %v5157_v15  ;;  %v2490_v61 = vmul.f32 %v5764_v49, %v5137_v30  ;;  %v5768_v47 = vld [vmem:[#allocation13_spill] sm:$0xff]  ;;  %v5769_v6 = vld [vmem:[#allocation8_spill] sm:$0xff] }
 0x4e0   : > { %v2482_v42 = vadd.f32 %v2478_v28, %v2470_v7  ;;  %v2483_v39 = vadd.f32 %v2479_v63, %v2471_v59  ;;  %v5206_v54 = vrot.slane %v5035_v13, %v5765_v4  ;;  %v2491_v31 = vmul.f32 %v5764_v49, %v5140_v23  ;;  %v5773_v7 = vld [vmem:[#allocation14_spill] sm:$0xff]  ;;  %v5776_v49 = vld [vmem:[#allocation23_spill] sm:$0xff] }
 0x4e1   : > { %v2492_v26 = vadd.f32 %v2488_v12, %v2480_v37  ;;  %v2493_v48 = vadd.f32 %v2489_v0, %v2481_v56  ;;  %v5219_v27 = vrot.slane %v5769_v6, %v5768_v47  ;;  %v5222_v55 = vrot.slane %v1917_v34, %v4334_v8  ;;  %v5775_v37 = vld [vmem:[#allocation22_spill] sm:$0xff] }
 0x4e2   : > { %5766 = vst [vmem:[#allocation18_spill] sm:$0xff] %v5206_v54  ;;  %v2494_v17 = vadd.f32 %v2490_v61, %v2482_v42  ;;  %v5225_v22 = vrot.slane %v1917_v34, %v5765_v4  ;;  %v2495_v45 = vadd.f32 %v2491_v31, %v2483_v39  ;;  %v5230_v63 = vrot.slane %v1917_v34, %v5767_v14  ;;  %v5778_v39 = vld [vmem:[#allocation24_spill] sm:$0xff] }
 0x4e3   : > { %5770 = vst [vmem:[#allocation19_spill] sm:$0xff] %v5219_v27  ;;  %5771 = vst [vmem:[#allocation20_spill] sm:$0xff] %v5222_v55  ;;  %v2500_v59 = vadd.f32 %v5773_v7, %v2492_v26  ;;  %v2501_v28 = vadd.f32 %v5773_v7, %v2493_v48  ;;  %v2585_v56 = vmul.f32 %v5775_v37, %v5098_v58  ;;  %v5779_v26 = vld [vmem:[#allocation10_spill] sm:$0xff]  ;;  %v5783_v27 = vld [vmem:[#allocation17_spill] sm:$0xff] }
 0x4e4   : > { %5772 = vst [vmem:[#allocation21_spill] sm:$0xff] %v5225_v22  ;;  %5774 = vst [vmem:[#allocation8_spill] sm:$0xff] %v5230_v63  ;;  %v2593_v12 = vmul.f32 %v5776_v49, %v5107_v1  ;;  %v5240_v42 = vrot.slane %v5211_v19, %v5767_v14  ;;  %v2586_v31 = vmul.f32 %v5775_v37, %v5101_v40  ;;  %v5785_v22 = vld [vmem:[#allocation25_spill] sm:$0xff] }
 0x4e5   : > { %v2514_v61 = vmul.f32 %v5778_v39, %v2501_v28  ;;  %v2594_v34 = vmul.f32 %v5776_v49, %v5110_v2  ;;  %v5249_v48 = vrot.slane %v5211_v19, %v5779_v26  ;;  %v2502_v6 = vadd.f32 %v5773_v7, %v2494_v17 }
 0x4e6   : > { %5777 = vst [vmem:[#allocation14_spill] sm:$0xff] %v5240_v42  ;;  %v2587_v0 = vmul.f32 %v5775_v37, %v5062_v50  ;;  %v2595_v10 = vmul.f32 %v5776_v49, %v5065_v20  ;;  %v5258_v42 = vrot.slane %v5211_v19, %v5781_v53  ;;  %v5261_v4 = vadd.f32 %v5773_v7, %v2495_v45 }
 0x4e7   : > { %5780 = vst [vmem:[#allocation22_spill] sm:$0xff] %v5249_v48  ;;  %v5784_v63 = vrot.slane %v5783_v27, %v4334_v8  ;;  %v2588_v17 = vmul.f32 %v5775_v37, %v5044_v29  ;;  %v2596_v48 = vmul.f32 %v5776_v49, %v5056_v52  ;;  %v2522_v55 = vmul.f32 %v5785_v22, %v2501_v28  ;;  %v5788_v49 = vld [vmem:[#allocation29_spill] sm:$0xff] }
 0x4e8   : > { %5782 = vst [vmem:[#allocation23_spill] sm:$0xff] %v5258_v42  ;;  %v2532_v14 = vmul.f32 %v5786_v41, %v2501_v28  ;;  %v2597_v13 = vadd.f32 %v2593_v12, %v2585_v56  ;;  %v5274_v42 = vrot.slane %v5211_v19, %v5768_v47  ;;  %v2513_v45 = vmul.f32 %v5778_v39, %v2500_v59  ;;  %v5789_v47 = vld [vmem:[#allocation26_spill] sm:$0xff] }
 0x4e9   : > { %v2508_v26 = vmul.f32 %v5784_v63, %v2500_v59  ;;  %v2521_v63 = vmul.f32 %v5785_v22, %v2500_v59  ;;  %v2598_v8 = vadd.f32 %v2594_v34, %v2586_v31  ;;  %v2523_v37 = vmul.f32 %v5785_v22, %v2502_v6 }
 0x4ea   : > { %5787 = vst [vmem:[#allocation24_spill] sm:$0xff] %v5274_v42  ;;  %v2531_v54 = vmul.f32 %v5786_v41, %v2500_v59  ;;  %v2543_v52 = vmul.f32 %v5788_v49, %v2501_v28  ;;  %v2599_v20 = vadd.f32 %v2595_v10, %v2587_v0  ;;  %v2533_v43 = vmul.f32 %v5786_v41, %v2502_v6 }
 0x4eb   : > { %v2516_v7 = vadd.f32 %v2514_v61, %v2508_v26  ;;  %v2534_v56 = vmul.f32 %v5786_v41, %v5261_v4  ;;  %v2600_v12 = vadd.f32 %v2596_v48, %v2588_v17  ;;  %v2605_v39 = vmul.f32 %v5789_v47, %v5113_v11 }
 0x4ec   : > { %v2525_v61 = vadd.f32 %v2522_v55, %v2513_v45  ;;  %v2536_v26 = vadd.f32 %v2532_v14, %v2521_v63  ;;  %v2606_v31 = vmul.f32 %v5789_v47, %v5116_v57  ;;  %v2607_v22 = vmul.f32 %v5789_v47, %v5076_v36  ;;  %v5790_v14 = vld [vmem:[#allocation30_spill] sm:$0xff] }
 0x4ed   : > { %v2526_v59 = vadd.f32 %v2523_v37, %v2516_v7  ;;  %v2544_v10 = vmul.f32 %v5788_v49, %v2502_v6  ;;  %v2608_v28 = vmul.f32 %v5789_v47, %v5059_v51  ;;  %v2609_v0 = vadd.f32 %v2605_v39, %v2597_v13  ;;  %v5791_v7 = vld [vmem:[#allocation27_spill] sm:$0xff] }
 0x4ee   : > { %v2545_v41 = vmul.f32 %v5788_v49, %v5261_v4  ;;  %v2546_v34 = vadd.f32 %v2543_v52, %v2531_v54  ;;  %v2610_v48 = vadd.f32 %v2606_v31, %v2598_v8  ;;  %v2611_v55 = vadd.f32 %v2607_v22, %v2599_v20  ;;  %v5792_v54 = vld [vmem:[#allocation33_spill] sm:$0xff]  ;;  %v5793_v31 = vld [vmem:[#allocation34_spill] sm:$0xff] }
 0x4ef   : > { %v2554_v17 = vmul.f32 %v5790_v14, %v2502_v6  ;;  %v2555_v45 = vmul.f32 %v5790_v14, %v5261_v4  ;;  %v2612_v63 = vadd.f32 %v2608_v28, %v2600_v12  ;;  %v2617_v37 = vmul.f32 %v5791_v7, %v5070_v21 }
 0x4f0   : > { %v2537_v42 = vadd.f32 %v2533_v43, %v2525_v61  ;;  %v2547_v36 = vadd.f32 %v2544_v10, %v2536_v26  ;;  %v2618_v13 = vmul.f32 %v5791_v7, %v5073_v44  ;;  %v2619_v47 = vmul.f32 %v5791_v7, %v5030_v18 }
 0x4f1   : > { %v2538_v52 = vadd.f32 %v2534_v56, %v2526_v59  ;;  %v2620_v8 = vmul.f32 %v5791_v7, %v5026_v5  ;;  %v2621_v20 = vadd.f32 %v2617_v37, %v2609_v0  ;;  %v2629_v6 = vmul.f32 %v5792_v54, %v5119_v32 }
 0x4f2   : > { %v2622_v49 = vadd.f32 %v2618_v13, %v2610_v48  ;;  %v2623_v12 = vadd.f32 %v2619_v47, %v2611_v55  ;;  %v2630_v43 = vmul.f32 %v5792_v54, %v5125_v9  ;;  %v2631_v39 = vmul.f32 %v5792_v54, %v5082_v62 }
 0x4f3   : > { %v2624_v61 = vadd.f32 %v2620_v8, %v2612_v63  ;;  %v2632_v26 = vmul.f32 %v5792_v54, %v5079_v33  ;;  %v2633_v56 = vadd.f32 %v2629_v6, %v2621_v20  ;;  %v2641_v22 = vmul.f32 %v5793_v31, %v5134_v16  ;;  %v5794_v63 = vld [vmem:[#allocation35_spill] sm:$0xff] }
 0x4f4   : > { %v2634_v59 = vadd.f32 %v2630_v43, %v2622_v49  ;;  %v2635_v10 = vadd.f32 %v2631_v39, %v2623_v12  ;;  %v2642_v28 = vmul.f32 %v5793_v31, %v5145_v60  ;;  %v2643_v0 = vmul.f32 %v5793_v31, %v5086_v38  ;;  %v5795_v12 = vld [vmem:[#allocation12_spill] sm:$0xff] }
 0x4f5   : > { %v2636_v48 = vadd.f32 %v2632_v26, %v2624_v61  ;;  %v2644_v55 = vmul.f32 %v5793_v31, %v5128_v25  ;;  %v2645_v14 = vadd.f32 %v2641_v22, %v2633_v56  ;;  %v2653_v7 = vmul.f32 %v5794_v63, %v5154_v35 }
 0x4f6   : > { %v2556_v37 = vadd.f32 %v2554_v17, %v2546_v34  ;;  %v2646_v13 = vadd.f32 %v2642_v28, %v2634_v59  ;;  %v2647_v47 = vadd.f32 %v2643_v0, %v2635_v10  ;;  %v2654_v8 = vmul.f32 %v5794_v63, %v5157_v15  ;;  %v5798_v59 = vld [vmem:[#allocation32_spill] sm:$0xff] }
 0x4f7   : > { %v2557_v20 = vadd.f32 %v2555_v45, %v2547_v36  ;;  %v2648_v54 = vadd.f32 %v2644_v55, %v2636_v48  ;;  %v2655_v6 = vmul.f32 %v5794_v63, %v5137_v30  ;;  %v2657_v49 = vadd.f32 %v2653_v7, %v2645_v14  ;;  %v5797_v45 = vld [vmem:[#allocation15_spill] sm:$0xff]  ;;  %v5799_v0 = vld [vmem:[#allocation36_spill] sm:$0xff]  ;;  %v5800_v55 = vld [vmem:[#allocation38_spill] sm:$0xff] }
 0x4f8   : > { %v5796_v43 = vrot.slane %v5783_v27, %v5795_v12  ;;  %v2656_v61 = vmul.f32 %v5794_v63, %v5140_v23  ;;  %v2658_v34 = vadd.f32 %v2654_v8, %v2646_v13  ;;  %v5336_v17 = vrot.slane %v5211_v19, %v5795_v12  ;;  %v5801_v63 = vld [vmem:[#allocation39_spill] sm:$0xff] }
 0x4f9   : > { %v2548_v26 = vadd.f32 %v2545_v41, %v2537_v42  ;;  %v2659_v36 = vadd.f32 %v2655_v6, %v2647_v47  ;;  %v2665_v56 = vadd.f32 %v5797_v45, %v2657_v49  ;;  %v5342_v10 = vadd.f32 %v5798_v59, %v2538_v52  ;;  %v5804_v6 = vld [vmem:[#allocation44_spill] sm:$0xff]  ;;  %v5805_v49 = vld [vmem:[#allocation46_spill] sm:$0xff] }
 0x4fa   : > { %v2564_v39 = vmul.f32 %v5796_v43, %v5261_v4  ;;  %v2660_v4 = vadd.f32 %v2656_v61, %v2648_v54  ;;  %v2666_v27 = vadd.f32 %v5797_v45, %v2658_v34  ;;  %v5346_v28 = vadd.f32 %v5798_v59, %v2557_v20 }
 0x4fb   : > { %v2750_v48 = vmul.f32 %v5799_v0, %v5098_v58  ;;  %v2751_v42 = vmul.f32 %v5799_v0, %v5101_v40  ;;  %v2752_v41 = vmul.f32 %v5799_v0, %v5062_v50  ;;  %v2753_v7 = vmul.f32 %v5799_v0, %v5044_v29 }
 0x4fc   : > { %v2565_v22 = vadd.f32 %v2564_v39, %v2556_v37  ;;  %v2679_v14 = vmul.f32 %v5800_v55, %v2666_v27  ;;  %v2687_v52 = vmul.f32 %v5801_v63, %v2666_v27  ;;  %v5802_v37 = vld [vmem:[#allocation37_spill] sm:$0xff]  ;;  %v2667_v47 = vadd.f32 %v5797_v45, %v2659_v36 }
 0x4fd   : > { %v2758_v13 = vmul.f32 %v5802_v37, %v5107_v1  ;;  %v5803_v58 = vrot.slane %v4821_v46, %v5781_v53  ;;  %v2708_v40 = vmul.f32 %v5053_v24, %v2666_v27  ;;  %v2759_v50 = vmul.f32 %v5802_v37, %v5110_v2 }
 0x4fe   : > { %v2668_v20 = vadd.f32 %v5797_v45, %v2660_v4  ;;  %v2678_v54 = vmul.f32 %v5800_v55, %v2665_v56  ;;  %v2696_v29 = vmul.f32 %v5804_v6, %v2665_v56  ;;  %v2760_v1 = vmul.f32 %v5802_v37, %v5805_v49  ;;  %v5806_v45 = vld [vmem:[#allocation45_spill] sm:$0xff] }
 0x4ff   : > { %v2673_v8 = vmul.f32 %v5803_v58, %v2665_v56  ;;  %v5373_v43 = vadd.f32 %v5798_v59, %v2565_v22  ;;  %v5376_v46 = vadd.f32 %v5798_v59, %v2548_v26  ;;  %v2697_v61 = vmul.f32 %v5804_v6, %v2666_v27  ;;  %v5807_v26 = vld [vmem:[#allocation18_spill] sm:$0xff] }
 0x500   : > { %v2686_v2 = vmul.f32 %v5801_v63, %v2665_v56  ;;  %v2690_v34 = vadd.f32 %v2687_v52, %v2678_v54  ;;  %v2711_v36 = vadd.f32 %v2708_v40, %v2696_v29  ;;  %v2761_v4 = vmul.f32 %v5802_v37, %v5806_v45  ;;  %v5808_v56 = vld [vmem:[#allocation40_spill] sm:$0xff]  ;;  %v5809_v54 = vld [vmem:[#allocation47_spill] sm:$0xff]  ;;  %v5811_v29 = vld [vmem:[#allocation9_spill] sm:$0xff] }
 0x501   : > { %v2681_v39 = vadd.f32 %v2679_v14, %v2673_v8  ;;  %v2688_v0 = vmul.f32 %v5801_v63, %v2667_v47  ;;  %v2698_v55 = vmul.f32 %v5804_v6, %v2667_v47  ;;  %v2762_v58 = vadd.f32 %v2758_v13, %v2750_v48 }
 0x502   : > { %v2763_v22 = vadd.f32 %v2759_v50, %v2751_v42  ;;  %v2699_v49 = vmul.f32 %v5804_v6, %v2668_v20  ;;  %v2719_v59 = vmul.f32 %v5807_v26, %v2667_v47  ;;  %v2764_v14 = vadd.f32 %v2760_v1, %v2752_v41 }
 0x503   : > { %v2765_v8 = vadd.f32 %v2761_v4, %v2753_v7  ;;  %v2691_v27 = vadd.f32 %v2688_v0, %v2681_v39  ;;  %v2701_v31 = vadd.f32 %v2697_v61, %v2686_v2  ;;  %v2770_v52 = vmul.f32 %v5808_v56, %v5113_v11  ;;  %v5810_v11 = vld [vmem:[#allocation43_spill] sm:$0xff] }
 0x504   : > { %v2771_v37 = vmul.f32 %v5808_v56, %v5116_v57  ;;  %v2702_v40 = vadd.f32 %v2698_v55, %v2690_v34  ;;  %v2721_v63 = vadd.f32 %v2719_v59, %v2711_v36  ;;  %v2772_v48 = vmul.f32 %v5808_v56, %v5809_v54  ;;  %v5813_v36 = vld [vmem:[#allocation42_spill] sm:$0xff] }
 0x505   : > { %v2773_v42 = vmul.f32 %v5808_v56, %v5059_v51  ;;  %v2709_v13 = vmul.f32 %v5053_v24, %v2667_v47  ;;  %v2710_v41 = vmul.f32 %v5053_v24, %v2668_v20  ;;  %v2774_v7 = vadd.f32 %v2770_v52, %v2762_v58  ;;  %v5814_v58 = vld [vmem:[#allocation20_spill] sm:$0xff]  ;;  %v5815_v56 = vld [vmem:[#allocation21_spill] sm:$0xff] }
 0x506   : > { %v2775_v50 = vadd.f32 %v2771_v37, %v2763_v22  ;;  %v2720_v6 = vmul.f32 %v5807_v26, %v2668_v20  ;;  %v5812_v1 = vrot.slane %v5810_v11, %v5811_v29  ;;  %v2776_v39 = vadd.f32 %v2772_v48, %v2764_v14 }
 0x507   : > { %v2777_v61 = vadd.f32 %v2773_v42, %v2765_v8  ;;  %v2703_v2 = vadd.f32 %v2699_v49, %v2691_v27  ;;  %v2712_v34 = vadd.f32 %v2709_v13, %v2701_v31  ;;  %v2782_v45 = vmul.f32 %v5813_v36, %v5070_v21 }
 0x508   : > { %v2729_v57 = vmul.f32 %v5812_v1, %v2668_v20  ;;  %v2783_v51 = vmul.f32 %v5813_v36, %v5073_v44  ;;  %v2713_v47 = vadd.f32 %v2710_v41, %v2702_v40  ;;  %v2784_v4 = vmul.f32 %v5813_v36, %v5030_v18 }
 0x509   : > { %v2785_v0 = vmul.f32 %v5813_v36, %v5026_v5  ;;  %v2786_v55 = vadd.f32 %v2782_v45, %v2774_v7  ;;  %v2794_v22 = vmul.f32 %v5814_v58, %v5119_v32  ;;  %v2795_v31 = vmul.f32 %v5814_v58, %v5125_v9 }
 0x50a   : > { %v2730_v24 = vadd.f32 %v2729_v57, %v2721_v63  ;;  %v2787_v20 = vadd.f32 %v2783_v51, %v2775_v50  ;;  %v2788_v49 = vadd.f32 %v2784_v4, %v2776_v39  ;;  %v2796_v59 = vmul.f32 %v5814_v58, %v5082_v62  ;;  %v5817_v57 = vld [vmem:[#allocation16_spill] sm:$0xff] }
 0x50b   : > { %v2789_v26 = vadd.f32 %v2785_v0, %v2777_v61  ;;  %v2797_v14 = vmul.f32 %v5814_v58, %v5079_v33  ;;  %v2798_v8 = vadd.f32 %v2794_v22, %v2786_v55  ;;  %v2806_v52 = vmul.f32 %v5815_v56, %v5134_v16  ;;  %v5816_v33 = vld [vmem:[#allocation8_spill] sm:$0xff]  ;;  %v5822_v0 = vld [vmem:[#allocation22_spill] sm:$0xff]  ;;  %v5823_v55 = vld [vmem:[#allocation23_spill] sm:$0xff] }
 0x50c   : > { %v2799_v27 = vadd.f32 %v2795_v31, %v2787_v20  ;;  %v2807_v37 = vmul.f32 %v5815_v56, %v5145_v60  ;;  %v2800_v32 = vadd.f32 %v2796_v59, %v2788_v49  ;;  %v2808_v9 = vmul.f32 %v5815_v56, %v5086_v38  ;;  %v5824_v31 = vld [vmem:[#allocation24_spill] sm:$0xff] }
 0x50d   : > { %v2801_v40 = vadd.f32 %v2797_v14, %v2789_v26  ;;  %v2809_v63 = vmul.f32 %v5815_v56, %v5128_v25  ;;  %v2810_v62 = vadd.f32 %v2806_v52, %v2798_v8  ;;  %v2818_v48 = vmul.f32 %v5816_v33, %v5154_v35  ;;  %v3911_v25 = vld [vmem:[%s5647_s10] sm:$0xff] }
 0x50e   : > { %v2811_v54 = vadd.f32 %v2807_v37, %v2799_v27  ;;  %v2819_v42 = vmul.f32 %v5816_v33, %v5157_v15  ;;  %v2812_v16 = vadd.f32 %v2808_v9, %v2800_v32  ;;  %v2820_v60 = vmul.f32 %v5816_v33, %v5137_v30 }
 0x50f   : > { %v2813_v13 = vadd.f32 %v2809_v63, %v2801_v40  ;;  %v2821_v41 = vmul.f32 %v5816_v33, %v5140_v23  ;;  %v2722_v38 = vadd.f32 %v2720_v6, %v2712_v34  ;;  %v2822_v7 = vadd.f32 %v2818_v48, %v2810_v62  ;;  %v5818_v34 = vld [vmem:[#allocation19_spill] sm:$0xff] }
 0x510   : > { %v2823_v50 = vadd.f32 %v2819_v42, %v2811_v54  ;;  %v2902_v35 = vrot.slane %v3911_v25, %v4640_v3  ;;  %v2578_v15 = vadd.f32 %v5346_v28, %v5073_v44  ;;  %v2580_v11 = vadd.f32 %v5342_v10, %v5026_v5 }
 0x511   : > { %v2824_v1 = vadd.f32 %v2820_v60, %v2812_v16  ;;  %v2825_v30 = vadd.f32 %v2821_v41, %v2813_v13  ;;  %v2577_v23 = vadd.f32 %v5373_v43, %v5070_v21  ;;  %v2579_v6 = vadd.f32 %v5376_v46, %v5030_v18  ;;  %v5819_v21 = vld [vmem:[#allocation5_spill] sm:$0xff]  ;;  %v5821_v46 = vld [vmem:[#allocation14_spill] sm:$0xff] }
 0x512   : > { %v2830_v39 = vadd.f32 %v5817_v57, %v2822_v7  ;;  %v2831_v61 = vadd.f32 %v5817_v57, %v2823_v50  ;;  %v2738_v36 = vadd.f32 %v5818_v34, %v2730_v24  ;;  %v2740_v45 = vadd.f32 %v5818_v34, %v2713_v47 }
 0x513   : > { %v2741_v44 = vadd.f32 %v5818_v34, %v2703_v2  ;;  %v2832_v5 = vadd.f32 %v5817_v57, %v2824_v1  ;;  %v2739_v10 = vadd.f32 %v5818_v34, %v2722_v38  ;;  %v2833_v28 = vadd.f32 %v5817_v57, %v2825_v30 }
 0x514   : > { %v5820_v43 = vrot.slane %v5211_v19, %v5819_v21  ;;  %v2844_v51 = vmul.f32 %v5821_v46, %v2831_v61  ;;  %v2843_v4 = vmul.f32 %v5821_v46, %v2830_v39  ;;  %v2851_v24 = vmul.f32 %v5822_v0, %v2830_v39 }
 0x515   : > { %v2852_v47 = vmul.f32 %v5822_v0, %v2831_v61  ;;  %v2862_v2 = vmul.f32 %v5823_v55, %v2831_v61  ;;  %v2853_v58 = vmul.f32 %v5822_v0, %v2832_v5  ;;  %v2861_v22 = vmul.f32 %v5823_v55, %v2830_v39 }
 0x516   : > { %v2838_v18 = vmul.f32 %v5820_v43, %v2830_v39  ;;  %v2873_v49 = vmul.f32 %v5824_v31, %v2831_v61  ;;  %v2863_v59 = vmul.f32 %v5823_v55, %v2832_v5  ;;  %v2874_v8 = vmul.f32 %v5824_v31, %v2832_v5 }
 0x517   : > { %v2855_v26 = vadd.f32 %v2852_v47, %v2843_v4  ;;  %v2866_v14 = vadd.f32 %v2862_v2, %v2851_v24  ;;  %v2864_v56 = vmul.f32 %v5823_v55, %v2833_v28  ;;  %v2884_v37 = vmul.f32 %v5336_v17, %v2832_v5  ;;  %v3880_v24 = vld [vmem:[%s5644_s7] sm:$0xff]  }
 0x518   : > { %v2846_v20 = vadd.f32 %v2844_v51, %v2838_v18  ;;  %v2876_v52 = vadd.f32 %v2873_v49, %v2861_v22  ;;  %v2875_v40 = vmul.f32 %v5824_v31, %v2833_v28  ;;  %v2885_v63 = vmul.f32 %v5336_v17, %v2833_v28  ;;  %v5828_v18 = vld [vmem:[#allocation31_spill] sm:$0xff]  ;;  %v5829_v51 = vld [vmem:[#allocation41_spill] sm:$0xff] }
 0x519   : > { %v2867_v32 = vadd.f32 %v2863_v59, %v2855_v26  ;;  %v2877_v9 = vadd.f32 %v2874_v8, %v2866_v14  ;;  %v2745_v62 = vadd.f32 %v2741_v44, %v2580_v11  ;;  %v5825_v48 = vrot.slane %v5211_v19, %v4640_v3  ;;  %v5830_v14 = vld [vmem:[#allocation6_spill] sm:$0xff] }
 0x51a   : > { %v2856_v27 = vadd.f32 %v2853_v58, %v2846_v20  ;;  %v2886_v33 = vadd.f32 %v2884_v37, %v2876_v52  ;;  %v2743_v16 = vadd.f32 %v2739_v10, %v2578_v15  ;;  %v2744_v13 = vadd.f32 %v2740_v45, %v2579_v6  ;;  %v3879_v15 = vld [vmem:[%s5642_s5 + $0x10] sm:$0xff]   ;;  %v3881_v37 = vld [vmem:[%s5646_s9] sm:$0xff]  }
 0x51b   : > { %v2894_v42 = vmul.f32 %v5825_v48, %v2833_v28  ;;  %v2878_v60 = vadd.f32 %v2875_v40, %v2867_v32  ;;  %v2887_v41 = vadd.f32 %v2885_v63, %v2877_v9  ;;  %v2742_v38 = vadd.f32 %v2738_v36, %v2577_v23  ;;  %3662 = vmatpush3.bf16.msra.mxu0 %v3879_v15  ;;  %v5827_v23 = vld [vmem:[#allocation4_spill] sm:$0xff]  ;;  %v3882_v32 = vld [vmem:[%s5646_s9 + $0x8] sm:$0xff]  }
 0x51c   : > { %v2868_v54 = vadd.f32 %v2864_v56, %v2856_v27  ;;  %v5826_v19 = vmov 0.0   ;;  %v5831_v27 = vld [vmem:[#allocation7_spill] sm:$0xff]  ;;  %v1923_v40 = vld [vmem:[%s5648_s11] sm:$0x3] }
 0x51d   : > { %v2895_v7 = vadd.f32 %v2894_v42, %v2886_v33  ;;  %v2904_v25 = vadd.f32 %v2902_v35, %v2887_v41  ;;  %v2905_v1 = vadd.f32 %v2902_v35, %v2878_v60  ;;  %3673 = vmatprep.subr.bf16.mxu0 %v5826_v19  ;;  %v3051_v9 = vrot.slane %v1923_v40, %v5827_v23  ;;  %v1919_v63 = vld [vmem:[%s5645_s8] sm:$0xff] }
 0x51e   : > { %v2906_v50 = vadd.f32 %v2902_v35, %v2868_v54  ;;  %v3142_v33 = vrot.slane %v1919_v63, %v5819_v21  ;;  %v3135_v42 = vrot.slane %v1919_v63, %v5827_v23  ;;  %v5527_v60 = vrot.slane %v1919_v63, %v5781_v53 }
 0x51f   : > { %v2903_v30 = vadd.f32 %v2902_v35, %v2895_v7  ;;  %v2908_v39 = vadd.f32 %v2904_v25, %v2743_v16  ;;  %v2909_v17 = vadd.f32 %v2905_v1, %v2744_v13  ;;  %v5482_v35 = vld [vmem:[%s5647_s10 + $0x8] sm:$0x7f]  ;;  %v5832_v16 = vld [vmem:[#allocation10_spill] sm:$0xff]  ;;  %v3152_v25 = vrot.slane %v1919_v63, %v5811_v29 }
 0x520   : > { %v2910_v57 = vadd.f32 %v2906_v50, %v2745_v62  ;;  %v2926_v6 = vrot.slane %v5482_v35, %v5827_v23  ;;  %v2986_v47 = vrot.slane %v5482_v35, %v5819_v21  ;;  %v3040_v55 = vrot.slane %v5482_v35, %v5811_v29 }
 0x521   : > { %v2907_v11 = vadd.f32 %v2903_v30, %v2742_v38  ;;  %v5524_v13 = vrot.slane %v1919_v63, %v5832_v16  ;;  %v5833_v30 = vld [vmem:[#allocation13_spill] sm:$0xff] }
 0x522   : > { %v2919_v61 = vcombine.low %v2909_v17, %v2910_v57  ;;  %v5531_v57 = vrot.slane %v1919_v63, %v5833_v30  ;;  %v5537_v17 = vrot.slane %v1919_v63, %v4640_v3 }
 0x523   : > { %v2918_v34 = vcombine.low %v2907_v11, %v2908_v39  ;;  %v5534_v39 = vrot.slane %v1919_v63, %v5795_v12  ;;  %v5540_v11 = vrot.slane %v1923_v40, %v5819_v21  ;;  %v3590_v21 = vld [vmem:[%s5645_s8 + $0x8] ss:$0 sm:$0xff] }
 0x525   : > { %v2922_v44 = vpack.c.bf16 %v2919_v61, %v2918_v34 }
 0x527   : > { %3658 = vmatmul.mubr.msk.bf16.vlgmr.msra.gmra.mrb[4].mxu1 %vm931_vm5, %v2922_v44 }
 0x528   : > { %3669 = vmatprep.mubr.msk.bf16.mxu1 %vm3935_vm8, %v5826_v19  ;;  %3668 = vmatpush3.bf16.msra.mxu1 %v3880_v24 }
 0x5fa   : > { %v2970_v36 = vpop.f32.mrb[4].mxu1 }
 0x5fb   : > { %v2971_v45 = vadd.f32 %v2970_v36, %v2926_v6  ;;  %v3659_v5 = vpop.f32.mrb[5].mxu1 }
 0x5fc   : > { %v2973_v10 = vpop.f32.mrb[6].mxu1 }
 0x5fd   : > { %v2974_v28 = vadd.f32 %v2973_v10, %v2926_v6  ;;  %v3660_v43 = vpop.f32.mrb[7].mxu1  ;;  %v2977_v46 = vmul.f32 %v2971_v45, %v5828_v18 }
 0x5ff   : > { %v2978_v4 = vmul.f32 %v2974_v28, %v5829_v51 }
 0x601   : > { %v2982_v0 = vpack.c.bf16 %v2978_v4, %v2977_v46 }
 0x603   : > { %3664 = vmatmul.mubr.msk.bf16.vlgmr.msra.gmra.mrb[12].mxu0 %vm931_vm5, %v2982_v0 }
 0x604   : > { %3677 = vmatprep.mubr.msk.bf16.mxu0 %vm3935_vm8, %v5826_v19  ;;  %3674 = vmatpush3.bf16.msra.mxu0 %v3881_v37  ;;  %vm3495_vm8 = vcmask 654336  }
 0x605   : > { %3675 = vmatprep.subr.bf16.mxu0 %v5826_v19 }
 0x608   : > { %3676 = vmatpush3.bf16.msra.mxu0 %v3882_v32 }
 0x6d6   : > { %v3030_v2 = vpop.f32.mrb[12].mxu0 }
 0x6d7   : > { %v3031_v20 = vadd.f32 %v3030_v2, %v2986_v47  ;;  %v3665_v58 = vpop.f32.mrb[13].mxu0 }
 0x6d8   : > { %v3033_v22 = vpop.f32.mrb[14].mxu0 }
 0x6d9   : > { %v3041_v31 = vmul.f32 %v3040_v55, %v3031_v20  ;;  %v3034_v49 = vadd.f32 %v3033_v22, %v2986_v47  ;;  %v3666_v26 = vpop.f32.mrb[15].mxu0 }
 0x6db   : > { %v3042_v59 = vmul.f32 %v3040_v55, %v3034_v49  ;;  %v5499_v8 = vadd.f32 %v3041_v31, %v5830_v14 }
 0x6dd   : > { %v5502_v56 = vadd.f32 %v3042_v59, %v5831_v27 }
 0x6df   : > { %v3047_v52 = vpack.c.bf16 %v5502_v56, %v5499_v8 }
 0x6e1   : > { %3670 = vmatmul.mubr.msk.bf16.vlgmr.msra.gmra.mrb[8].mxu1 %vm931_vm5, %v3047_v52 }
 0x7b4   : > { %v3095_v62 = vpop.f32.mrb[8].mxu1 }
 0x7b5   : > { %v3096_v54 = vadd.f32 %v3095_v62, %v3051_v9  ;;  %v3671_v48 = vpop.f32.mrb[9].mxu1 }
 0x7b6   : > { %v3098_v41 = vpop.f32.mrb[10].mxu1 }
 0x7b7   : > { %v3104_v38 = vcombine.high %v3096_v54, %v3096_v54  ;;  %v3108_v7 = vrot.slane %v3096_v54, 7  ;;  %v3120_v50 = vrot.slane %v3096_v54, 1  ;;  %v3672_v1 = vpop.f32.mrb[11].mxu1  ;;  %v3143_v19 = vmul.f32 %v3142_v33, %v3096_v54 }
 0x7b8   : > { %v3171_v6 = vmul.f32 %v5527_v60, %v3096_v54  ;;  %v3099_v5 = vadd.f32 %v3098_v41, %v3051_v9 }
 0x7b9   : > { %v3109_v61 = vrot.slane %v3104_v38, 7  ;;  %v3116_v34 = vsel %vm2061_vm13, 0.0, %v3108_v7  ;;  %v3121_v44 = vrot.slane %v3104_v38, 1  ;;  %v3128_v29 = vsel %vm2074_vm15, %v3120_v50, 0.0 }
 0x7ba   : > { %v3136_v15 = vmul.f32 %v3135_v42, %v3116_v34  ;;  %v3163_v23 = vmul.f32 %v5524_v13, %v3116_v34  ;;  %v3144_v45 = vmul.f32 %v3142_v33, %v3104_v38  ;;  %v3172_v18 = vmul.f32 %v5527_v60, %v3104_v38 }
 0x7bb   : > { %v3117_v36 = vsel %vm2061_vm13, 0.0, %v3109_v61  ;;  %v3129_v3 = vsel %vm2074_vm15, %v3121_v44, 0.0  ;;  %v3153_v46 = vmul.f32 %v3152_v25, %v3128_v29  ;;  %v3206_v0 = vmul.f32 %v5537_v17, %v3104_v38 }
 0x7bc   : > { %v3137_v10 = vmul.f32 %v3135_v42, %v3117_v36  ;;  %v3146_v28 = vadd.f32 %v3143_v19, %v3136_v15  ;;  %v3164_v43 = vmul.f32 %v5524_v13, %v3117_v36  ;;  %v3175_v51 = vadd.f32 %v3171_v6, %v3163_v23 }
 0x7bd   : > { %v3199_v4 = vmul.f32 %v5534_v39, %v3117_v36  ;;  %v3183_v55 = vmul.f32 %v5531_v57, %v3128_v29  ;;  %v3184_v2 = vmul.f32 %v5531_v57, %v3129_v3  ;;  %v3216_v58 = vmul.f32 %v3590_v21, %v3129_v3 }
 0x7be   : > { %v3147_v24 = vadd.f32 %v3144_v45, %v3137_v10  ;;  %v3176_v47 = vadd.f32 %v3172_v18, %v3164_v43  ;;  %v3105_v22 = vcombine.high %v3099_v5, %v3099_v5  ;;  %v3110_v31 = vrot.slane %v3099_v5, 7 }
 0x7bf   : > { %v3209_v20 = vadd.f32 %v3206_v0, %v3199_v4  ;;  %v3154_v49 = vmul.f32 %v3152_v25, %v3129_v3  ;;  %v3156_v26 = vadd.f32 %v3153_v46, %v3146_v28  ;;  %v3122_v14 = vrot.slane %v3099_v5, 1 }
 0x7c0   : > { %v3188_v59 = vadd.f32 %v3184_v2, %v3176_v47  ;;  %v3187_v27 = vadd.f32 %v3183_v55, %v3175_v51  ;;  %v3111_v37 = vrot.slane %v3105_v22, 7  ;;  %v3118_v32 = vsel %vm2061_vm13, 0.0, %v3110_v31 }
 0x7c1   : > { %v3219_v52 = vadd.f32 %v3216_v58, %v3209_v20  ;;  %v3123_v40 = vrot.slane %v3105_v22, 1  ;;  %v3130_v9 = vsel %vm2074_vm15, %v3122_v14, 0.0  ;;  %v3138_v63 = vmul.f32 %v3135_v42, %v3118_v32 }
 0x7c2   : > { %v3165_v62 = vmul.f32 %v5524_v13, %v3118_v32  ;;  %v3157_v54 = vadd.f32 %v3154_v49, %v3147_v24  ;;  %v3119_v41 = vsel %vm2061_vm13, 0.0, %v3111_v37  ;;  %v3173_v38 = vmul.f32 %v5527_v60, %v3099_v5 }
 0x7c3   : > { %v3222_v48 = vadd.f32 %v3219_v52, %v3187_v27  ;;  %v3192_v7 = vadd.f32 %v3188_v59, %v3156_v26  ;;  %v3145_v50 = vmul.f32 %v3142_v33, %v3099_v5  ;;  %v3155_v1 = vmul.f32 %v3152_v25, %v3130_v9 }
 0x7c4   : > { %v3200_v61 = vmul.f32 %v5534_v39, %v3118_v32  ;;  %v3177_v44 = vadd.f32 %v3173_v38, %v3165_v62  ;;  %v3185_v19 = vmul.f32 %v5531_v57, %v3130_v9  ;;  %v3207_v42 = vmul.f32 %v5537_v17, %v3099_v5 }
 0x7c5   : > { %v5564_v34 = vadd.f32 %v5540_v11, %v3222_v48  ;;  %v3148_v29 = vadd.f32 %v3145_v50, %v3138_v63  ;;  %v3174_v15 = vmul.f32 %v5527_v60, %v3105_v22  ;;  %v3131_v23 = vsel %vm2074_vm15, %v3123_v40, 0.0 }
 0x7c6   : > { %v3166_v6 = vmul.f32 %v5524_v13, %v3119_v41  ;;  %v3189_v25 = vadd.f32 %v3185_v19, %v3177_v44  ;;  %v3210_v36 = vadd.f32 %v3207_v42, %v3200_v61  ;;  %v3217_v3 = vmul.f32 %v3590_v21, %v3130_v9 }
 0x7c7   : > { %v5572_v33 = vmul.f32 0.70710677, %v5564_v34  ;;  %v3208_v45 = vmul.f32 %v5537_v17, %v3105_v22  ;;  %v3186_v28 = vmul.f32 %v5531_v57, %v3131_v23  ;;  %v3201_v5 = vmul.f32 %v5534_v39, %v3119_v41 }
 0x7c8   : > { %v3178_v10 = vadd.f32 %v3174_v15, %v3166_v6  ;;  %v3220_v60 = vadd.f32 %v3217_v3, %v3210_v36  ;;  %v3193_v18 = vadd.f32 %v3189_v25, %v3157_v54  ;;  %v3158_v46 = vadd.f32 %v3155_v1, %v3148_v29 }
 0x7c9   : > { %v3242_v43 = vand.u32 2147483647, %v5572_v33  ;;  %v3211_v13 = vadd.f32 %v3208_v45, %v3201_v5  ;;  %v3218_v4 = vmul.f32 %v3590_v21, %v3131_v23  ;;  %vm3322_vm2 = vcmp.ge.f32.partialorder %v5572_v33, 0.0 }
 0x7ca   : > { %v3190_v51 = vadd.f32 %v3186_v28, %v3178_v10  ;;  %v3223_v24 = vadd.f32 %v3220_v60, %v3192_v7 }
 0x7cb   : > { %v3246_v0 = vmul.f32 0.3275911, %v3242_v43  ;;  %v3221_v55 = vadd.f32 %v3218_v4, %v3211_v13  ;;  %v3298_v27 = vsub.f32 0.0, %v3242_v43 }
 0x7cc   : > { %v3194_v47 = vadd.f32 %v3190_v51, %v3158_v46  ;;  %v5579_v17 = vadd.f32 %v5540_v11, %v3223_v24 }
 0x7cd   : > { %v3250_v2 = vadd.f32 1.0, %v3246_v0  ;;  %v3224_v20 = vadd.f32 %v3221_v55, %v3193_v18  ;;  %v3302_v9 = vmul.f32 %v3298_v27, %v3242_v43 }
 0x7ce   : > { %v5582_v57 = vadd.f32 %v5540_v11, %v3194_v47  ;;  %v5585_v39 = vmul.f32 0.70710677, %v5579_v17  ;;  %v3235_v33 = vmul.f32 0.5, %v5579_v17  ;;  %v3358_v17 = vrot.slane %v5482_v35, %v5832_v16 }
 0x7cf   : > { %3891 = vrcp.f32 %v3250_v2  ;;  %v5588_v58 = vadd.f32 %v5540_v11, %v3224_v20  ;;  %v3306_v54 = vmul.f32 1.442695, %v3302_v9 }
 0x7d0   : > { %v5591_v21 = vmul.f32 0.70710677, %v5582_v57  ;;  %v3243_v22 = vand.u32 2147483647, %v5585_v39  ;;  %vm3323_vm1 = vcmp.ge.f32.partialorder %v5585_v39, 0.0 }
 0x7d1   : > { %v5595_v31 = vmul.f32 0.70710677, %v5588_v58 }
 0x7d2   : > { %v3245_v49 = vand.u32 2147483647, %v5591_v21  ;;  %v3247_v26 = vmul.f32 0.3275911, %v3243_v22  ;;  %v3299_v48 = vsub.f32 0.0, %v3243_v22  ;;  %vm3325_vm4 = vcmp.ge.f32.partialorder %v5591_v21, 0.0 }
 0x7d3   : > { %v3244_v59 = vand.u32 2147483647, %v5595_v31  ;;  %vm3324_vm6 = vcmp.ge.f32.partialorder %v5595_v31, 0.0 }
 0x7d4   : > { %v3249_v14 = vmul.f32 0.3275911, %v3245_v49  ;;  %v3251_v52 = vadd.f32 1.0, %v3247_v26  ;;  %v3301_v38 = vsub.f32 0.0, %v3245_v49  ;;  %v3303_v61 = vmul.f32 %v3299_v48, %v3243_v22 }
 0x7d5   : > { %v3248_v37 = vmul.f32 0.3275911, %v3244_v59  ;;  %v3300_v50 = vsub.f32 0.0, %v3244_v59 }
 0x7d6   : > { %v3253_v32 = vadd.f32 1.0, %v3249_v14  ;;  %3893 = vrcp.f32 %v3251_v52  ;;  %v3305_v29 = vmul.f32 %v3301_v38, %v3245_v49  ;;  %v3308_v10 = vmul.f32 1.442695, %v3303_v61 }
 0x7d7   : > { %v3252_v11 = vadd.f32 1.0, %v3248_v37  ;;  %v3304_v36 = vmul.f32 %v3300_v50, %v3244_v59 }
 0x7d8   : > { %3895 = vrcp.f32 %v3253_v32  ;;  %v3312_v43 = vmul.f32 1.442695, %v3305_v29 }
 0x7d9   : > { %v3892_v40 = vpop.eup %3891  ;;  %3897 = vrcp.f32 %v3252_v11  ;;  %v3310_v13 = vmul.f32 1.442695, %v3304_v36 }
 0x7da   : > { %v3262_v63 = vmul.f32 1.0614054, %v3892_v40  ;;  %3899 = vpow2.f32 %v3306_v54 }
 0x7db   : > { %3901 = vpow2.f32 %v3308_v10 }
 0x7dc   : > { %v3266_v62 = vadd.f32 -1.4531521, %v3262_v63  ;;  %3903 = vpow2.f32 %v3312_v43 }
 0x7dd   : > { %3905 = vpow2.f32 %v3310_v13 }
 0x7de   : > { %v3270_v41 = vmul.f32 %v3892_v40, %v3266_v62 }
 0x7e0   : > { %v3274_v7 = vadd.f32 1.4214138, %v3270_v41  ;;  %v3894_v1 = vpop.eup %3893 }
 0x7e1   : > { %v3263_v19 = vmul.f32 1.0614054, %v3894_v1 }
 0x7e2   : > { %v3896_v44 = vpop.eup %3895  ;;  %v3278_v42 = vmul.f32 %v3892_v40, %v3274_v7 }
 0x7e3   : > { %v3265_v15 = vmul.f32 1.0614054, %v3896_v44  ;;  %v3898_v23 = vpop.eup %3897  ;;  %v3267_v6 = vadd.f32 -1.4531521, %v3263_v19 }
 0x7e4   : > { %v3282_v25 = vadd.f32 -0.28449672, %v3278_v42  ;;  %v3264_v3 = vmul.f32 1.0614054, %v3898_v23  ;;  %v3900_v55 = vpop.eup %3899 }
 0x7e5   : > { %v3269_v45 = vadd.f32 -1.4531521, %v3265_v15  ;;  %v3271_v28 = vmul.f32 %v3894_v1, %v3267_v6  ;;  %v3902_v54 = vpop.eup %3901 }
 0x7e6   : > { %v3286_v5 = vmul.f32 %v3892_v40, %v3282_v25  ;;  %v3268_v60 = vadd.f32 -1.4531521, %v3264_v3  ;;  %v3904_v41 = vpop.eup %3903  ;;  %v3234_v3 = vmul.f32 0.5, %v5564_v34 }
 0x7e7   : > { %v3273_v18 = vmul.f32 %v3896_v44, %v3269_v45  ;;  %v3275_v46 = vadd.f32 1.4214138, %v3271_v28  ;;  %v3906_v61 = vpop.eup %3905  ;;  %v3237_v28 = vmul.f32 0.5, %v5582_v57  ;;  %v3418_v57 = vrot.slane %v5482_v35, %v5781_v53 }
 0x7e8   : > { %v3290_v51 = vadd.f32 0.2548296, %v3286_v5  ;;  %v3272_v4 = vmul.f32 %v3898_v23, %v3268_v60 }
 0x7e9   : > { %v3277_v0 = vadd.f32 1.4214138, %v3273_v18  ;;  %v3279_v24 = vmul.f32 %v3894_v1, %v3275_v46  ;;  %v3236_v18 = vmul.f32 0.5, %v5588_v58 }
 0x7ea   : > { %v3294_v47 = vmul.f32 %v3892_v40, %v3290_v51  ;;  %v3276_v2 = vadd.f32 1.4214138, %v3272_v4 }
 0x7eb   : > { %v3281_v20 = vmul.f32 %v3896_v44, %v3277_v0  ;;  %v3283_v22 = vadd.f32 -0.28449672, %v3279_v24 }
 0x7ec   : > { %v3314_v49 = vmul.f32 %v3900_v55, %v3294_v47  ;;  %v3280_v26 = vmul.f32 %v3898_v23, %v3276_v2 }
 0x7ed   : > { %v3285_v59 = vadd.f32 -0.28449672, %v3281_v20  ;;  %v3287_v14 = vmul.f32 %v3894_v1, %v3283_v22 }
 0x7ee   : > { %v3318_v27 = vsub.f32 1.0, %v3314_v49  ;;  %v3284_v52 = vadd.f32 -0.28449672, %v3280_v26 }
 0x7ef   : > { %v3289_v37 = vmul.f32 %v3896_v44, %v3285_v59  ;;  %v3291_v32 = vadd.f32 0.2548296, %v3287_v14 }
 0x7f0   : > { %v3288_v11 = vmul.f32 %v3898_v23, %v3284_v52  ;;  %v3326_v62 = vsub.f32 0.0, %v3318_v27 }
 0x7f1   : > { %v3293_v9 = vadd.f32 0.2548296, %v3289_v37  ;;  %v3295_v63 = vmul.f32 %v3894_v1, %v3291_v32 }
 0x7f2   : > { %v3292_v40 = vadd.f32 0.2548296, %v3288_v11  ;;  %v3330_v42 = vsel %vm3322_vm2, %v3318_v27, %v3326_v62 }
 0x7f3   : > { %v3297_v48 = vmul.f32 %v3896_v44, %v3293_v9  ;;  %v3315_v38 = vmul.f32 %v3902_v54, %v3295_v63  ;;  %v3334_v36 = vadd.f32 1.0, %v3330_v42 }
 0x7f4   : > { %v3296_v7 = vmul.f32 %v3898_v23, %v3292_v40 }
 0x7f5   : > { %v3317_v50 = vmul.f32 %v3904_v41, %v3297_v48  ;;  %v3319_v19 = vsub.f32 1.0, %v3315_v38  ;;  %v3338_v60 = vmul.f32 %v3334_v36, %v3234_v3  ;;  %v3453_v41 = vrot.slane %v5482_v35, %v5833_v30 }
 0x7f6   : > { %v3316_v29 = vmul.f32 %v3906_v61, %v3296_v7 }
 0x7f7   : > { %v3321_v15 = vsub.f32 1.0, %v3317_v50  ;;  %v3327_v6 = vsub.f32 0.0, %v3319_v19  ;;  %v3459_v50 = vrot.slane %v5482_v35, %v5795_v12 }
 0x7f8   : > { %v3320_v25 = vsub.f32 1.0, %v3316_v29 }
 0x7f9   : > { %v3329_v1 = vsub.f32 0.0, %v3321_v15  ;;  %v3331_v44 = vsel %vm3323_vm1, %v3319_v19, %v3327_v6 }
 0x7fa   : > { %v3328_v23 = vsub.f32 0.0, %v3320_v25  ;;  %v3335_v10 = vadd.f32 1.0, %v3331_v44 }
 0x7fb   : > { %v3333_v45 = vsel %vm3325_vm4, %v3321_v15, %v3329_v1 }
 0x7fc   : > { %v3337_v5 = vadd.f32 1.0, %v3333_v45  ;;  %v3332_v43 = vsel %vm3324_vm6, %v3320_v25, %v3328_v23  ;;  %v3339_v39 = vmul.f32 %v3335_v10, %v3235_v33 }
 0x7fd   : > { %v3336_v46 = vadd.f32 1.0, %v3332_v43 }
 0x7fe   : > { %v3341_v34 = vmul.f32 %v3337_v5, %v3237_v28  ;;  %v3350_v51 = vcombine.low %v3338_v60, %v3339_v39 }
 0x7ff   : > { %v3340_v21 = vmul.f32 %v3336_v46, %v3236_v18 }
 0x801   : > { %v3351_v13 = vcombine.low %v3340_v21, %v3341_v34 }
 0x803   : > { %v3354_v4 = vpack.c.bf16 %v3351_v13, %v3350_v51 }
 0x805   : > { %3678 = vmatmul.mubr.msk.bf16.vlgmr.msra.gmra.mrb[16].mxu0 %vm967_vm9, %v3354_v4 }
 0x8d8   : > { %v3408_v31 = vpop.f32.mrb[16].mxu0 }
 0x8d9   : > { %v3409_v0 = vadd.f32 %v3408_v31, %v3358_v17  ;;  %v3679_v24 = vpop.f32.mrb[17].mxu0 }
 0x8da   : > { %v3411_v47 = vpop.f32.mrb[18].mxu0 }
 0x8db   : > { %v3419_v55 = vmul.f32 %v3418_v57, %v3409_v0  ;;  %v3412_v58 = vadd.f32 %v3411_v47, %v3358_v17  ;;  %v3680_v2 = vpop.f32.mrb[19].mxu0 }
 0x8dd   : > { %v3420_v20 = vmul.f32 %v3418_v57, %v3412_v58  ;;  %v3421_v22 = vadd.f32 %v3419_v55, %v5499_v8 }
 0x8df   : > { %v3423_v49 = vsel %vm931_vm5, %v3421_v22, 0.0  ;;  %v3422_v26 = vadd.f32 %v3420_v20, %v5502_v56 }
 0x8e0   : > { %3424 = vadd.xlane.f32.xlu0 %v3423_v49 }
 0x8e1   : > { %v3426_v16 = vsel %vm931_vm5, %v3422_v26, 0.0 }
 0x8e2   : > { %3427 = vadd.xlane.f32.xlu1 %v3426_v16 }
 0x96d   : > { %v3425_v59 = vpop.xlane.xlu0 %3424 }
 0x96e   : > { %v3430_v53 = vmul.f32 0.0625, %v3425_v59 }
 0x96f   : > { %v3428_v14 = vpop.xlane.xlu1 %3427 }
 0x970   : > { %v3432_v27 = vsub.f32 %v3421_v22, %v3430_v53  ;;  %v3431_v52 = vmul.f32 0.0625, %v3428_v14 }
 0x972   : > { %v3433_v37 = vsub.f32 %v3422_v26, %v3431_v52  ;;  %v3434_v32 = vmul.f32 %v3432_v27, %v3432_v27 }
 0x974   : > { %v3436_v11 = vsel %vm931_vm5, %v3434_v32, 0.0  ;;  %v3435_v9 = vmul.f32 %v3433_v37, %v3433_v37 }
 0x975   : > { %3437 = vadd.xlane.f32.xlu0 %v3436_v11 }
 0x976   : > { %v3439_v8 = vsel %vm931_vm5, %v3435_v9, 0.0 }
 0x979   : > { %3440 = vadd.xlane.f32.xlu0 %v3439_v8 }
 0xa02   : > { %v3438_v63 = vpop.xlane.xlu0 %3437 }
 0xa03   : > { %v3442_v56 = vmul.f32 0.0625, %v3438_v63 }
 0xa05   : > { %v3444_v62 = vadd.f32 1e-05, %v3442_v56 }
 0xa06   : > { %v3441_v54 = vpop.xlane.xlu0 %3440 }
 0xa07   : > { %3907 = vrsqrt.f32 %v3444_v62  ;;  %v3443_v40 = vmul.f32 0.0625, %v3441_v54 }
 0xa09   : > { %v3445_v48 = vadd.f32 1e-05, %v3443_v40 }
 0xa0b   : > { %3909 = vrsqrt.f32 %v3445_v48 }
 0xa11   : > { %v3908_v38 = vpop.eup %3907 }
 0xa12   : > { %v3448_v7 = vmul.f32 %v3908_v38, %v3432_v27 }
 0xa14   : > { %v3454_v61 = vmul.f32 %v3453_v41, %v3448_v7 }
 0xa15   : > { %v3910_v19 = vpop.eup %3909 }
 0xa16   : > { %v3449_v42 = vmul.f32 %v3910_v19, %v3433_v37  ;;  %v3460_v29 = vadd.f32 %v3459_v50, %v3454_v61 }
 0xa18   : > { %v3463_v15 = vrot.slane %v3460_v29, 2  ;;  %v3467_v6 = vrot.slane %v3460_v29, 4  ;;  %v3455_v25 = vmul.f32 %v3453_v41, %v3449_v42  ;;  %v3471_v36 = vrot.slane %v3460_v29, 6 }
 0xa1a   : > { %3464 = vrot.lane.b32.xlu1 %v3463_v15, %s3923_s30  ;;  %3468 = vrot.lane.b32.xlu0 %v3467_v6, %s3929_s26  ;;  %v3461_v1 = vadd.f32 %v3459_v50, %v3455_v25  ;;  %s3562_s30 = sshll.u32 %s5835_s22, 1 }
 0xa1c   : > { %v3479_v3 = vrot.slane %v3461_v1, 2  ;;  %v3487_v30 = vrot.slane %v3461_v1, 6  ;;  %v3483_v12 = vrot.slane %v3461_v1, 4 }
 0xa1e   : > { %3472 = vrot.lane.b32.xlu1 %v3471_v36, %s3932_s13  ;;  %3480 = vrot.lane.b32.xlu0 %v3479_v3, %s3936_s14 }
 0xa22   : > { %3476 = vrot.lane.b32.xlu1 %v3461_v1, %s3934_s16  ;;  %3488 = vrot.lane.b32.xlu0 %v3487_v30, %s3937_s17  ;;  %s411_s16 = scalar_lea.vmem %s5649_s12, %s3562_s30 }
 0xa26   : > { %3484 = vrot.lane.b32.xlu1 %v3483_v12, %s3938_s15 }
 0xa8c   : > { %v3465_v35 = vpop.permute.xlu1 %3464  ;;  %v3469_v44 = vpop.permute.xlu0 %3468 }
 0xa8d   : > { %v3491_v33 = vsel %vm931_vm5, %v3460_v29, %v3465_v35 }
 0xa8e   : > { %v3492_v10 = vsel %vm967_vm9, %v3491_v33, %v3469_v44 }
 0xa90   : > { %v3473_v23 = vpop.permute.xlu1 %3472  ;;  %v3481_v45 = vpop.permute.xlu0 %3480 }
 0xa91   : > { %v3493_v28 = vsel %vm1792_vm11, %v3492_v10, %v3473_v23 }
 0xa94   : > { %v3477_v5 = vpop.permute.xlu1 %3476  ;;  %v3489_v18 = vpop.permute.xlu0 %3488 }
 0xa95   : > { %v3494_v43 = vsel %vm1802_vm3, %v3493_v28, %v3477_v5 }
 0xa96   : > { %v3496_v60 = vsel %vm3495_vm8, %v3494_v43, %v3481_v45 }
 0xa98   : > { %v3485_v39 = vpop.permute.xlu1 %3484 }
 0xa99   : > { %v3498_v46 = vsel %vm3497_vm10, %v3496_v60, %v3485_v39 }
 0xa9a   : > { %v3500_v34 = vsel %vm3499_vm12, %v3498_v46, %v3489_v18 }
 0xa9b   : > { %3501 = vst [vmem:[%s411_s16] sm:$0x3] %v3500_v34 }
 0xa9c PF: > { %s22_s21 = sadd.s32 1, %s3918_s21  }
 0xa9d   : > { %p19_p4 = scmp.ge.s32.totalorder %s22_s21, 4  }
 0xa9f   :  { %21 = sbr.rel (!%p19_p4) target bundleno = 1 (0x1), region = 112 }

</bundles_post_ra>
